<compile_context>
chip_gen: v7x
topology: tpu7x:2x2x1
jax: 0.10.0
libtpu: 0.0.40
codegen_flags: <defaults>
</compile_context>

<pallas_src>
import jax
import jax.numpy as jnp
from jax import lax
from jax.experimental import pallas as pl
from jax.experimental.pallas import tpu as pltpu

BN_EPS = 1e-5
MM_DTYPE = jnp.bfloat16          # MXU operand dtype (bf16-native on v6e/v7x)


def _vmem_limit_bytes():
    """Generation-aware scoped-VMEM limit: ~3/4 of physical, capped at 100 MiB
    (v7x: 64 MiB physical -> 48 MiB; v5e/v6e: 128 MiB -> 96 MiB)."""
    cap = 128 * 1024 * 1024
    try:
        cap = int(getattr(pltpu.get_tpu_info(), "vmem_capacity_bytes", cap))
    except Exception:
        pass
    return int(min(100 * 1024 * 1024, max(32 * 1024 * 1024, (cap * 3) // 4)))


def _compiler_params():
    return pltpu.CompilerParams(
        dimension_semantics=("parallel",),       # megacore split over batch
        vmem_limit_bytes=_vmem_limit_bytes(),
    )


# ----------------------------- Pallas kernels ------------------------------

def _make_branch_kernel(width, H, W, Cin, Cout, dmax):
    """All dilated 3x3 conv branches, one per-branch matmul each, + BN1 partials.

    Grid step = one batch element.  The input block is the d_max
    reflection-padded plane in bf16; every branch's 9 taps are in-VMEM shifted
    windows of it (no HBM im2col, no f32 upcast)."""
    def kernel(xpad_ref, w_ref, hid_ref, stats_ref):
        x = xpad_ref[0]                                   # (Hp, Wp, Cin) bf16
        ys = []
        for i in range(width):
            d = 2 * i + 1
            base = dmax - d
            cols = []
            for kh in range(3):
                for kw in range(3):
                    win = x[base + kh * d: base + kh * d + H,
                            base + kw * d: base + kw * d + W, :]
                    cols.append(win.reshape(H * W, Cin))
            patches = jnp.concatenate(cols, axis=-1)      # (H*W, 9*Cin) bf16
            ys.append(jnp.dot(patches, w_ref[i],
                              preferred_element_type=jnp.float32))
        y = jnp.concatenate(ys, axis=-1)                  # (H*W, Cmid) f32
        # single-pass BN1 partials: per-channel sum / sum-of-squares of tile
        stats_ref[0] = jnp.concatenate(
            [jnp.sum(y, axis=0, keepdims=True),
             jnp.sum(y * y, axis=0, keepdims=True)], axis=0)
        hid_ref[0] = y.reshape(H, W, width * Cout).astype(hid_ref.dtype)
    return kernel


def _make_head_kernel(H, W, Cmid, Cout, rows_f, lanes_f):
    """BN1 affine + PReLU, in-VMEM ReflectionPad2d(1), then the 3x3 branch1x1
    conv as 9 accumulated per-tap matmuls, + BN2 partial stats.

    Output is written already folded into a lane-dense (rows_f, lanes_f)
    layout (consumed directly by the finalize kernel)."""
    def kernel(hid_ref, scale_ref, shift_ref, alpha_ref, w_ref,
               out_ref, stats_ref):
        h = hid_ref[0].astype(jnp.float32)                # (H, W, Cmid)
        h = h * scale_ref[...] + shift_ref[...]           # BN1 (global stats)
        a = alpha_ref[0]                                  # SMEM scalar
        h = jnp.where(h > 0, h, a * h).astype(MM_DTYPE)   # shared-scalar PReLU
        # ReflectionPad2d(1) built in-VMEM (mirror row/col concat)
        hp = jnp.concatenate([h[1:2], h, h[H - 2:H - 1]], axis=0)
        hp = jnp.concatenate([hp[:, 1:2], hp, hp[:, W - 2:W - 1]], axis=1)
        acc = jnp.zeros((H * W, Cout), jnp.float32)
        for kh in range(3):
            for kw in range(3):
                win = hp[kh:kh + H, kw:kw + W, :].reshape(H * W, Cmid)
                acc = acc + jnp.dot(win, w_ref[kh * 3 + kw],
                                    preferred_element_type=jnp.float32)
        stats_ref[0] = jnp.concatenate(
            [jnp.sum(acc, axis=0, keepdims=True),
             jnp.sum(acc * acc, axis=0, keepdims=True)], axis=0)
        out_ref[0] = acc.reshape(rows_f, lanes_f)         # lane-dense store
    return kernel


def _finalize_kernel(y_ref, x_ref, scale_ref, shift_ref, alpha_ref, o_ref):
    """BN2 affine + residual add + PReLU in the lane-dense folded layout."""
    y = y_ref[0] * scale_ref[...] + shift_ref[...] + x_ref[0]
    a = alpha_ref[0]
    o_ref[0] = jnp.where(y > 0, y, a * y)


# ------------------------------ plain-JAX glue ------------------------------

def _branch_weight_stack(branch_w):
    """[(Cout, Cin, 3, 3)] * width -> (width, 9*Cin, Cout), K order (kh,kw,cin)."""
    mats = [jnp.transpose(w, (2, 3, 1, 0)).reshape(-1, w.shape[0])
            for w in branch_w]
    return jnp.stack(mats, axis=0).astype(MM_DTYPE)


def _finalize_bn_stats(stats, gamma, beta, count):
    """(tiles, 2, C) sum/sumsq partials -> per-channel BN scale / shift."""
    s = jnp.sum(stats[:, 0, :], axis=0)
    ss = jnp.sum(stats[:, 1, :], axis=0)
    mean = s / count
    var = jnp.maximum(ss / count - mean * mean, 0.0)
    scale = gamma * lax.rsqrt(var + BN_EPS)
    shift = beta - mean * scale
    return scale, shift


def _pick_lane_fold(per_item_elems, c):
    """Row-major (rows, lanes) fold with lanes a multiple of 128 if possible."""
    for lanes in (128, 256, 512):
        if per_item_elems % lanes == 0 and lanes % c == 0:
            return per_item_elems // lanes, lanes
    # perf cliff fallback (masked stores) -- functionally correct
    return per_item_elems // c, c


def inception_block_forward(x_nchw, params):
    width = len(params["branch_w"])
    N, Cin, H, W = x_nchw.shape
    Cout = params["branch_w"][0].shape[0]
    Cmid = Cout * width
    dmax = 2 * width - 1
    assert Cin == Cout, "residual add requires input_nc == output_nc"
    assert dmax < H and dmax < W, "reflection pad needs dilation < spatial size"

    cparams = _compiler_params()
    x_nhwc = jnp.transpose(x_nchw, (0, 2, 3, 1)).astype(jnp.float32)

    # Reflection-pad ONCE with the largest dilation; every branch's taps are
    # shifted in-VMEM windows of this single padded bf16 plane.
    xpad = jnp.pad(x_nhwc, ((0, 0), (dmax, dmax), (dmax, dmax), (0, 0)),
                   mode="reflect").astype(MM_DTYPE)
    Hp, Wp = H + 2 * dmax, W + 2 * dmax
    w_branches = _branch_weight_stack(params["branch_w"])      # (width,9*Cin,Cout)
    alpha1d = params["alpha"].reshape(1).astype(jnp.float32)

    hid, stats1 = pl.pallas_call(
        _make_branch_kernel(width, H, W, Cin, Cout, dmax),
        grid=(N,),
        in_specs=[
            pl.BlockSpec((1, Hp, Wp, Cin), lambda n: (n, 0, 0, 0)),
            pl.BlockSpec((width, 9 * Cin, Cout), lambda n: (0, 0, 0)),
        ],
        out_specs=[
            pl.BlockSpec((1, H, W, Cmid), lambda n: (n, 0, 0, 0)),
            pl.BlockSpec((1, 2, Cmid), lambda n: (n, 0, 0)),
        ],
        out_shape=[
            jax.ShapeDtypeStruct((N, H, W, Cmid), MM_DTYPE),    # bf16 hid
            jax.ShapeDtypeStruct((N, 2, Cmid), jnp.float32),
        ],
        compiler_params=cparams,
    )(xpad, w_branches)

    scale1, shift1 = _finalize_bn_stats(
        stats1, params["gamma1"], params["beta1"], N * H * W)

    # Head conv weight as 9 per-tap (Cmid, Cout) matrices.
    w2taps = jnp.transpose(params["w2"], (2, 3, 1, 0)).reshape(
        9, Cmid, Cout).astype(MM_DTYPE)

    rows_f, lanes_f = _pick_lane_fold(H * W * Cout, Cout)

    out_fold, stats2 = pl.pallas_call(
        _make_head_kernel(H, W, Cmid, Cout, rows_f, lanes_f),
        grid=(N,),
        in_specs=[
            pl.BlockSpec((1, H, W, Cmid), lambda n: (n, 0, 0, 0)),
            pl.BlockSpec((1, Cmid), lambda n: (0, 0)),
            pl.BlockSpec((1, Cmid), lambda n: (0, 0)),
            pl.BlockSpec(memory_space=pltpu.MemorySpace.SMEM),   # alpha scalar
            pl.BlockSpec((9, Cmid, Cout), lambda n: (0, 0, 0)),
        ],
        out_specs=[
            pl.BlockSpec((1, rows_f, lanes_f), lambda n: (n, 0, 0)),
            pl.BlockSpec((1, 2, Cout), lambda n: (n, 0, 0)),
        ],
        out_shape=[
            jax.ShapeDtypeStruct((N, rows_f, lanes_f), jnp.float32),
            jax.ShapeDtypeStruct((N, 2, Cout), jnp.float32),
        ],
        compiler_params=cparams,
    )(hid, scale1.reshape(1, Cmid), shift1.reshape(1, Cmid),
      alpha1d, w2taps)

    scale2, shift2 = _finalize_bn_stats(
        stats2, params["gamma2"], params["beta2"], N * H * W)

    # Final pointwise pass (BN2 + residual + PReLU) in the lane-dense fold.
    rep = lanes_f // Cout
    scale2_row = jnp.tile(scale2, rep).reshape(1, lanes_f)
    shift2_row = jnp.tile(shift2, rep).reshape(1, lanes_f)
    x_fold = x_nhwc.reshape(N, rows_f, lanes_f)          # Cin == Cout

    final = pl.pallas_call(
        _finalize_kernel,
        grid=(N,),
        in_specs=[
            pl.BlockSpec((1, rows_f, lanes_f), lambda n: (n, 0, 0)),
            pl.BlockSpec((1, rows_f, lanes_f), lambda n: (n, 0, 0)),
            pl.BlockSpec((1, lanes_f), lambda n: (0, 0)),
            pl.BlockSpec((1, lanes_f), lambda n: (0, 0)),
            pl.BlockSpec(memory_space=pltpu.MemorySpace.SMEM),   # alpha scalar
        ],
        out_specs=pl.BlockSpec((1, rows_f, lanes_f), lambda n: (n, 0, 0)),
        out_shape=jax.ShapeDtypeStruct((N, rows_f, lanes_f), jnp.float32),
        compiler_params=cparams,
    )(out_fold, x_fold, scale2_row, shift2_row, alpha1d)

    return jnp.transpose(final.reshape(N, H, W, Cout), (0, 3, 1, 2))


# --------------------------- pure-JAX reference -----------------------------

def _bn_train(x_nchw, gamma, beta):
    mean = jnp.mean(x_nchw, axis=(0, 2, 3), keepdims=True)
    var = jnp.mean(jnp.square(x_nchw - mean), axis=(0, 2, 3), keepdims=True)
    return ((x_nchw - mean) * lax.rsqrt(var + BN_EPS)
            * gamma.reshape(1, -1, 1, 1) + beta.reshape(1, -1, 1, 1))


def _prelu(x, alpha):
    return jnp.where(x > 0, x, alpha[0] * x)


def reference_forward(x, params):
    width = len(params["branch_w"])
    outs = []
    for i in range(width):
        d = 2 * i + 1
        xp = jnp.pad(x, ((0, 0), (0, 0), (d, d), (d, d)), mode="reflect")
        y = lax.conv_general_dilated(
            xp, params["branch_w"][i], (1, 1), "VALID", rhs_dilation=(d, d),
            dimension_numbers=("NCHW", "OIHW", "NCHW"))
        outs.append(y)
    out = jnp.concatenate(outs, axis=1)
    out = _prelu(_bn_train(out, params["gamma1"], params["beta1"]),
                 params["alpha"])
    op = jnp.pad(out, ((0, 0), (0, 0), (1, 1), (1, 1)), mode="reflect")
    out = lax.conv_general_dilated(
        op, params["w2"], (1, 1), "VALID",
        dimension_numbers=("NCHW", "OIHW", "NCHW"))
    out = _bn_train(out, params["gamma2"], params["beta2"])
    return _prelu(out + x, params["alpha"])        # drop_rate == 0 -> no dropout


# ----------------------------------- main ------------------------------------

if __name__ == "__main__":
    N, Cin, H, W = 2, 4, 16, 16
    Cout, width = 4, 2                             # residual requires Cout == Cin

    key = jax.random.PRNGKey(0)
    ks = jax.random.split(key, 8)
    params = {
        "branch_w": [0.2 * jax.random.normal(ks[i], (Cout, Cin, 3, 3), jnp.float32)
                     for i in range(width)],
        "w2": 0.2 * jax.random.normal(ks[2], (Cout, Cout * width, 3, 3), jnp.float32),
        "gamma1": 1.0 + 0.1 * jax.random.normal(ks[3], (Cout * width,), jnp.float32),
        "beta1": 0.1 * jax.random.normal(ks[4], (Cout * width,), jnp.float32),
        "gamma2": 1.0 + 0.1 * jax.random.normal(ks[5], (Cout,), jnp.float32),
        "beta2": 0.1 * jax.random.normal(ks[6], (Cout,), jnp.float32),
        "alpha": jnp.array([0.25], jnp.float32),   # nn.PReLU() default init
    }
    x = jax.random.normal(ks[7], (N, Cin, H, W), jnp.float32)

    out = jax.block_until_ready(inception_block_forward(x, params))
    ref = jax.block_until_ready(reference_forward(x, params))

    assert out.shape == (N, Cout, H, W)
    assert jnp.all(jnp.isfinite(out))
    # Tolerance accounts for bf16 MXU operands / bf16 hidden storage in the
    # kernels vs the f32 reference convolutions (structural bugs => O(1) err).
    max_err = float(jnp.max(jnp.abs(out - ref)))
    assert jnp.allclose(out, ref, atol=5e-2, rtol=5e-2), max_err
    print("KERNEL_OK")
</pallas_src>

<mosaic_0001>
module attributes {stable_mosaic.version = 11 : i64} {
  func.func @kernel(%arg0: i32, %arg1: memref<1x22x22x4xbf16, #tpu.memory_space<vmem>>, %arg2: memref<2x36x4xbf16, #tpu.memory_space<vmem>>, %arg3: memref<1x16x16x8xbf16, #tpu.memory_space<vmem>>, %arg4: memref<1x2x8xf32, #tpu.memory_space<vmem>>) attributes {dimension_semantics = [#tpu.dimension_semantics<parallel>], iteration_bounds = array<i64: 2>, scalar_prefetch = 0 : i64, scratch_operands = 0 : i64, tpu.core_type = #tpu.core_type<tc>, window_params = [{transform_indices = @transform_0, window_bounds = array<i64: 1, 22, 22, 4>}, {pipeline_mode = #tpu.pipeline_mode<synchronous>, transform_indices = @transform_1, window_bounds = array<i64: 2, 36, 4>}, {transform_indices = @transform_2, window_bounds = array<i64: 1, 16, 16, 8>}, {transform_indices = @transform_3, window_bounds = array<i64: 1, 2, 8>}]} {
    %c0 = arith.constant 0 : index
    %c0_0 = arith.constant 0 : index
    %c0_1 = arith.constant 0 : index
    %c0_2 = arith.constant 0 : index
    %0 = vector.load %arg1[%c0, %c0_0, %c0_1, %c0_2] : memref<1x22x22x4xbf16, #tpu.memory_space<vmem>>, vector<1x22x22x4xbf16>
    %1 = vector.shape_cast %0 : vector<1x22x22x4xbf16> to vector<22x22x4xbf16>
    %2 = vector.extract_strided_slice %1 {offsets = [2, 2, 0], sizes = [16, 16, 4], strides = [1, 1, 1]} : vector<22x22x4xbf16> to vector<16x16x4xbf16>
    %3 = vector.shape_cast %2 : vector<16x16x4xbf16> to vector<256x4xbf16>
    %4 = vector.extract_strided_slice %1 {offsets = [2, 3, 0], sizes = [16, 16, 4], strides = [1, 1, 1]} : vector<22x22x4xbf16> to vector<16x16x4xbf16>
    %5 = vector.shape_cast %4 : vector<16x16x4xbf16> to vector<256x4xbf16>
    %6 = vector.extract_strided_slice %1 {offsets = [2, 4, 0], sizes = [16, 16, 4], strides = [1, 1, 1]} : vector<22x22x4xbf16> to vector<16x16x4xbf16>
    %7 = vector.shape_cast %6 : vector<16x16x4xbf16> to vector<256x4xbf16>
    %8 = vector.extract_strided_slice %1 {offsets = [3, 2, 0], sizes = [16, 16, 4], strides = [1, 1, 1]} : vector<22x22x4xbf16> to vector<16x16x4xbf16>
    %9 = vector.shape_cast %8 : vector<16x16x4xbf16> to vector<256x4xbf16>
    %10 = vector.extract_strided_slice %1 {offsets = [3, 3, 0], sizes = [16, 16, 4], strides = [1, 1, 1]} : vector<22x22x4xbf16> to vector<16x16x4xbf16>
    %11 = vector.shape_cast %10 : vector<16x16x4xbf16> to vector<256x4xbf16>
    %12 = vector.extract_strided_slice %1 {offsets = [3, 4, 0], sizes = [16, 16, 4], strides = [1, 1, 1]} : vector<22x22x4xbf16> to vector<16x16x4xbf16>
    %13 = vector.shape_cast %12 : vector<16x16x4xbf16> to vector<256x4xbf16>
    %14 = vector.extract_strided_slice %1 {offsets = [4, 2, 0], sizes = [16, 16, 4], strides = [1, 1, 1]} : vector<22x22x4xbf16> to vector<16x16x4xbf16>
    %15 = vector.shape_cast %14 : vector<16x16x4xbf16> to vector<256x4xbf16>
    %16 = vector.extract_strided_slice %1 {offsets = [4, 3, 0], sizes = [16, 16, 4], strides = [1, 1, 1]} : vector<22x22x4xbf16> to vector<16x16x4xbf16>
    %17 = vector.shape_cast %16 : vector<16x16x4xbf16> to vector<256x4xbf16>
    %18 = vector.extract_strided_slice %1 {offsets = [4, 4, 0], sizes = [16, 16, 4], strides = [1, 1, 1]} : vector<22x22x4xbf16> to vector<16x16x4xbf16>
    %19 = vector.shape_cast %18 : vector<16x16x4xbf16> to vector<256x4xbf16>
    %20 = tpu.concatenate %3, %5, %7, %9, %11, %13, %15, %17, %19 in 1 : vector<256x4xbf16>, vector<256x4xbf16>, vector<256x4xbf16>, vector<256x4xbf16>, vector<256x4xbf16>, vector<256x4xbf16>, vector<256x4xbf16>, vector<256x4xbf16>, vector<256x4xbf16> -> vector<256x36xbf16>
    %c0_3 = arith.constant 0 : index
    %c0_4 = arith.constant 0 : index
    %c0_5 = arith.constant 0 : index
    %21 = vector.load %arg2[%c0_3, %c0_4, %c0_5] : memref<2x36x4xbf16, #tpu.memory_space<vmem>>, vector<1x36x4xbf16>
    %22 = vector.shape_cast %21 : vector<1x36x4xbf16> to vector<36x4xbf16>
    %cst = arith.constant dense<0.000000e+00> : vector<256x4xf32>
    %23 = tpu.matmul %20, %22, %cst {dimension_numbers = #tpu.dot_dimension_numbers<[1], [0], [0], [1], [0, 0, 1, 1], [], []>} : vector<256x36xbf16>, vector<36x4xbf16>, vector<256x4xf32> -> vector<256x4xf32>
    %24 = vector.extract_strided_slice %1 {offsets = [0, 0, 0], sizes = [16, 16, 4], strides = [1, 1, 1]} : vector<22x22x4xbf16> to vector<16x16x4xbf16>
    %25 = vector.shape_cast %24 : vector<16x16x4xbf16> to vector<256x4xbf16>
    %26 = vector.extract_strided_slice %1 {offsets = [0, 3, 0], sizes = [16, 16, 4], strides = [1, 1, 1]} : vector<22x22x4xbf16> to vector<16x16x4xbf16>
    %27 = vector.shape_cast %26 : vector<16x16x4xbf16> to vector<256x4xbf16>
    %28 = vector.extract_strided_slice %1 {offsets = [0, 6, 0], sizes = [16, 16, 4], strides = [1, 1, 1]} : vector<22x22x4xbf16> to vector<16x16x4xbf16>
    %29 = vector.shape_cast %28 : vector<16x16x4xbf16> to vector<256x4xbf16>
    %30 = vector.extract_strided_slice %1 {offsets = [3, 0, 0], sizes = [16, 16, 4], strides = [1, 1, 1]} : vector<22x22x4xbf16> to vector<16x16x4xbf16>
    %31 = vector.shape_cast %30 : vector<16x16x4xbf16> to vector<256x4xbf16>
    %32 = vector.extract_strided_slice %1 {offsets = [3, 3, 0], sizes = [16, 16, 4], strides = [1, 1, 1]} : vector<22x22x4xbf16> to vector<16x16x4xbf16>
    %33 = vector.shape_cast %32 : vector<16x16x4xbf16> to vector<256x4xbf16>
    %34 = vector.extract_strided_slice %1 {offsets = [3, 6, 0], sizes = [16, 16, 4], strides = [1, 1, 1]} : vector<22x22x4xbf16> to vector<16x16x4xbf16>
    %35 = vector.shape_cast %34 : vector<16x16x4xbf16> to vector<256x4xbf16>
    %36 = vector.extract_strided_slice %1 {offsets = [6, 0, 0], sizes = [16, 16, 4], strides = [1, 1, 1]} : vector<22x22x4xbf16> to vector<16x16x4xbf16>
    %37 = vector.shape_cast %36 : vector<16x16x4xbf16> to vector<256x4xbf16>
    %38 = vector.extract_strided_slice %1 {offsets = [6, 3, 0], sizes = [16, 16, 4], strides = [1, 1, 1]} : vector<22x22x4xbf16> to vector<16x16x4xbf16>
    %39 = vector.shape_cast %38 : vector<16x16x4xbf16> to vector<256x4xbf16>
    %40 = vector.extract_strided_slice %1 {offsets = [6, 6, 0], sizes = [16, 16, 4], strides = [1, 1, 1]} : vector<22x22x4xbf16> to vector<16x16x4xbf16>
    %41 = vector.shape_cast %40 : vector<16x16x4xbf16> to vector<256x4xbf16>
    %42 = tpu.concatenate %25, %27, %29, %31, %33, %35, %37, %39, %41 in 1 : vector<256x4xbf16>, vector<256x4xbf16>, vector<256x4xbf16>, vector<256x4xbf16>, vector<256x4xbf16>, vector<256x4xbf16>, vector<256x4xbf16>, vector<256x4xbf16>, vector<256x4xbf16> -> vector<256x36xbf16>
    %c1 = arith.constant 1 : index
    %c0_6 = arith.constant 0 : index
    %c0_7 = arith.constant 0 : index
    %43 = vector.load %arg2[%c1, %c0_6, %c0_7] : memref<2x36x4xbf16, #tpu.memory_space<vmem>>, vector<1x36x4xbf16>
    %44 = vector.shape_cast %43 : vector<1x36x4xbf16> to vector<36x4xbf16>
    %cst_8 = arith.constant dense<0.000000e+00> : vector<256x4xf32>
    %45 = tpu.matmul %42, %44, %cst_8 {dimension_numbers = #tpu.dot_dimension_numbers<[1], [0], [0], [1], [0, 0, 1, 1], [], []>} : vector<256x36xbf16>, vector<36x4xbf16>, vector<256x4xf32> -> vector<256x4xf32>
    %46 = tpu.concatenate %23, %45 in 1 : vector<256x4xf32>, vector<256x4xf32> -> vector<256x8xf32>
    %cst_9 = arith.constant dense<0.000000e+00> : vector<8xf32>
    %47 = vector.multi_reduction <add>, %46, %cst_9 [0] : vector<256x8xf32> to vector<8xf32>
    %48 = vector.shape_cast %47 : vector<8xf32> to vector<1x8xf32>
    %49 = arith.mulf %46, %46 : vector<256x8xf32>
    %cst_10 = arith.constant dense<0.000000e+00> : vector<8xf32>
    %50 = vector.multi_reduction <add>, %49, %cst_10 [0] : vector<256x8xf32> to vector<8xf32>
    %51 = vector.shape_cast %50 : vector<8xf32> to vector<1x8xf32>
    %52 = tpu.concatenate %48, %51 in 0 : vector<1x8xf32>, vector<1x8xf32> -> vector<2x8xf32>
    %c0_11 = arith.constant 0 : index
    %c0_12 = arith.constant 0 : index
    %c0_13 = arith.constant 0 : index
    %53 = vector.load %arg4[%c0_11, %c0_12, %c0_13] : memref<1x2x8xf32, #tpu.memory_space<vmem>>, vector<1x2x8xf32>
    %54 = vector.shape_cast %53 : vector<1x2x8xf32> to vector<2x8xf32>
    %55 = vector.shape_cast %52 : vector<2x8xf32> to vector<1x2x8xf32>
    tpu.vector_store %arg4[%c0_11, %c0_12, %c0_13], %55 {strides = array<i32>} : memref<1x2x8xf32, #tpu.memory_space<vmem>>, vector<1x2x8xf32>,
    %56 = vector.shape_cast %46 : vector<256x8xf32> to vector<16x16x8xf32>
    %57 = arith.truncf %56 : vector<16x16x8xf32> to vector<16x16x8xbf16>
    %c0_14 = arith.constant 0 : index
    %c0_15 = arith.constant 0 : index
    %c0_16 = arith.constant 0 : index
    %c0_17 = arith.constant 0 : index
    %58 = vector.load %arg3[%c0_14, %c0_15, %c0_16, %c0_17] : memref<1x16x16x8xbf16, #tpu.memory_space<vmem>>, vector<1x16x16x8xbf16>
    %59 = vector.shape_cast %58 : vector<1x16x16x8xbf16> to vector<16x16x8xbf16>
    %60 = vector.shape_cast %57 : vector<16x16x8xbf16> to vector<1x16x16x8xbf16>
    tpu.vector_store %arg3[%c0_14, %c0_15, %c0_16, %c0_17], %60 {strides = array<i32>} : memref<1x16x16x8xbf16, #tpu.memory_space<vmem>>, vector<1x16x16x8xbf16>,
    return
  }
  func.func @transform_0(%arg0: i32) -> (i32, i32, i32, i32) {
    %c0_i32 = arith.constant 0 : i32
    %c0_i32_0 = arith.constant 0 : i32
    %c0_i32_1 = arith.constant 0 : i32
    %c0_i32_2 = arith.constant 0 : i32
    return %arg0, %c0_i32, %c0_i32_0, %c0_i32_1 : i32, i32, i32, i32
  }
  func.func @transform_1(%arg0: i32) -> (i32, i32, i32) {
    %c0_i32 = arith.constant 0 : i32
    %c0_i32_0 = arith.constant 0 : i32
    %c0_i32_1 = arith.constant 0 : i32
    %c0_i32_2 = arith.constant 0 : i32
    return %c0_i32, %c0_i32_0, %c0_i32_1 : i32, i32, i32
  }
  func.func @transform_2(%arg0: i32) -> (i32, i32, i32, i32) {
    %c0_i32 = arith.constant 0 : i32
    %c0_i32_0 = arith.constant 0 : i32
    %c0_i32_1 = arith.constant 0 : i32
    %c0_i32_2 = arith.constant 0 : i32
    return %arg0, %c0_i32, %c0_i32_0, %c0_i32_1 : i32, i32, i32, i32
  }
  func.func @transform_3(%arg0: i32) -> (i32, i32, i32) {
    %c0_i32 = arith.constant 0 : i32
    %c0_i32_0 = arith.constant 0 : i32
    %c0_i32_1 = arith.constant 0 : i32
    return %arg0, %c0_i32, %c0_i32_0 : i32, i32, i32
  }
}

</mosaic_0001>

<bundles_post_ra>
// kernel: tpu_custom_call.1
= control target key start
LH: loop header
LB: loop body
LE: loop exit
PB: predicated region body
PF: predicated region fallthrough
CT: control target
= control target key end

     0   :  { %9 = vsyncpa [#allocation3], 0  ;;  %s6945_s0 = inlined_call_operand.hbm [shape: bf16[2,22,22,4], index: 0, kind: input, shape index: {}]   ;;  %s6946_s1 = inlined_call_operand.hbm [shape: bf16[2,36,4], index: 1, kind: input, shape index: {}]   ;;  %s6947_s2 = inlined_call_operand.hbm [shape: bf16[2,16,16,8], index: 2, kind: output, shape index: {0}]   ;;  %s6948_s3 = inlined_call_operand.hbm [shape: f32[2,2,8], index: 3, kind: output, shape index: {1}]  }
   0x1   :  { %11 = vsyncpa [#allocation3 + $0x1], 0 }
   0x2   :  { %12 = vsyncpa [#allocation6], 0 }
   0x3   :  { %13 = vsyncpa [#allocation4], 0 }
   0x4   :  { %15 = vsyncpa [#allocation4 + $0x1], 0 }
   0x5   :  { %16 = vsyncpa [#allocation9], 0 }
   0x6   :  { %18 = vsyncpa [#allocation9 + $0x1], 0  ;;  %s4476_s12 = smov 0   ;;  %s4478_s13 = smov 0  }
   0x7   :  { %s4480_s14 = smov 0   ;;  %s4482_s15 = smov 0  }
   0x8 LB: > { %s4497_s16 = sadd.s32 4294967295, %s4439_s15   ;;  %s3697_s17 = sadd.s32 4294967294, %s4439_s15   ;;  %s4439_s15 = sphi %s4482_s15, %s7304_s15   ;;  %s4435_s14 = sphi %s4480_s14, %s7303_s14   ;;  %s4431_s13 = sphi %s4478_s13, %s7302_s13   ;;  %s4427_s12 = sphi %s4476_s12, %s7301_s12  }
   0x9   : > { %p44_p0 = scmp.ne.s32.totalorder %s4431_s13, %s4427_s12  ;;  %p6949_p1 = scmp.eq.s32.totalorder %s4497_s16, 0 }
   0xa   : > { %p95_p3 = scmp.eq.s32.totalorder %s3697_s17, 1  ;;  %p3698_p5 = scmp.ge.s32.totalorder %s4439_s15, 1 }
   0xb   : > { %p4506_p4 = por %p6949_p1, %p44_p0  ;;  %p128_p7 = scmp.lt.s32.totalorder %s4439_s15, 3 }
   0xc   : > { %p4511_p6 = por %p95_p3, %p44_p0  ;;  %s4441_s21 = smov [#allocation5]  }
   0xd   : > { %s7064_s18 = scalar_select %p4506_p4, 1, 0 }
   0xe   : > { %s7065_s19 = scalar_select %p4511_p6, 1, 0 }
   0xf   : > { %p4516_p8 = pnand %p3698_p5, %p128_p7  ;;  %s140_s22 = sshll.u32 %s4441_s21, 4  ;;  %s4520_s22 = int_to_ptr.vmem [resolvable:$true] %s140_s22 }
  0x10   : > { %s4532_s24 = sadd.s32 1, %s4439_s15   ;;  %s31_s25 = sadd.s32 1, %s4435_s14 }
  0x11   : > { %s7066_s20 = scalar_select %p4516_p8, 1, 0 }
  0x12   : > { %p4105_p9 = pneg %p4516_p8  ;;  %s28_s26 = ssub.s32 %s4439_s15, %s4532_s24 }
  0x13   : > { %s4279_s29 = scalar_lea.hbm %s6946_s1, 640 }
  0x14   : > { %p4527_p11 = pnand %p4105_p9, %p6949_p1  ;;  %p4280_p12 = scmp.ne.s32.totalorder %s6946_s1, %s4279_s29 }
  0x15   : > { %p4286_p5 = scmp.lt.u32.totalorder %s4279_s29, %s6946_s1 }
  0x16   : > { %p4281_p13 = pneg %p4527_p11 }
  0x18   : > { %p4282_p0 = pnand %p4281_p13, %p4280_p12 }
  0x1a   : > { %p4283_p3 = pneg %p4282_p0 }
  0x1c   : > { %p4288_p7 = pnand %p4286_p5, %p4283_p3 }
  0x1e   : > { %4291 = shalt.err (!%p4288_p7)
}
  0x1f   : > { %s4292_s7 = scalar_lea.vmem %s4520_s22, 640  ;;  %p4300_p2 = scmp.lt.s32.totalorder %s4520_s22, %s4520_s22 }
  0x20   : > { %p4293_p9 = scmp.ne.s32.totalorder %s4520_s22, %s4292_s7  ;;  %p4301_p6 = scmp.lt.s32.totalorder %s4292_s7, %s4292_s7 }
  0x22   : > { %p4295_p10 = pnand %p4293_p9, %p4281_p13  ;;  %p4302_p4 = por %p4301_p6, %p4300_p2 }
  0x24   : > { %p4296_p1 = pneg %p4295_p10 }
  0x26   : > { %p4303_p8 = pnand %p4302_p4, %p4296_p1 }
  0x28   : > { %4306 = shalt.err (!%p4303_p8)
}
  0x29   : > { %s4442_s8 = smov 64   ;;  %s4443_s9 = smov 4  }
  0x2a   : > { %4108 = dma.hbm_to_vmem [thread:$0]  (!%p4527_p11), %s6946_s1, 640, %s4520_s22, [#allocation6], %s4442_s8, %s4442_s8, %s4443_s9  }
  0x2b   : > { %p29_p1 = scmp.eq.s32.totalorder %s28_s26, 0  ;;  %p38_p2 = scmp.ne.s32.totalorder %s4435_s14, %s4431_s13 }
  0x2c   : > { %p39_p4 = scmp.eq.s32.totalorder %s4439_s15, 0  ;;  %p4121_p6 = scmp.lt.s32.totalorder %s4439_s15, 2 }
  0x2d   : > { %s4566_s17 = scalar_select %p29_p1, %s4435_s14, %s31_s25  }
  0x2e   : > { %p40_p8 = por %p39_p4, %p38_p2  ;;  %p7068_p10 = scmp.eq.s32.totalorder %s4497_s16, 1 }
  0x2f   : > { %s154_s23 = sand.u32 1, %s4435_s14   ;;  %s4093_s27 = smul.u32 4224, %s4439_s15 }
  0x30   : > { %p4570_p12 = por %p7068_p10, %p38_p2  ;;  %s4092_s28 = smul.u32 264, %s154_s23 }
  0x31   : > { %p4576_p13 = pnand %p4121_p6, %p40_p8  ;;  %s4583_s25 = scalar_lea.hbm %s6945_s0, %s4093_s27 }
  0x32   : > { %s158_s30 = scalar_lea.vmem [#allocation2], %s4092_s28  ;;  %s4587_s5 = scalar_lea.sflag [#allocation3], %s154_s23 }
  0x33   : > { %s165_s4 = sshll.u32 %s158_s30, 4  ;;  %s4307_s6 = scalar_lea.hbm %s4583_s25, 4224  ;;  %s4585_s4 = int_to_ptr.vmem [resolvable:$true] %s165_s4 }
  0x34   : > { %p4308_p11 = scmp.ne.s32.totalorder %s4583_s25, %s4307_s6  ;;  %p4309_p0 = pneg %p4576_p13 }
  0x35   : > { %s4312_s11 = scalar_lea.hbm %s6945_s0, 8448  ;;  %p4313_p7 = scmp.lt.u32.totalorder %s4583_s25, %s6945_s0 }
  0x36   : > { %p4310_p3 = pnand %p4309_p0, %p4308_p11  ;;  %p4314_p9 = scmp.lt.u32.totalorder %s4312_s11, %s4307_s6 }
  0x37   : > { %p4316_p2 = scmp.lt.u32.totalorder %s4307_s6, %s4583_s25 }
  0x38   : > { %p4311_p5 = pneg %p4310_p3  ;;  %p4315_p1 = por %p4314_p9, %p4313_p7 }
  0x3a   : > { %p4317_p4 = por %p4316_p2, %p4315_p1 }
  0x3c   : > { %p4318_p6 = pnand %p4317_p4, %p4311_p5 }
  0x3e   : > { %4321 = shalt.err (!%p4318_p6)
}
  0x3f   : > { %s4322_s23 = scalar_lea.vmem %s4585_s4, 4224  ;;  %s4444_s28 = smov [#allocation2]  }
  0x40   : > { %p4323_p8 = scmp.ne.s32.totalorder %s4585_s4, %s4322_s23  ;;  %s4327_s26 = sshll.u32 %s4444_s28, 4  ;;  %s4328_s26 = int_to_ptr.vmem [resolvable:$false] %s4327_s26 }
  0x41   : > { %s4329_s30 = scalar_lea.vmem %s4328_s26, 8448  ;;  %p4330_p3 = scmp.lt.s32.totalorder %s4585_s4, %s4328_s26 }
  0x42   : > { %p4325_p10 = pnand %p4323_p8, %p4309_p0  ;;  %p4331_p7 = scmp.lt.s32.totalorder %s4329_s30, %s4322_s23 }
  0x44   : > { %p4326_p11 = pneg %p4325_p10  ;;  %p4332_p9 = por %p4331_p7, %p4330_p3 }
  0x46   : > { %p4333_p1 = pnand %p4332_p9, %p4326_p11 }
  0x48   : > { %4336 = shalt.err (!%p4333_p1)
}
  0x49   : > { %4112 = dma.hbm_to_vmem [thread:$0]  (!%p4576_p13), %s4583_s25, 4224, %s4585_s4, %s4587_s5, %s4442_s8, %s4442_s8, %s4443_s9  }
  0x4a   : > { %p7071_p0 = scmp.ne.s32.totalorder %s7066_s20, 0 }
  0x4c   : > { %177 = sbr.rel (%p7071_p0) target bundleno = 954 (0x3ba), region = 28 }
  0x53   : > { %s4621_s6 = sand.u32 1, %s4431_s13   ;;  %p7072_p5 = scmp.ne.s32.totalorder %s7064_s18, 0 }
  0x54   : > { %s4094_s7 = smul.u32 264, %s4621_s6  ;;  %s180_s10 = scalar_lea.sflag [#allocation3], %s4621_s6 }
  0x56   : > { %s4625_s11 = scalar_lea.vmem [#allocation2], %s4094_s7 }
  0x57   : > { %4410 = dma.done.wait (%p7072_p5), %s180_s10, 4224  }
  0x58   : > { %4412 = vsyncadd (%p7072_p5), %s180_s10, 4294963072  ;;  %p7073_p13 = scmp.eq.s32.totalorder %s4497_s16, 0 }
  0x5a   : > { %4414 = dma.done.wait (%p7073_p13), [#allocation6], 640   ;;  %p7074_p2 = pmov %p7073_p13 }
  0x5b   : > { %vm445_vm0 = vsmask.f32 2304  ;;  %v4636_v0 = vld [vmem:[%s4625_s11 + $0x30] sm:$0xf]  ;;  %v4639_v1 = vld [vmem:[%s4625_s11 + $0x34] sm:$0xf] }
  0x5c   : > { %4416 = vsyncadd (%p7074_p2), [#allocation6], 4294966656  ;;  %v4642_v2 = vld [vmem:[%s4625_s11 + $0x38] sm:$0x7]  ;;  %v505_v3 = vshrl.u32 %v4636_v0, 16  ;;  %v508_v4 = vshll.u32 %v4636_v0, 16 }
  0x5d   : > { %v514_v5 = vshrl.u32 %v4639_v1, 16  ;;  %v517_v6 = vshll.u32 %v4639_v1, 16  ;;  %v4649_v7 = vld [vmem:[%s4625_s11 + $0x18] sm:$0xf]  ;;  %vm446_vm1 = vsmask.f32 6416 }
  0x5e   : > { %v524_v8 = vshrl.u32 %v4642_v2, 16  ;;  %v527_v9 = vshll.u32 %v4642_v2, 16  ;;  %v4654_v10 = vld [vmem:[%s4625_s11 + $0x1c] sm:$0xf]  ;;  %v507_v11 = vrot.slane %v505_v3, 5  ;;  %v510_v12 = vrot.slane %v508_v4, 6  ;;  %vm4668_vm2 = vmor %vm445_vm0, %vm446_vm1 }
  0x5f   : > { %v516_v13 = vrot.slane %v514_v5, 5  ;;  %v519_v14 = vrot.slane %v517_v6, 6  ;;  %v4657_v15 = vld [vmem:[%s4625_s11 + $0x20] sm:$0x7]  ;;  %v449_v18 = vshrl.u32 %v4649_v7, 16  ;;  %v452_v19 = vshll.u32 %v4649_v7, 16 }
  0x60   : > { %v526_v16 = vrot.slane %v524_v8, 5  ;;  %v529_v17 = vrot.slane %v527_v9, 6  ;;  %v511_v20 = vor.u32 %v510_v12, %v507_v11  ;;  %v458_v22 = vshrl.u32 %v4654_v10, 16  ;;  %v4664_v24 = vld [vmem:[%s4625_s11 + $0x3c] sm:$0xf]  ;;  %s4445_s18 = smov 4  }
  0x61   : > { %v520_v21 = vor.u32 %v519_v14, %v516_v13  ;;  %v461_v23 = vshll.u32 %v4654_v10, 16  ;;  %v451_v27 = vrot.slane %v449_v18, 5  ;;  %v454_v28 = vrot.slane %v452_v19, 6  ;;  %v4675_v37 = vld [vmem:[%s4625_s11 + $0x40] sm:$0xf]  ;;  %s4446_s20 = smov 8  }
  0x62   : > { %v530_v26 = vor.u32 %v529_v17, %v526_v16  ;;  %v468_v29 = vshrl.u32 %v4657_v15, 16  ;;  %v512_v30 = vrot.slane %v511_v20, 4  ;;  %v460_v32 = vrot.slane %v458_v22, 5  ;;  %v4683_v42 = vld [vmem:[%s4625_s11 + $0x44] sm:$0x7]  ;;  %s4447_s8 = smov 12  }
  0x63   : > { %v522_v31 = vrot.slane %v520_v21, 4  ;;  %v463_v33 = vrot.slane %v461_v23, 6  ;;  %v455_v34 = vor.u32 %v454_v28, %v451_v27  ;;  %v471_v36 = vshll.u32 %v4657_v15, 16  ;;  %v4689_v48 = vld [vmem:[%s4625_s11 + $0x24] sm:$0xf]  ;;  %s4448_s9 = smov 16  }
  0x64   : > { %v470_v35 = vrot.slane %v468_v29, 5  ;;  %v533_v38 = vshrl.u32 %v4664_v24, 16  ;;  %v521_v39 = vsel %vm4668_vm2, %v512_v30, %v520_v21  ;;  %v536_v43 = vshll.u32 %v4664_v24, 16  ;;  %7078 = vst [vmem:[#allocation15_spill] sm:$0xff] %v4689_v48  ;;  %v4700_v60 = vld [vmem:[%s4625_s11 + $0x28] sm:$0xf] }
  0x65   : > { %v531_v40 = vsel %vm4668_vm2, %v522_v31, %v530_v26  ;;  %v464_v41 = vor.u32 %v463_v33, %v460_v32  ;;  %v456_v45 = vrot.slane %v455_v34, 4  ;;  %v473_v46 = vrot.slane %v471_v36, 6  ;;  %v4706_v4 = vld [vmem:[%s4625_s11 + $0x2c] sm:$0x7]  ;;  %v4710_v12 = vld [vmem:[%s4625_s11 + $0x54] sm:$0xf] }
  0x66   : > { %v4686_v44 = vcombine.low %v521_v39, %v531_v40  ;;  %v535_v47 = vrot.slane %v533_v38, 5  ;;  %v538_v50 = vrot.slane %v536_v43, 6  ;;  %v542_v51 = vshrl.u32 %v4675_v37, 16  ;;  %v4720_v27 = vld [vmem:[%s4625_s11 + $0x58] sm:$0xf]  ;;  %s4449_s29 = smov 20  }
  0x67   : > { %v466_v49 = vrot.slane %v464_v41, 4  ;;  %v545_v52 = vshll.u32 %v4675_v37, 16  ;;  %v465_v53 = vsel %vm4668_vm2, %v456_v45, %v464_v41  ;;  %v474_v54 = vor.u32 %v473_v46, %v470_v35  ;;  %v4726_v32 = vld [vmem:[%s4625_s11 + $0x5c] sm:$0x7]  ;;  %v4732_v39 = vld [vmem:[%s4625_s11 + $0x48] sm:$0xf] }
  0x68   : > { %7077 = vst [vmem:[#allocation14_spill] sm:$0xff] %v4686_v44  ;;  %1201 = vrot.lane.b32.xlu1 %v4686_v44, %s4445_s18  ;;  %v552_v55 = vshrl.u32 %v4683_v42, 16  ;;  %v555_v56 = vshll.u32 %v4683_v42, 16  ;;  %v539_v57 = vor.u32 %v538_v50, %v535_v47  ;;  %v544_v58 = vrot.slane %v542_v51, 5  ;;  %s4450_s25 = smov 28   ;;  %s4451_s4 = smov 24  }
  0x69   : > { %v547_v59 = vrot.slane %v545_v52, 6  ;;  %v477_v61 = vshrl.u32 %v4689_v48, 16  ;;  %v475_v62 = vsel %vm4668_vm2, %v466_v49, %v474_v54  ;;  %v480_v5 = vshll.u32 %v4689_v48, 16  ;;  %v4743_v54 = vld [vmem:[%s4625_s11 + $0x4c] sm:$0xf]  ;;  %s4452_s5 = smov 32  }
  0x6a   : > { %v554_v63 = vrot.slane %v552_v55, 5  ;;  %v557_v3 = vrot.slane %v555_v56, 6  ;;  %v3758_v6 = vcombine.low %v465_v53, %v475_v62  ;;  %v540_v8 = vrot.slane %v539_v57, 4  ;;  %s3704_s27 = sshll.u32 %s4621_s6, 7  ;;  %s3975_s23 = sshll.u32 %s4497_s16, 11 }
  0x6b   : > { %v548_v9 = vor.u32 %v547_v59, %v544_v58  ;;  %v479_v11 = vrot.slane %v477_v61, 5  ;;  %v482_v14 = vrot.slane %v480_v5, 6  ;;  %v486_v16 = vshrl.u32 %v4700_v60, 16  ;;  %v4749_v59 = vld [vmem:[%s4625_s11 + $0x50] sm:$0x7]  ;;  %s6702_s22 = scalar_lea.vmem [#allocation7], %s3704_s27  ;;  %s6859_s7 = scalar_lea.hbm %s6947_s2, %s3975_s23 }
  0x6c   : > { %v558_v13 = vor.u32 %v557_v3, %v554_v63  ;;  %v489_v17 = vshll.u32 %v4700_v60, 16  ;;  %1197 = vrot.lane.b32.xlu0 %v3758_v6, %s4445_s18  ;;  %v496_v20 = vshrl.u32 %v4706_v4, 16  ;;  %v499_v21 = vshll.u32 %v4706_v4, 16  ;;  %v4755_v6 = vld [vmem:[%s4625_s11 + $0x6c] sm:$0xf]  ;;  %s3569_s28 = sshll.u32 %s6702_s22, 4  ;;  %s6865_s28 = int_to_ptr.vmem [resolvable:$true] %s3569_s28 }
  0x6d   : > { %v549_v18 = vsel %vm4668_vm2, %v540_v8, %v548_v9  ;;  %v550_v19 = vrot.slane %v548_v9, 4  ;;  %v483_v22 = vor.u32 %v482_v14, %v479_v11  ;;  %v488_v23 = vrot.slane %v486_v16, 5  ;;  %s3551_s10 = scalar_lea.sflag [#allocation4], %s4621_s6 }
  0x6e   : > { %v491_v26 = vrot.slane %v489_v17, 6  ;;  %v589_v28 = vshrl.u32 %v4710_v12, 16  ;;  %v498_v30 = vrot.slane %v496_v20, 5  ;;  %v501_v31 = vrot.slane %v499_v21, 6 }
  0x6f   : > { %v559_v29 = vsel %vm4668_vm2, %v550_v19, %v558_v13  ;;  %v592_v33 = vshll.u32 %v4710_v12, 16  ;;  %v484_v35 = vrot.slane %v483_v22, 4  ;;  %v598_v43 = vshrl.u32 %v4720_v27, 16  ;;  %v4766_v22 = vld [vmem:[%s4625_s11 + $0x70] sm:$0xf] }
  0x70   : > { %v4729_v34 = vcombine.low %v549_v18, %v559_v29  ;;  %v492_v36 = vor.u32 %v491_v26, %v488_v23  ;;  %v591_v38 = vrot.slane %v589_v28, 5  ;;  %v502_v40 = vor.u32 %v501_v31, %v498_v30  ;;  %v4772_v30 = vld [vmem:[%s4625_s11 + $0x74] sm:$0x7] }
  0x71   : > { %v594_v41 = vrot.slane %v592_v33, 6  ;;  %v601_v45 = vshll.u32 %v4720_v27, 16  ;;  %v608_v49 = vshrl.u32 %v4726_v32, 16  ;;  %v611_v50 = vshll.u32 %v4726_v32, 16 }
  0x72   : > { %7079 = vst [vmem:[#allocation16_spill] sm:$0xff] %v4729_v34  ;;  %1203 = vrot.lane.b32.xlu1 %v4729_v34, %s4445_s18  ;;  %v493_v46 = vsel %vm4668_vm2, %v484_v35, %v492_v36  ;;  %v494_v47 = vrot.slane %v492_v36, 4  ;;  %v600_v52 = vrot.slane %v598_v43, 5  ;;  %v561_v55 = vshrl.u32 %v4732_v39, 16 }
  0x73   : > { %v595_v51 = vor.u32 %v594_v41, %v591_v38  ;;  %v603_v53 = vrot.slane %v601_v45, 6  ;;  %v610_v57 = vrot.slane %v608_v49, 5  ;;  %v613_v58 = vrot.slane %v611_v50, 6 }
  0x74   : > { %v503_v56 = vsel %vm4668_vm2, %v494_v47, %v502_v40  ;;  %v564_v61 = vshll.u32 %v4732_v39, 16  ;;  %v563_v5 = vrot.slane %v561_v55, 5  ;;  %v570_v11 = vshrl.u32 %v4743_v54, 16  ;;  %v4778_v40 = vld [vmem:[%s4625_s11 + $0x60] sm:$0xf] }
  0x75   : > { %v4752_v62 = vcombine.low %v493_v46, %v503_v56  ;;  %v596_v63 = vrot.slane %v595_v51, 4  ;;  %v604_v3 = vor.u32 %v603_v53, %v600_v52  ;;  %v614_v8 = vor.u32 %v613_v58, %v610_v57  ;;  %v4789_v56 = vld [vmem:[%s4625_s11 + $0x64] sm:$0xf] }
  0x76   : > { %v566_v9 = vrot.slane %v564_v61, 6  ;;  %v573_v13 = vshll.u32 %v4743_v54, 16  ;;  %v580_v17 = vshrl.u32 %v4749_v59, 16  ;;  %v583_v18 = vshll.u32 %v4749_v59, 16 }
  0x77   : > { %7080 = vst [vmem:[#allocation17_spill] sm:$0xff] %v4752_v62  ;;  %1199 = vrot.lane.b32.xlu0 %v4752_v62, %s4445_s18  ;;  %v605_v14 = vsel %vm4668_vm2, %v596_v63, %v604_v3  ;;  %v606_v16 = vrot.slane %v604_v3, 4  ;;  %v572_v20 = vrot.slane %v570_v11, 5  ;;  %v645_v23 = vshrl.u32 %v4755_v6, 16  ;;  %v4795_v3 = vld [vmem:[%s4625_s11 + $0x68] sm:$0x7] }
  0x78   : > { %v567_v19 = vor.u32 %v566_v9, %v563_v5  ;;  %v575_v21 = vrot.slane %v573_v13, 6  ;;  %v582_v28 = vrot.slane %v580_v17, 5  ;;  %v585_v29 = vrot.slane %v583_v18, 6 }
  0x79   : > { %v615_v26 = vsel %vm4668_vm2, %v606_v16, %v614_v8  ;;  %v648_v31 = vshll.u32 %v4755_v6, 16  ;;  %v647_v38 = vrot.slane %v645_v23, 5  ;;  %v654_v45 = vshrl.u32 %v4766_v22, 16 }
  0x7a   : > { %v4775_v33 = vcombine.low %v605_v14, %v615_v26  ;;  %v568_v35 = vrot.slane %v567_v19, 4  ;;  %v576_v36 = vor.u32 %v575_v21, %v572_v20  ;;  %v586_v41 = vor.u32 %v585_v29, %v582_v28  ;;  %v4801_v14 = vld [vmem:[%s4625_s11 + $0x84] sm:$0xf] }
  0x7b   : > { %v650_v43 = vrot.slane %v648_v31, 6  ;;  %v657_v46 = vshll.u32 %v4766_v22, 16  ;;  %v664_v50 = vshrl.u32 %v4772_v30, 16  ;;  %v667_v51 = vshll.u32 %v4772_v30, 16 }
  0x7c   : > { %7081 = vst [vmem:[#allocation18_spill] sm:$0xff] %v4775_v33  ;;  %1207 = vrot.lane.b32.xlu1 %v4775_v33, %s4445_s18  ;;  %v577_v47 = vsel %vm4668_vm2, %v568_v35, %v576_v36  ;;  %v578_v49 = vrot.slane %v576_v36, 4  ;;  %v656_v53 = vrot.slane %v654_v45, 5  ;;  %v617_v57 = vshrl.u32 %v4778_v40, 16  ;;  %v4812_v35 = vld [vmem:[%s4625_s11 + $0x88] sm:$0xf] }
  0x7d   : > { %v651_v52 = vor.u32 %v650_v43, %v647_v38  ;;  %v659_v55 = vrot.slane %v657_v46, 6  ;;  %v666_v61 = vrot.slane %v664_v50, 5  ;;  %v669_v63 = vrot.slane %v667_v51, 6  ;;  %v4818_v45 = vld [vmem:[%s4625_s11 + $0x8c] sm:$0x7] }
  0x7e   : > { %v587_v58 = vsel %vm4668_vm2, %v578_v49, %v586_v41  ;;  %v620_v5 = vshll.u32 %v4778_v40, 16  ;;  %v619_v13 = vrot.slane %v617_v57, 5  ;;  %v626_v18 = vshrl.u32 %v4789_v56, 16 }
  0x7f   : > { %v4798_v8 = vcombine.low %v577_v47, %v587_v58  ;;  %v652_v9 = vrot.slane %v651_v52, 4  ;;  %v660_v11 = vor.u32 %v659_v55, %v656_v53  ;;  %v670_v16 = vor.u32 %v669_v63, %v666_v61  ;;  %v4824_v52 = vld [vmem:[%s4625_s11 + $0x78] sm:$0xf]  ;;  %v4829_v61 = vld [vmem:[%s4625_s11 + $0x7c] sm:$0xf] }
  0x80   : > { %v622_v17 = vrot.slane %v620_v5, 6  ;;  %v629_v19 = vshll.u32 %v4789_v56, 16  ;;  %v636_v23 = vshrl.u32 %v4795_v3, 16  ;;  %v639_v26 = vshll.u32 %v4795_v3, 16 }
  0x81   : > { %7082 = vst [vmem:[#allocation19_spill] sm:$0xff] %v4798_v8  ;;  %1205 = vrot.lane.b32.xlu0 %v4798_v8, %s4445_s18  ;;  %v661_v20 = vsel %vm4668_vm2, %v652_v9, %v660_v11  ;;  %v662_v21 = vrot.slane %v660_v11, 4  ;;  %v628_v29 = vrot.slane %v626_v18, 5  ;;  %v701_v36 = vshrl.u32 %v4801_v14, 16 }
  0x82   : > { %v623_v28 = vor.u32 %v622_v17, %v619_v13  ;;  %v631_v31 = vrot.slane %v629_v19, 6  ;;  %v638_v41 = vrot.slane %v636_v23, 5  ;;  %v641_v43 = vrot.slane %v639_v26, 6  ;;  %v4838_v13 = vld [vmem:[%s4625_s11 + $0x80] sm:$0x7] }
  0x83   : > { %v671_v38 = vsel %vm4668_vm2, %v662_v21, %v670_v16  ;;  %v704_v46 = vshll.u32 %v4801_v14, 16  ;;  %v703_v51 = vrot.slane %v701_v36, 5  ;;  %v710_v57 = vshrl.u32 %v4812_v35, 16 }
  0x84   : > { %v4821_v47 = vcombine.low %v661_v20, %v671_v38  ;;  %v624_v49 = vrot.slane %v623_v28, 4  ;;  %v632_v50 = vor.u32 %v631_v31, %v628_v29  ;;  %v642_v53 = vor.u32 %v641_v43, %v638_v41  ;;  %v4842_v20 = vld [vmem:[%s4625_s11 + $0x9c] sm:$0xf] }
  0x85   : > { %v706_v55 = vrot.slane %v704_v46, 6  ;;  %v713_v58 = vshll.u32 %v4812_v35, 16  ;;  %v720_v9 = vshrl.u32 %v4818_v45, 16  ;;  %v723_v11 = vshll.u32 %v4818_v45, 16 }
  0x86   : > { %7083 = vst [vmem:[#allocation20_spill] sm:$0xff] %v4821_v47  ;;  %1211 = vrot.lane.b32.xlu1 %v4821_v47, %s4445_s18  ;;  %v633_v63 = vsel %vm4668_vm2, %v624_v49, %v632_v50  ;;  %v634_v5 = vrot.slane %v632_v50, 4  ;;  %v712_v17 = vrot.slane %v710_v57, 5  ;;  %v673_v19 = vshrl.u32 %v4824_v52, 16  ;;  %v4852_v50 = vld [vmem:[%s4625_s11 + $0xa0] sm:$0xf] }
  0x87   : > { %v707_v16 = vor.u32 %v706_v55, %v703_v51  ;;  %v715_v18 = vrot.slane %v713_v58, 6  ;;  %v722_v23 = vrot.slane %v720_v9, 5  ;;  %v725_v26 = vrot.slane %v723_v11, 6  ;;  %v4861_v58 = vld [vmem:[%s4625_s11 + $0xa4] sm:$0x7] }
  0x88   : > { %v643_v21 = vsel %vm4668_vm2, %v634_v5, %v642_v53  ;;  %v676_v28 = vshll.u32 %v4824_v52, 16  ;;  %v675_v38 = vrot.slane %v673_v19, 5  ;;  %v682_v46 = vshrl.u32 %v4829_v61, 16 }
  0x89   : > { %v4847_v29 = vcombine.low %v633_v63, %v643_v21  ;;  %v708_v31 = vrot.slane %v707_v16, 4  ;;  %v716_v36 = vor.u32 %v715_v18, %v712_v17  ;;  %v726_v41 = vor.u32 %v725_v26, %v722_v23 }
  0x8a   : > { %v678_v43 = vrot.slane %v676_v28, 6  ;;  %v685_v49 = vshll.u32 %v4829_v61, 16  ;;  %v692_v55 = vshrl.u32 %v4838_v13, 16  ;;  %v695_v57 = vshll.u32 %v4838_v13, 16 }
  0x8b   : > { %7084 = vst [vmem:[#allocation21_spill] sm:$0xff] %v4847_v29  ;;  %1209 = vrot.lane.b32.xlu0 %v4847_v29, %s4445_s18  ;;  %v717_v51 = vsel %vm4668_vm2, %v708_v31, %v716_v36  ;;  %v718_v53 = vrot.slane %v716_v36, 4  ;;  %v684_v5 = vrot.slane %v682_v46, 5  ;;  %v757_v11 = vshrl.u32 %v4842_v20, 16  ;;  %v4870_v31 = vld [vmem:[%s4625_s11 + $0x90] sm:$0xf] }
  0x8c   : > { %v679_v63 = vor.u32 %v678_v43, %v675_v38  ;;  %v687_v9 = vrot.slane %v685_v49, 6  ;;  %v694_v17 = vrot.slane %v692_v55, 5  ;;  %v697_v18 = vrot.slane %v695_v57, 6 }
  0x8d   : > { %v727_v16 = vsel %vm4668_vm2, %v718_v53, %v726_v41  ;;  %v760_v19 = vshll.u32 %v4842_v20, 16  ;;  %v759_v28 = vrot.slane %v757_v11, 5  ;;  %v766_v43 = vshrl.u32 %v4852_v50, 16 }
  0x8e   : > { %v4867_v21 = vcombine.low %v717_v51, %v727_v16  ;;  %v680_v23 = vrot.slane %v679_v63, 4  ;;  %v688_v26 = vor.u32 %v687_v9, %v684_v5  ;;  %v698_v36 = vor.u32 %v697_v18, %v694_v17  ;;  %v4881_v5 = vld [vmem:[%s4625_s11 + $0x94] sm:$0xf]  ;;  %v4887_v18 = vld [vmem:[%s4625_s11 + $0x98] sm:$0x7] }
  0x8f   : > { %v762_v38 = vrot.slane %v760_v19, 6  ;;  %v769_v46 = vshll.u32 %v4852_v50, 16  ;;  %v776_v51 = vshrl.u32 %v4861_v58, 16  ;;  %v779_v53 = vshll.u32 %v4861_v58, 16 }
  0x90   : > { %7085 = vst [vmem:[#allocation22_spill] sm:$0xff] %v4867_v21  ;;  %1215 = vrot.lane.b32.xlu1 %v4867_v21, %s4445_s18  ;;  %v689_v41 = vsel %vm4668_vm2, %v680_v23, %v688_v26  ;;  %v690_v49 = vrot.slane %v688_v26, 4  ;;  %v768_v57 = vrot.slane %v766_v43, 5  ;;  %v729_v9 = vshrl.u32 %v4870_v31, 16  ;;  %v4893_v43 = vld [vmem:[%s4625_s11 + $0xb4] sm:$0xf] }
  0x91   : > { %v763_v55 = vor.u32 %v762_v38, %v759_v28  ;;  %v771_v63 = vrot.slane %v769_v46, 6  ;;  %v778_v16 = vrot.slane %v776_v51, 5  ;;  %v781_v17 = vrot.slane %v779_v53, 6 }
  0x92   : > { %v699_v11 = vsel %vm4668_vm2, %v690_v49, %v698_v36  ;;  %v732_v19 = vshll.u32 %v4870_v31, 16  ;;  %v731_v38 = vrot.slane %v729_v9, 5  ;;  %v738_v47 = vshrl.u32 %v4881_v5, 16  ;;  %v4904_v9 = vld [vmem:[%s4625_s11 + $0xb8] sm:$0xf] }
  0x93   : > { %v4890_v23 = vcombine.low %v689_v41, %v699_v11  ;;  %v764_v26 = vrot.slane %v763_v55, 4  ;;  %v772_v28 = vor.u32 %v771_v63, %v768_v57  ;;  %v782_v46 = vor.u32 %v781_v17, %v778_v16 }
  0x94   : > { %v734_v21 = vrot.slane %v732_v19, 6  ;;  %v741_v36 = vshll.u32 %v4881_v5, 16  ;;  %v748_v51 = vshrl.u32 %v4887_v18, 16  ;;  %v751_v53 = vshll.u32 %v4887_v18, 16 }
  0x95   : > { %7086 = vst [vmem:[#allocation23_spill] sm:$0xff] %v4890_v23  ;;  %1213 = vrot.lane.b32.xlu0 %v4890_v23, %s4445_s18  ;;  %v773_v41 = vsel %vm4668_vm2, %v764_v26, %v772_v28  ;;  %v774_v49 = vrot.slane %v772_v28, 4  ;;  %v740_v57 = vrot.slane %v738_v47, 5  ;;  %v813_v11 = vshrl.u32 %v4893_v43, 16  ;;  %v4910_v23 = vld [vmem:[%s4625_s11 + $0xbc] sm:$0x7] }
  0x96   : > { %v735_v55 = vor.u32 %v734_v21, %v731_v38  ;;  %v743_v63 = vrot.slane %v741_v36, 6  ;;  %v750_v17 = vrot.slane %v748_v51, 5  ;;  %v753_v19 = vrot.slane %v751_v53, 6  ;;  %v4916_v38 = vld [vmem:[%s4625_s11 + $0xa8] sm:$0xf] }
  0x97   : > { %v783_v16 = vsel %vm4668_vm2, %v774_v49, %v782_v46  ;;  %v816_v26 = vshll.u32 %v4893_v43, 16  ;;  %v815_v47 = vrot.slane %v813_v11, 5  ;;  %7088 = vst [vmem:[#allocation25_spill] sm:$0xff] %v4916_v38  ;;  %v822_v33 = vshrl.u32 %v4904_v9, 16  ;;  %v4927_v11 = vld [vmem:[%s4625_s11 + $0xac] sm:$0xf] }
  0x98   : > { %v4913_v28 = vcombine.low %v773_v41, %v783_v16  ;;  %v736_v29 = vrot.slane %v735_v55, 4  ;;  %v744_v21 = vor.u32 %v743_v63, %v740_v57  ;;  %v754_v36 = vor.u32 %v753_v19, %v750_v17  ;;  %7089 = vst [vmem:[#allocation26_spill] sm:$0xff] %v4927_v11 }
  0x99   : > { %v818_v34 = vrot.slane %v816_v26, 6  ;;  %v825_v46 = vshll.u32 %v4904_v9, 16  ;;  %v832_v51 = vshrl.u32 %v4910_v23, 16  ;;  %v835_v53 = vshll.u32 %v4910_v23, 16 }
  0x9a   : > { %7087 = vst [vmem:[#allocation24_spill] sm:$0xff] %v4913_v28  ;;  %1219 = vrot.lane.b32.xlu1 %v4913_v28, %s4445_s18  ;;  %v745_v41 = vsel %vm4668_vm2, %v736_v29, %v744_v21  ;;  %v746_v49 = vrot.slane %v744_v21, 4  ;;  %v824_v57 = vrot.slane %v822_v33, 5  ;;  %v785_v16 = vshrl.u32 %v4916_v38, 16  ;;  %v4933_v28 = vld [vmem:[%s4625_s11 + $0xb0] sm:$0x7] }
  0x9b   : > { %v819_v55 = vor.u32 %v818_v34, %v815_v47  ;;  %v827_v63 = vrot.slane %v825_v46, 6  ;;  %v834_v19 = vrot.slane %v832_v51, 5  ;;  %v837_v26 = vrot.slane %v835_v53, 6  ;;  %7090 = vst [vmem:[#allocation27_spill] sm:$0xff] %v4933_v28  ;;  %v4939_v33 = vld [vmem:[%s4625_s11 + $0xcc] sm:$0xf] }
  0x9c   : > { %v755_v17 = vsel %vm4668_vm2, %v746_v49, %v754_v36  ;;  %v788_v29 = vshll.u32 %v4916_v38, 16  ;;  %v787_v34 = vrot.slane %v785_v16, 5  ;;  %7092 = vst [vmem:[#allocation29_spill] sm:$0xff] %v4939_v33  ;;  %v794_v62 = vshrl.u32 %v4927_v11, 16  ;;  %v4950_v16 = vld [vmem:[%s4625_s11 + $0xd0] sm:$0xf] }
  0x9d   : > { %v4936_v21 = vcombine.low %v745_v41, %v755_v17  ;;  %v820_v8 = vrot.slane %v819_v55, 4  ;;  %v828_v44 = vor.u32 %v827_v63, %v824_v57  ;;  %v838_v47 = vor.u32 %v837_v26, %v834_v19  ;;  %7093 = vst [vmem:[#allocation30_spill] sm:$0xff] %v4950_v16 }
  0x9e   : > { %v790_v46 = vrot.slane %v788_v29, 6  ;;  %v797_v36 = vshll.u32 %v4927_v11, 16  ;;  %v804_v51 = vshrl.u32 %v4933_v28, 16  ;;  %v807_v53 = vshll.u32 %v4933_v28, 16 }
  0x9f   : > { %7091 = vst [vmem:[#allocation28_spill] sm:$0xff] %v4936_v21  ;;  %1217 = vrot.lane.b32.xlu0 %v4936_v21, %s4445_s18  ;;  %v829_v41 = vsel %vm4668_vm2, %v820_v8, %v828_v44  ;;  %v830_v49 = vrot.slane %v828_v44, 4  ;;  %vm896_vm3 = vcmask 1041408   ;;  %vm897_vm4 = vcmask 1045508   ;;  %v4956_v44 = vld [vmem:[%s4625_s11 + $0xd4] sm:$0x7] }
  0xa0   : > { %v791_v55 = vor.u32 %v790_v46, %v787_v34  ;;  %v796_v57 = vrot.slane %v794_v62, 5  ;;  %v799_v63 = vrot.slane %v797_v36, 6  ;;  %v869_v17 = vshrl.u32 %v4939_v33, 16  ;;  %7094 = vst [vmem:[#allocation31_spill] sm:$0xff] %v4956_v44  ;;  %v4962_v46 = vld [vmem:[%s4625_s11 + $0xc0] sm:$0xf]  ;;  %vm4994_vm5 = vmor %vm896_vm3, %vm897_vm4 }
  0xa1   : > { %v839_v19 = vsel %vm4668_vm2, %v830_v49, %v838_v47  ;;  %v806_v26 = vrot.slane %v804_v51, 5  ;;  %v809_v8 = vrot.slane %v807_v53, 6  ;;  %v872_v29 = vshll.u32 %v4939_v33, 16 }
  0xa2   : > { %v4959_v21 = vcombine.low %v829_v41, %v839_v19  ;;  %v792_v28 = vrot.slane %v791_v55, 4  ;;  %v800_v34 = vor.u32 %v799_v63, %v796_v57  ;;  %v871_v62 = vrot.slane %v869_v17, 5  ;;  %v4973_v17 = vld [vmem:[%s4625_s11 + $0xc4] sm:$0xf] }
  0xa3   : > { %v810_v36 = vor.u32 %v809_v8, %v806_v26  ;;  %v874_v11 = vrot.slane %v872_v29, 6  ;;  %v878_v38 = vshrl.u32 %v4950_v16, 16  ;;  %v881_v47 = vshll.u32 %v4950_v16, 16 }
  0xa4   : > { %7095 = vst [vmem:[#allocation32_spill] sm:$0xff] %v4959_v21  ;;  %1223 = vrot.lane.b32.xlu1 %v4959_v21, %s4445_s18  ;;  %v801_v41 = vsel %vm4668_vm2, %v792_v28, %v800_v34  ;;  %v802_v49 = vrot.slane %v800_v34, 4  ;;  %v888_v51 = vshrl.u32 %v4956_v44, 16  ;;  %v891_v53 = vshll.u32 %v4956_v44, 16  ;;  %v4979_v21 = vld [vmem:[%s4625_s11 + $0xc8] sm:$0x7] }
  0xa5   : > { %v875_v55 = vor.u32 %v874_v11, %v871_v62  ;;  %v880_v57 = vrot.slane %v878_v38, 5  ;;  %v883_v63 = vrot.slane %v881_v47, 6  ;;  %v841_v19 = vshrl.u32 %v4962_v46, 16 }
  0xa6   : > { %v811_v26 = vsel %vm4668_vm2, %v802_v49, %v810_v36  ;;  %v890_v8 = vrot.slane %v888_v51, 5  ;;  %v893_v29 = vrot.slane %v891_v53, 6  ;;  %v844_v28 = vshll.u32 %v4962_v46, 16 }
  0xa7   : > { %v4982_v34 = vcombine.low %v801_v41, %v811_v26  ;;  %v876_v16 = vrot.slane %v875_v55, 4  ;;  %v884_v44 = vor.u32 %v883_v63, %v880_v57  ;;  %v843_v11 = vrot.slane %v841_v19, 5 }
  0xa8   : > { %v894_v38 = vor.u32 %v893_v29, %v890_v8  ;;  %v846_v62 = vrot.slane %v844_v28, 6  ;;  %v850_v47 = vshrl.u32 %v4973_v17, 16  ;;  %v853_v33 = vshll.u32 %v4973_v17, 16 }
  0xa9   : > { %7096 = vst [vmem:[#allocation33_spill] sm:$0xff] %v4982_v34  ;;  %1221 = vrot.lane.b32.xlu0 %v4982_v34, %s4445_s18  ;;  %v885_v36 = vsel %vm4668_vm2, %v876_v16, %v884_v44  ;;  %v886_v49 = vrot.slane %v884_v44, 4  ;;  %v860_v51 = vshrl.u32 %v4979_v21, 16  ;;  %v863_v41 = vshll.u32 %v4979_v21, 16 }
  0xaa   : > { %v847_v53 = vor.u32 %v846_v62, %v843_v11  ;;  %v852_v55 = vrot.slane %v850_v47, 5  ;;  %v855_v57 = vrot.slane %v853_v33, 6  ;;  %v7097_v63 = vmov 0 }
  0xab   : > { %v7098_v63 = vsel %vm4994_vm5, 4294967295, %v7097_v63  ;;  %v3723_v19 = vrot.slane %v4689_v48, 10  ;;  %v895_v26 = vsel %vm4668_vm2, %v886_v49, %v894_v38  ;;  %v862_v16 = vrot.slane %v860_v51, 5 }
  0xac   : > { %7099 = vst [vmem:[#allocation34_spill] sm:$0xff] %v7098_v63  ;;  %v865_v44 = vrot.slane %v863_v41, 6  ;;  %v908_v8 = vrot.slane %v4700_v60, 6  ;;  %v5002_v29 = vcombine.low %v885_v36, %v895_v26  ;;  %v848_v28 = vrot.slane %v847_v53, 4 }
  0xad   : > { %v856_v11 = vor.u32 %v855_v57, %v852_v55  ;;  %v911_v33 = vrot.slane %v4706_v4, 6  ;;  %v3722_v48 = vrot.slane %v4649_v7, 10  ;;  %v901_v36 = vrot.slane %v4654_v10, 6 }
  0xae   : > { %v866_v62 = vor.u32 %v865_v44, %v862_v16  ;;  %v909_v47 = vsel %vm4994_vm5, %v3723_v19, %v908_v8  ;;  %v910_v34 = vrot.slane %v908_v8, 4  ;;  %1227 = vrot.lane.b32.xlu1 %v5002_v29, %s4445_s18  ;;  %v904_v51 = vrot.slane %v4657_v15, 6 }
  0xaf   : > { %v857_v38 = vsel %vm4668_vm2, %v848_v28, %v856_v11  ;;  %v858_v49 = vrot.slane %v856_v11, 4  ;;  %v3725_v53 = vrot.slane %v4664_v24, 10  ;;  %v922_v55 = vrot.slane %v4675_v37, 6 }
  0xb0   : > { %v912_v41 = vsel %vm4994_vm5, %v910_v34, %v911_v33  ;;  %v925_v7 = vrot.slane %v4683_v42, 6  ;;  %v902_v26 = vsel %vm4994_vm5, %v3722_v48, %v901_v36  ;;  %v903_v10 = vrot.slane %v901_v36, 4 }
  0xb1   : > { %v867_v57 = vsel %vm4668_vm2, %v858_v49, %v866_v62  ;;  %v5021_v19 = vcombine.low %v909_v47, %v912_v41  ;;  %v923_v15 = vsel %vm4994_vm5, %v3725_v53, %v922_v55  ;;  %v924_v34 = vrot.slane %v922_v55, 4 }
  0xb2   : > { %v5025_v16 = vcombine.low %v857_v38, %v867_v57  ;;  %v3724_v24 = vrot.slane %v4636_v0, 10  ;;  %v905_v37 = vsel %vm4994_vm5, %v903_v10, %v904_v51  ;;  %v915_v42 = vrot.slane %v4639_v1, 6 }
  0xb3   : > { %1279 = vrot.lane.b32.xlu1 %v5021_v19, %s4446_s20  ;;  %v918_v48 = vrot.slane %v4642_v2, 6  ;;  %v3727_v44 = vrot.slane %v4710_v12, 10  ;;  %v3774_v8 = vcombine.low %v902_v26, %v905_v37  ;;  %v926_v0 = vsel %vm4994_vm5, %v924_v34, %v925_v7 }
  0xb4   : > { %1225 = vrot.lane.b32.xlu0 %v5025_v16, %s4445_s18  ;;  %v936_v28 = vrot.slane %v4720_v27, 6  ;;  %v939_v11 = vrot.slane %v4726_v32, 6  ;;  %v5043_v33 = vcombine.low %v923_v15, %v926_v0  ;;  %v916_v1 = vsel %vm4994_vm5, %v3724_v24, %v915_v42 }
  0xb5   : > { %v917_v62 = vrot.slane %v915_v42, 4  ;;  %v3726_v2 = vrot.slane %v4732_v39, 10  ;;  %v929_v38 = vrot.slane %v4743_v54, 6  ;;  %v932_v49 = vrot.slane %v4749_v59, 6 }
  0xb6   : > { %7100 = vst [vmem:[#allocation35_spill] sm:$0xff] %v5043_v33  ;;  %v937_v12 = vsel %vm4994_vm5, %v3727_v44, %v936_v28  ;;  %v938_v47 = vrot.slane %v936_v28, 4  ;;  %v3729_v32 = vrot.slane %v4755_v6, 10  ;;  %v950_v36 = vrot.slane %v4766_v22, 6 }
  0xb7   : > { %1283 = vrot.lane.b32.xlu1 %v5043_v33, %s4446_s20  ;;  %v919_v27 = vsel %vm4994_vm5, %v917_v62, %v918_v48  ;;  %v953_v39 = vrot.slane %v4772_v30, 6  ;;  %v930_v59 = vsel %vm4994_vm5, %v3726_v2, %v929_v38  ;;  %v931_v41 = vrot.slane %v929_v38, 4 }
  0xb8   : > { %1277 = vrot.lane.b32.xlu0 %v3774_v8, %s4446_s20  ;;  %v5060_v51 = vcombine.low %v916_v1, %v919_v27  ;;  %v940_v54 = vsel %vm4994_vm5, %v938_v47, %v939_v11  ;;  %v951_v6 = vsel %vm4994_vm5, %v3729_v32, %v950_v36  ;;  %v952_v55 = vrot.slane %v950_v36, 4  ;;  %v7108_v32 = vld [vmem:[#allocation25_spill] sm:$0xff] }
  0xb9   : > { %v5066_v53 = vcombine.low %v937_v12, %v940_v54  ;;  %v3728_v22 = vrot.slane %v4778_v40, 10  ;;  %v933_v30 = vsel %vm4994_vm5, %v931_v41, %v932_v49  ;;  %v943_v7 = vrot.slane %v4789_v56, 6  ;;  %v7110_v54 = vld [vmem:[#allocation27_spill] sm:$0xff] }
  0xba   : > { %v946_v57 = vrot.slane %v4795_v3, 6  ;;  %v3731_v26 = vrot.slane %v4801_v14, 10  ;;  %v5078_v10 = vcombine.low %v930_v59, %v933_v30  ;;  %v954_v15 = vsel %vm4994_vm5, %v952_v55, %v953_v39  ;;  %v7109_v39 = vld [vmem:[#allocation26_spill] sm:$0xff] }
  0xbb   : > { %7101 = vst [vmem:[#allocation36_spill] sm:$0xff] %v5066_v53  ;;  %1287 = vrot.lane.b32.xlu1 %v5066_v53, %s4446_s20  ;;  %v964_v34 = vrot.slane %v4812_v35, 6  ;;  %v967_v40 = vrot.slane %v4818_v45, 6  ;;  %v5086_v56 = vcombine.low %v951_v6, %v954_v15  ;;  %v944_v3 = vsel %vm4994_vm5, %v3728_v22, %v943_v7  ;;  %v7111_v6 = vld [vmem:[#allocation29_spill] sm:$0xff]  ;;  %v7112_v22 = vld [vmem:[#allocation30_spill] sm:$0xff] }
  0xbc   : > { %7102 = vst [vmem:[#allocation37_spill] sm:$0xff] %v5078_v10  ;;  %1281 = vrot.lane.b32.xlu0 %v5060_v51, %s4446_s20  ;;  %v945_v14 = vrot.slane %v943_v7, 4  ;;  %v3730_v24 = vrot.slane %v4824_v52, 10  ;;  %v957_v48 = vrot.slane %v4829_v61, 6  ;;  %v960_v35 = vrot.slane %v4838_v13, 6  ;;  %v7113_v7 = vld [vmem:[#allocation31_spill] sm:$0xff] }
  0xbd   : > { %7103 = vst [vmem:[#allocation38_spill] sm:$0xff] %v5086_v56  ;;  %v965_v37 = vsel %vm4994_vm5, %v3731_v26, %v964_v34  ;;  %v966_v42 = vrot.slane %v964_v34, 4  ;;  %vm330_vm6 = vcmask 1042432   ;;  %vm331_vm7 = vcmask 1046532  }
  0xbe   : > { %v947_v45 = vsel %vm4994_vm5, %v945_v14, %v946_v57  ;;  %v3733_v44 = vrot.slane %v4842_v20, 10  ;;  %v978_v8 = vrot.slane %v4852_v50, 6  ;;  %v981_v0 = vrot.slane %v4861_v58, 6  ;;  %vm5165_vm8 = vmor %vm330_vm6, %vm331_vm7 }
  0xbf   : > { %1291 = vrot.lane.b32.xlu1 %v5086_v56, %s4446_s20  ;;  %v5102_v52 = vcombine.low %v944_v3, %v947_v45  ;;  %v968_v61 = vsel %vm4994_vm5, %v966_v42, %v967_v40  ;;  %v958_v13 = vsel %vm4994_vm5, %v3730_v24, %v957_v48  ;;  %v959_v28 = vrot.slane %v957_v48, 4 }
  0xc0   : > { %1285 = vrot.lane.b32.xlu0 %v5078_v10, %s4446_s20  ;;  %v5110_v20 = vcombine.low %v965_v37, %v968_v61  ;;  %v979_v50 = vsel %vm4994_vm5, %v3733_v44, %v978_v8  ;;  %v980_v58 = vrot.slane %v978_v8, 4  ;;  %v3732_v11 = vrot.slane %v4870_v31, 10  ;;  %v5170_v44 = vld [vmem:[%s4625_s11 + $0x30] sm:$0xf]  ;;  %v5178_v61 = vld [vmem:[%s4625_s11 + $0x34] sm:$0xf] }
  0xc1   : > { %7104 = vst [vmem:[#allocation39_spill] sm:$0xff] %v5102_v52  ;;  %v961_v1 = vsel %vm4994_vm5, %v959_v28, %v960_v35  ;;  %v971_v62 = vrot.slane %v4881_v5, 6  ;;  %v974_v2 = vrot.slane %v4887_v18, 6  ;;  %v3735_v12 = vrot.slane %v4893_v43, 10  ;;  %v5186_v28 = vld [vmem:[%s4625_s11 + $0xc] sm:$0xf] }
  0xc2   : > { %7105 = vst [vmem:[#allocation40_spill] sm:$0xff] %v5110_v20  ;;  %v5120_v47 = vcombine.low %v958_v13, %v961_v1  ;;  %v982_v38 = vsel %vm4994_vm5, %v980_v58, %v981_v0  ;;  %v992_v49 = vrot.slane %v4904_v9, 6  ;;  %v995_v27 = vrot.slane %v4910_v23, 6  ;;  %v7175_v10 = vld [vmem:[#allocation33_spill] sm:$0xff] }
  0xc3   : > { %1295 = vrot.lane.b32.xlu1 %v5110_v20, %s4446_s20  ;;  %v5128_v31 = vcombine.low %v979_v50, %v982_v38  ;;  %v972_v5 = vsel %vm4994_vm5, %v3732_v11, %v971_v62  ;;  %v973_v18 = vrot.slane %v971_v62, 4  ;;  %v3734_v43 = vrot.slane %v7108_v32, 10  ;;  %v5189_v50 = vld [vmem:[%s4625_s11 + $0x10] sm:$0xf]  ;;  %v7120_v62 = vld [vmem:[#allocation15_spill] sm:$0xff] }
  0xc4   : > { %7106 = vst [vmem:[#allocation41_spill] sm:$0xff] %v5120_v47  ;;  %1289 = vrot.lane.b32.xlu0 %v5102_v52, %s4446_s20  ;;  %v993_v36 = vsel %vm4994_vm5, %v3735_v12, %v992_v49  ;;  %v994_v9 = vrot.slane %v992_v49, 4  ;;  %v985_v23 = vrot.slane %v7109_v39, 6  ;;  %v988_v59 = vrot.slane %v7110_v54, 6 }
  0xc5   : > { %7107 = vst [vmem:[#allocation42_spill] sm:$0xff] %v5128_v31  ;;  %v975_v41 = vsel %vm4994_vm5, %v973_v18, %v974_v2  ;;  %v3737_v55 = vrot.slane %v7111_v6, 10  ;;  %v1006_v30 = vrot.slane %v7112_v22, 6  ;;  %v1009_v57 = vrot.slane %v7113_v7, 6  ;;  %v5207_v18 = vld [vmem:[%s4625_s11 + $0x14] sm:$0x7] }
  0xc6   : > { %v5144_v26 = vcombine.low %v972_v5, %v975_v41  ;;  %v996_v15 = vsel %vm4994_vm5, %v994_v9, %v995_v27  ;;  %v986_v34 = vsel %vm4994_vm5, %v3734_v43, %v985_v23  ;;  %v987_v40 = vrot.slane %v985_v23, 4  ;;  %v5219_v23 = vld [vmem:[%s4625_s11] sm:$0xf] }
  0xc7   : > { %1299 = vrot.lane.b32.xlu1 %v5128_v31, %s4446_s20  ;;  %v5152_v3 = vcombine.low %v993_v36, %v996_v15  ;;  %v1007_v14 = vsel %vm4994_vm5, %v3737_v55, %v1006_v30  ;;  %v1008_v24 = vrot.slane %v1006_v30, 4  ;;  %v3736_v37 = vrot.slane %v4962_v46, 10  ;;  %v5224_v55 = vld [vmem:[%s4625_s11 + $0x4] sm:$0xf] }
  0xc8   : > { %7114 = vst [vmem:[#allocation25_spill] sm:$0xff] %v5144_v26  ;;  %1293 = vrot.lane.b32.xlu0 %v5120_v47, %s4446_s20  ;;  %v989_v42 = vsel %vm4994_vm5, %v987_v40, %v988_v59  ;;  %v999_v48 = vrot.slane %v4973_v17, 6  ;;  %v1002_v35 = vrot.slane %v4979_v21, 6  ;;  %v3708_v46 = vrot.slane %v5170_v44, 9  ;;  %v5182_v21 = vld [vmem:[%s4625_s11 + $0x38] sm:$0x7] }
  0xc9   : > { %7115 = vst [vmem:[#allocation26_spill] sm:$0xff] %v5152_v3  ;;  %v5173_v8 = vcombine.low %v986_v34, %v989_v42  ;;  %v1010_v0 = vsel %vm4994_vm5, %v1008_v24, %v1009_v57  ;;  %v349_v17 = vrot.slane %v5178_v61, 5  ;;  %v352_v13 = vrot.slane %v5182_v21, 5  ;;  %v218_v40 = vld [vmem:[%s4625_s11 + $0x8] sm:$0x7] }
  0xca   : > { %vm2079_vm9 = vcmask 1040384   ;;  %vm2080_vm10 = vcmask 1044484   ;;  %v5191_v58 = vcombine.low %v1007_v14, %v1010_v0  ;;  %v1000_v11 = vsel %vm4994_vm5, %v3736_v37, %v999_v48 }
  0xcb   : > { %7118 = vst [vmem:[#allocation27_spill] sm:$0xff] %v5173_v8  ;;  %v1001_v1 = vrot.slane %v999_v48, 4  ;;  %v3707_v2 = vrot.slane %v7120_v62, 9  ;;  %1303 = vrot.lane.b32.xlu1 %v5152_v3, %s4446_s20  ;;  %v350_v12 = vsel %vm5165_vm8, %v3708_v46, %v349_v17  ;;  %v351_v38 = vrot.slane %v349_v17, 4  ;;  %vm5248_vm11 = vmor %vm2079_vm9, %vm2080_vm10 }
  0xcc   : > { %7119 = vst [vmem:[#allocation29_spill] sm:$0xff] %v5191_v58  ;;  %v342_v49 = vrot.slane %v4700_v60, 5  ;;  %v345_v27 = vrot.slane %v4706_v4, 5  ;;  %1297 = vrot.lane.b32.xlu0 %v5144_v26, %s4446_s20  ;;  %v2046_v32 = vshrl.u32 %v5186_v28, 16  ;;  %v2049_v43 = vshll.u32 %v5186_v28, 16 }
  0xcd   : > { %v1003_v5 = vsel %vm4994_vm5, %v1001_v1, %v1002_v35  ;;  %v2055_v36 = vshrl.u32 %v5189_v50, 16  ;;  %v353_v60 = vsel %vm5165_vm8, %v351_v38, %v352_v13  ;;  %v2058_v30 = vshll.u32 %v5189_v50, 16  ;;  %v4225_v26 = vld [vmem:[%s4625_s11 + $0x80] sm:$0x7] }
  0xce   : > { %v5212_v9 = vcombine.low %v1000_v11, %v1003_v5  ;;  %v343_v4 = vsel %vm5165_vm8, %v3707_v2, %v342_v49  ;;  %v344_v39 = vrot.slane %v342_v49, 4  ;;  %v5221_v54 = vcombine.low %v350_v12, %v353_v60 }
  0xcf   : > { %v2048_v59 = vrot.slane %v2046_v32, 5  ;;  %v2051_v41 = vrot.slane %v2049_v43, 6  ;;  %v2057_v6 = vrot.slane %v2055_v36, 5  ;;  %1307 = vrot.lane.b32.xlu1 %v5191_v58, %s4446_s20  ;;  %v2065_v7 = vshrl.u32 %v5207_v18, 16  ;;  %v4219_v58 = vld [vmem:[%s4625_s11 + $0x68] sm:$0x7] }
  0xd0   : > { %7121 = vst [vmem:[#allocation30_spill] sm:$0xff] %v5212_v9  ;;  %v346_v22 = vsel %vm5165_vm8, %v344_v39, %v345_v27  ;;  %v2068_v57 = vshll.u32 %v5207_v18, 16  ;;  %1301 = vrot.lane.b32.xlu0 %v5173_v8, %s4446_s20  ;;  %v2018_v14 = vshrl.u32 %v5219_v23, 16  ;;  %v2021_v24 = vshll.u32 %v5219_v23, 16  ;;  %v7136_v8 = vld [vmem:[#allocation20_spill] sm:$0xff] }
  0xd1   : > { %v5235_v15 = vcombine.low %v343_v4, %v346_v22  ;;  %v2052_v34 = vor.u32 %v2051_v41, %v2048_v59  ;;  %v2060_v37 = vrot.slane %v2058_v30, 6  ;;  %v2067_v42 = vrot.slane %v2065_v7, 5 }
  0xd2   : > { %v2070_v48 = vrot.slane %v2068_v57, 6  ;;  %v2027_v35 = vshrl.u32 %v5224_v55, 16  ;;  %v2020_v0 = vrot.slane %v2018_v14, 5  ;;  %v2023_v17 = vrot.slane %v2021_v24, 6 }
  0xd3   : > { %7122 = vst [vmem:[#allocation31_spill] sm:$0xff] %v5235_v15  ;;  %v2053_v46 = vrot.slane %v2052_v34, 4  ;;  %v2030_v13 = vshll.u32 %v5224_v55, 16  ;;  %1314 = vrot.lane.b32.xlu1 %v5221_v54, %s4447_s8  ;;  %v2061_v11 = vor.u32 %v2060_v37, %v2057_v6  ;;  %v2037_v2 = vshrl.u32 %v218_v40, 16 }
  0xd4   : > { %v2071_v1 = vor.u32 %v2070_v48, %v2067_v42  ;;  %v2029_v62 = vrot.slane %v2027_v35, 5  ;;  %1305 = vrot.lane.b32.xlu0 %v5212_v9, %s4446_s20  ;;  %v2024_v12 = vor.u32 %v2023_v17, %v2020_v0  ;;  %v2040_v49 = vshll.u32 %v218_v40, 16 }
  0xd5   : > { %v2032_v38 = vrot.slane %v2030_v13, 6  ;;  %v3816_v5 = vrot.slane %v5186_v28, 11  ;;  %v2062_v32 = vsel %vm4668_vm2, %v2053_v46, %v2061_v11  ;;  %v2063_v43 = vrot.slane %v2061_v11, 4 }
  0xd6   : > { %v2039_v36 = vrot.slane %v2037_v2, 5  ;;  %v2091_v60 = vrot.slane %v5189_v50, 7  ;;  %v2025_v4 = vrot.slane %v2024_v12, 4  ;;  %v2042_v59 = vrot.slane %v2040_v49, 6  ;;  %v4184_v49 = vld [vmem:[#allocation5 + $0x14] sm:$0xff]  }
  0xd7   : > { %v2033_v39 = vor.u32 %v2032_v38, %v2029_v62  ;;  %v2094_v41 = vrot.slane %v5207_v18, 7  ;;  %v2072_v6 = vsel %vm4668_vm2, %v2063_v43, %v2071_v1  ;;  %v3815_v7 = vrot.slane %v5219_v23, 11  ;;  %v4199_v1 = vld [vmem:[%s4625_s11 + $0x28] sm:$0xf]  ;;  %v7125_v43 = vld [vmem:[#allocation17_spill] sm:$0xff]  ;;  %4052 = vmatprep.subr.bf16.mxu1 %v4184_v49 }
  0xd8   : > { %v2092_v22 = vsel %vm5248_vm11, %v3816_v5, %v2091_v60  ;;  %v2093_v30 = vrot.slane %v2091_v60, 4  ;;  %1312 = vrot.lane.b32.xlu0 %v5235_v15, %s4447_s8  ;;  %v3854_v57 = vcombine.low %v2062_v32, %v2072_v6  ;;  %v2043_v24 = vor.u32 %v2042_v59, %v2039_v36  ;;  %v4200_v5 = vld [vmem:[%s4625_s11 + $0x24] sm:$0xf]  ;;  %4053 = vmatpush3.bf16.msra.mxu1 %v4184_v49 }
  0xd9   : > { %v2034_v34 = vsel %vm4668_vm2, %v2025_v4, %v2033_v39  ;;  %v2035_v14 = vrot.slane %v2033_v39, 4  ;;  %v2084_v37 = vrot.slane %v5224_v55, 7  ;;  %v2087_v42 = vrot.slane %v218_v40, 7  ;;  %v4201_v4 = vld [vmem:[%s4625_s11 + $0x2c] sm:$0x7] }
  0xda   : > { %v2095_v18 = vsel %vm5248_vm11, %v2093_v30, %v2094_v41  ;;  %2354 = vrot.lane.b32.xlu1 %v3854_v57, %s4445_s18  ;;  %v2112_v13 = vrot.slane %v5178_v61, 7  ;;  %v2105_v62 = vrot.slane %v4199_v1, 7  ;;  %v3819_v2 = vrot.slane %v5170_v44, 11  ;;  %v4185_v41 = vld [vmem:[#allocation5 + $0x1c] sm:$0xff]  }
  0xdb   : > { %v2044_v48 = vsel %vm4668_vm2, %v2035_v14, %v2043_v24  ;;  %v3856_v35 = vcombine.low %v2092_v22, %v2095_v18  ;;  %v2085_v0 = vsel %vm5248_vm11, %v3815_v7, %v2084_v37  ;;  %v2086_v17 = vrot.slane %v2084_v37, 4  ;;  %v7126_v22 = vld [vmem:[#allocation14_spill] sm:$0xff]  ;;  %4054 = vmatprep.subr.bf16.mxu1 %v4185_v41  ;;  %v4203_v24 = vld [vmem:[%s4625_s11 + $0x4c] sm:$0xf] }
  0xdc   : > { %v3853_v46 = vcombine.low %v2034_v34, %v2044_v48  ;;  %v2114_v12 = vrot.slane %v2112_v13, 4  ;;  %v2115_v38 = vrot.slane %v5182_v21, 7  ;;  %v5284_v32 = vcombine.low %v4200_v5, %v4199_v1  ;;  %v4202_v34 = vld [vmem:[%s4625_s11 + $0x58] sm:$0xf]  ;;  %4055 = vmatpush3.bf16.msra.mxu1 %v4185_v41  ;;  %v4204_v37 = vld [vmem:[%s4625_s11 + $0x54] sm:$0xf] }
  0xdd   : > { %v2088_v11 = vsel %vm5248_vm11, %v2086_v17, %v2087_v42  ;;  %v3818_v36 = vrot.slane %v4200_v5, 11  ;;  %v2107_v60 = vrot.slane %v2105_v62, 4  ;;  %v2108_v39 = vrot.slane %v4201_v4, 7  ;;  %v4207_v1 = vld [vmem:[%s4625_s11 + $0x50] sm:$0x7]  ;;  %v7128_v4 = vld [vmem:[#allocation18_spill] sm:$0xff] }
  0xde   : > { %2352 = vrot.lane.b32.xlu0 %v3853_v46, %s4445_s18  ;;  %2406 = vrot.lane.b32.xlu1 %v3856_v35, %s4446_s20  ;;  %v3855_v40 = vcombine.low %v2085_v0, %v2088_v11  ;;  %v2113_v59 = vsel %vm5248_vm11, %v3819_v2, %v2112_v13  ;;  %v2116_v21 = vsel %vm5248_vm11, %v2114_v12, %v2115_v38  ;;  %v2133_v14 = vrot.slane %v4202_v34, 7  ;;  %v4205_v35 = vld [vmem:[%s4625_s11 + $0x5c] sm:$0x7]  ;;  %v4206_v0 = vld [vmem:[%s4625_s11 + $0x48] sm:$0xf] }
  0xdf   : > { %v5297_v6 = vcombine.low %v5170_v44, %v5178_v61  ;;  %v5301_v30 = vcombine.low %v2113_v59, %v2116_v21  ;;  %v2106_v7 = vsel %vm5248_vm11, %v3818_v36, %v2105_v62  ;;  %v2109_v57 = vsel %vm5248_vm11, %v2107_v60, %v2108_v39  ;;  %v5308_v44 = vld [vmem:[#allocation5 + $0x24] ss:$0 sps:$4 sm:$0x33]   ;;  %v7127_v11 = vld [vmem:[#allocation19_spill] sm:$0xff]  ;;  %v5341_v36 = vld [vmem:[%s4625_s11 + $0x18] sm:$0xf] }
  0xe0   : > { %v3858_v61 = vcombine.low %v2106_v7, %v2109_v57  ;;  %v2126_v18 = vrot.slane %v4203_v24, 7  ;;  %v3822_v42 = vrot.slane %v4204_v37, 11  ;;  %v2135_v48 = vrot.slane %v2133_v14, 4  ;;  %4091 = vmatprep.subr.msk.bf16.mxu1 %vm896_vm3, %v5308_v44  ;;  %v5327_v2 = vld [vmem:[%s4625_s11 + $0x1c] sm:$0xf] }
  0xe1   : > { %v2136_v46 = vrot.slane %v4205_v35, 7  ;;  %v5321_v17 = vcombine.low %v4206_v0, %v4203_v24  ;;  %v3821_v13 = vrot.slane %v4206_v0, 11  ;;  %v2129_v62 = vrot.slane %v4207_v1, 7  ;;  %v4210_v41 = vld [vmem:[%s4625_s11 + $0x20] sm:$0x7]  ;;  %v5361_v24 = vpop.permute.xlu1 %1201 }
  0xe2   : > { %2404 = vrot.lane.b32.xlu0 %v3855_v40, %s4446_s20  ;;  %1347 = vrot.lane.b32.xlu1 %v7125_v43, %s4448_s9  ;;  %v2128_v40 = vrot.slane %v2126_v18, 4  ;;  %v2098_v12 = vrot.slane %v5327_v2, 7  ;;  %v2134_v38 = vsel %vm5248_vm11, %v3822_v42, %v2133_v14  ;;  %v5336_v5 = vcombine.low %v4204_v37, %v4202_v34  ;;  %v5367_v37 = vld [vmem:[%s4625_s11 + $0x40] sm:$0xf]  ;;  %v5374_v35 = vld [vmem:[%s4625_s11 + $0x3c] sm:$0xf] }
  0xe3   : > { %v2137_v49 = vsel %vm5248_vm11, %v2135_v48, %v2136_v46  ;;  %v2127_v43 = vsel %vm5248_vm11, %v3821_v13, %v2126_v18  ;;  %v3817_v60 = vrot.slane %v5341_v36, 11  ;;  %v2101_v7 = vrot.slane %v4210_v41, 7  ;;  %v5370_v48 = vpop.permute.xlu0 %1197  ;;  %v7130_v13 = vld [vmem:[#allocation16_spill] sm:$0xff] }
  0xe4   : > { %v5346_v39 = vcombine.low %v2134_v38, %v2137_v49  ;;  %v2130_v59 = vsel %vm5248_vm11, %v2128_v40, %v2129_v62  ;;  %v2100_v21 = vrot.slane %v2098_v12, 4  ;;  %v2119_v42 = vrot.slane %v5367_v37, 7  ;;  %7129 = vst [vmem:[#allocation15_spill] sm:$0xff] %v5370_v48  ;;  %v5386_v1 = vld [vmem:[%s4625_s11 + $0x44] sm:$0x7] }
  0xe5   : > { %v5353_v57 = vcombine.low %v2127_v43, %v2130_v59  ;;  %v2099_v34 = vsel %vm5248_vm11, %v3817_v60, %v2098_v12  ;;  %v5378_v46 = vcombine.low %v5374_v35, %v5367_v37  ;;  %v5380_v0 = vpop.permute.xlu1 %1203  ;;  %v2122_v62 = vrot.slane %v5386_v1, 7  ;;  %v4214_v60 = vld [vmem:[%s4625_s11 + $0x70] sm:$0xf] }
  0xe6   : > { %2445 = vrot.lane.b32.xlu0 %v5284_v32, %s4447_s8  ;;  %1349 = vrot.lane.b32.xlu1 %v7126_v22, %s4448_s9  ;;  %v2102_v14 = vsel %vm5248_vm11, %v2100_v21, %v2101_v7  ;;  %v2121_v40 = vrot.slane %v2119_v42, 4  ;;  %v2147_v59 = vrot.slane %v4214_v60, 7  ;;  %v4216_v7 = vld [vmem:[%s4625_s11 + $0x6c] sm:$0xf]  ;;  %v2143_v9 = vrot.slane %v4219_v58, 7 }
  0xe7   : > { %v3857_v18 = vcombine.low %v2099_v34, %v2102_v14  ;;  %v3824_v34 = vrot.slane %v4216_v7, 11  ;;  %v2157_v20 = vrot.slane %v4225_v26, 7  ;;  %vm1519_vm12 = vcmask 31744  }
  0xe8   : > { %v2123_v38 = vsel %vm5248_vm11, %v2121_v40, %v2122_v62  ;;  %v2149_v14 = vrot.slane %v2147_v59, 4  ;;  %v4218_v40 = vld [vmem:[%s4625_s11 + $0x60] sm:$0xf]  ;;  %vm1568_vm13 = vcmask 64512   ;;  %vm1601_vm14 = vcmask 97280  }
  0xe9   : > { %v5397_v49 = vpop.permute.xlu0 %1199  ;;  %v2148_v3 = vsel %vm5248_vm11, %v3824_v34, %v2147_v59  ;;  %vm1634_vm15 = vcmask 130048   ;;  %vm1667_vm0 = vcmask 162816   ;;  %vm1700_vm1 = vcmask 195584  }
  0xea   : > { %2447 = vrot.lane.b32.xlu0 %v5297_v6, %s4447_s8  ;;  %2488 = vrot.lane.b32.xlu1 %v5301_v30, %s4449_s29  ;;  %7131 = vst [vmem:[#allocation17_spill] sm:$0xff] %v5397_v49  ;;  %vm1733_vm4 = vcmask 228352   ;;  %vm1766_vm6 = vcmask 261120   ;;  %vm1819_vm7 = vcmask 293888  }
  0xee   : > { %2486 = vrot.lane.b32.xlu0 %v3858_v61, %s4449_s29  ;;  %1456 = vrot.lane.b32.xlu1 %v7127_v11, %s4450_s25  ;;  %v5399_v43 = vpop.permute.xlu1 %1207 }
  0xf2   : > { %2527 = vrot.lane.b32.xlu0 %v5321_v17, %s4451_s4  ;;  %1458 = vrot.lane.b32.xlu1 %v7128_v4, %s4450_s25 }
  0xf6   : > { %2529 = vrot.lane.b32.xlu0 %v5336_v5, %s4451_s4  ;;  %2580 = vrot.lane.b32.xlu1 %v5346_v39, %s4452_s5 }
  0xf8   : > { %v5415_v15 = vpop.permute.xlu1 %1211 }
  0xf9   : > { %7133 = vst [vmem:[#allocation19_spill] sm:$0xff] %v5415_v15 }
  0xfa   : > { %2578 = vrot.lane.b32.xlu0 %v5353_v57, %s4452_s5  ;;  %2410 = vrot.lane.b32.xlu1 %v3858_v61, %s4446_s20  ;;  %v3820_v61 = vrot.slane %v5374_v35, 11 }
  0xfc   : > { %v2120_v12 = vsel %vm5248_vm11, %v3820_v61, %v2119_v42  ;;  %v5409_v61 = vpop.permute.xlu0 %1205 }
  0xfd   : > { %v3860_v21 = vcombine.low %v2120_v12, %v2123_v38  ;;  %v7134_v12 = vld [vmem:[#allocation21_spill] sm:$0xff]  ;;  %v3823_v38 = vrot.slane %v4218_v40, 11 }
  0xfe   : > { %2408 = vrot.lane.b32.xlu0 %v3857_v18, %s4446_s20  ;;  %1351 = vrot.lane.b32.xlu1 %v7130_v13, %s4448_s9  ;;  %v4217_v18 = vld [vmem:[%s4625_s11 + $0x74] sm:$0x7] }
  0xff   : > { %v2150_v42 = vrot.slane %v4217_v18, 7 }
 0x100   : > { %v5436_v59 = vpop.permute.xlu0 %1209 }
 0x101   : > { %v2151_v18 = vsel %vm5248_vm11, %v2149_v14, %v2150_v42  ;;  %7137 = vst [vmem:[#allocation21_spill] sm:$0xff] %v5436_v59  ;;  %v5634_v59 = vld [vmem:[%s4625_s11 + $0xb0] sm:$0x7] }
 0x102   : > { %2449 = vrot.lane.b32.xlu0 %v5378_v46, %s4447_s8  ;;  %1353 = vrot.lane.b32.xlu1 %v7127_v11, %s4448_s9  ;;  %v4215_v11 = vld [vmem:[%s4625_s11 + $0x64] sm:$0xf]  ;;  %v5430_v31 = vcombine.low %v2148_v3, %v2151_v18  ;;  %v5438_v34 = vpop.permute.xlu1 %1215  ;;  %7176 = vst [vmem:[#allocation33_spill] sm:$0xff] %v5634_v59 }
 0x103   : > { %v2140_v41 = vrot.slane %v4215_v11, 7  ;;  %v5413_v62 = vcombine.low %v4218_v40, %v4215_v11  ;;  %v5426_v11 = vcombine.low %v4216_v7, %v4214_v60  ;;  %7138 = vst [vmem:[#allocation20_spill] sm:$0xff] %v5438_v34  ;;  %v7151_v34 = vld [vmem:[#allocation22_spill] sm:$0xff] }
 0x105   : > { %7132 = vst [vmem:[#allocation14_spill] sm:$0xff] %v5413_v62  ;;  %v2142_v63 = vrot.slane %v2140_v41, 4  ;;  %7135 = vst [vmem:[#allocation18_spill] sm:$0xff] %v5426_v11  ;;  %v2141_v40 = vsel %vm5248_vm11, %v3823_v38, %v2140_v41  ;;  %v4222_v38 = vld [vmem:[%s4625_s11 + $0x84] sm:$0xf] }
 0x106   : > { %2451 = vrot.lane.b32.xlu0 %v5321_v17, %s4447_s8  ;;  %2492 = vrot.lane.b32.xlu1 %v5353_v57, %s4449_s29  ;;  %v3826_v18 = vrot.slane %v4222_v38, 11 }
 0x107   : > { %v2144_v58 = vsel %vm5248_vm11, %v2142_v63, %v2143_v9  ;;  %v5446_v3 = vpop.permute.xlu0 %1213  ;;  %v2892_v63 = vsel %vm896_vm3, %v5308_v44, 0  ;;  %v4220_v44 = vld [vmem:[%s4625_s11 + $0x88] sm:$0xf] }
 0x108   : > { %v5442_v60 = vcombine.low %v2141_v40, %v2144_v58  ;;  %7139 = vst [vmem:[#allocation43_spill] sm:$0xff] %v5446_v3  ;;  %4057 = vmatpush3.bf16.msra.mxu1 %v2892_v63 }
 0x10a   : > { %2490 = vrot.lane.b32.xlu0 %v3860_v21, %s4449_s29  ;;  %1460 = vrot.lane.b32.xlu1 %v7134_v12, %s4450_s25 }
 0x10c   : > { %v5450_v41 = vpop.permute.xlu1 %1219 }
 0x10d   : > { %7140 = vst [vmem:[#allocation44_spill] sm:$0xff] %v5450_v41 }
 0x10e   : > { %2531 = vrot.lane.b32.xlu0 %v5413_v62, %s4451_s4  ;;  %1462 = vrot.lane.b32.xlu1 %v7136_v8, %s4450_s25 }
 0x111   : > { %v5459_v9 = vpop.permute.xlu0 %1217 }
 0x112   : > { %2533 = vrot.lane.b32.xlu0 %v5426_v11, %s4451_s4  ;;  %2584 = vrot.lane.b32.xlu1 %v5430_v31, %s4452_s5  ;;  %7141 = vst [vmem:[#allocation45_spill] sm:$0xff] %v5459_v9 }
 0x116   : > { %2582 = vrot.lane.b32.xlu0 %v5442_v60, %s4452_s5  ;;  %2414 = vrot.lane.b32.xlu1 %v3860_v21, %s4446_s20  ;;  %v5461_v7 = vpop.permute.xlu1 %1223  ;;  %v2161_v21 = vrot.slane %v4220_v44, 7 }
 0x117   : > { %7142 = vst [vmem:[#allocation46_spill] sm:$0xff] %v5461_v7 }
 0x118   : > { %v2163_v40 = vrot.slane %v2161_v21, 4 }
 0x11a   : > { %2412 = vrot.lane.b32.xlu0 %v5301_v30, %s4446_s20  ;;  %1355 = vrot.lane.b32.xlu1 %v7128_v4, %s4448_s9  ;;  %v4221_v4 = vld [vmem:[%s4625_s11 + $0x7c] sm:$0xf] }
 0x11b   : > { %v5468_v14 = vpop.permute.xlu0 %1221  ;;  %v2154_v42 = vrot.slane %v4221_v4, 7 }
 0x11c   : > { %7143 = vst [vmem:[#allocation47_spill] sm:$0xff] %v5468_v14  ;;  %v4224_v14 = vld [vmem:[%s4625_s11 + $0x78] sm:$0xf] }
 0x11d   : > { %v3825_v9 = vrot.slane %v4224_v14, 11  ;;  %v2156_v41 = vrot.slane %v2154_v42, 4  ;;  %v5489_v47 = vcombine.low %v4224_v14, %v4221_v4  ;;  %v5509_v14 = vcombine.low %v4222_v38, %v4220_v44 }
 0x11e   : > { %2453 = vrot.lane.b32.xlu0 %v5336_v5, %s4447_s8  ;;  %1357 = vrot.lane.b32.xlu1 %v7134_v12, %s4448_s9  ;;  %v4223_v12 = vld [vmem:[%s4625_s11 + $0x8c] sm:$0x7] }
 0x11f   : > { %v2164_v58 = vrot.slane %v4223_v12, 7  ;;  %v2162_v12 = vsel %vm5248_vm11, %v3826_v18, %v2161_v21  ;;  %v2155_v26 = vsel %vm5248_vm11, %v3825_v9, %v2154_v42  ;;  %v2158_v21 = vsel %vm5248_vm11, %v2156_v41, %v2157_v20  ;;  %7152 = vst [vmem:[#allocation22_spill] sm:$0xff] %v5509_v14 }
 0x120   : > { %v5472_v30 = vpop.permute.xlu1 %1227  ;;  %v5513_v4 = vcombine.low %v2155_v26, %v2158_v21  ;;  %v4228_v26 = vld [vmem:[%s4625_s11 + $0x9c] sm:$0xf] }
 0x121   : > { %7144 = vst [vmem:[#allocation48_spill] sm:$0xff] %v5472_v30  ;;  %v7147_v30 = vld [vmem:[#allocation23_spill] sm:$0xff]  ;;  %v2165_v3 = vsel %vm5248_vm11, %v2163_v40, %v2164_v58  ;;  %v4227_v58 = vld [vmem:[%s4625_s11 + $0x94] sm:$0xf]  ;;  %v3828_v21 = vrot.slane %v4228_v26, 11 }
 0x122   : > { %2455 = vrot.lane.b32.xlu0 %v5413_v62, %s4447_s8  ;;  %2496 = vrot.lane.b32.xlu1 %v5442_v60, %s4449_s29  ;;  %7148 = vst [vmem:[#allocation23_spill] sm:$0xff] %v5489_v47  ;;  %v5503_v56 = vcombine.low %v2162_v12, %v2165_v3  ;;  %v2168_v12 = vrot.slane %v4227_v58, 7 }
 0x125   : > { %v5481_v63 = vpop.permute.xlu1 %1279 }
 0x126   : > { %2494 = vrot.lane.b32.xlu0 %v5346_v39, %s4449_s29  ;;  %7145 = vst [vmem:[#allocation49_spill] sm:$0xff] %v5481_v63  ;;  %v5483_v7 = vpop.permute.xlu0 %1225  ;;  %1464 = vrot.lane.b32.xlu1 %v7147_v30, %s4450_s25 }
 0x127   : > { %7146 = vst [vmem:[#allocation50_spill] sm:$0xff] %v5483_v7 }
 0x129   : > { %v5497_v7 = vpop.permute.xlu1 %1283 }
 0x12a   : > { %2535 = vrot.lane.b32.xlu0 %v5489_v47, %s4451_s4  ;;  %7149 = vst [vmem:[#allocation51_spill] sm:$0xff] %v5497_v7  ;;  %v5499_v63 = vpop.permute.xlu0 %1277  ;;  %1466 = vrot.lane.b32.xlu1 %v7151_v34, %s4450_s25 }
 0x12b   : > { %7150 = vst [vmem:[#allocation52_spill] sm:$0xff] %v5499_v63 }
 0x12d   : > { %v5515_v18 = vpop.permute.xlu1 %1287 }
 0x12e   : > { %2537 = vrot.lane.b32.xlu0 %v5509_v14, %s4451_s4  ;;  %7153 = vst [vmem:[#allocation53_spill] sm:$0xff] %v5515_v18  ;;  %v5517_v40 = vpop.permute.xlu0 %1281  ;;  %2588 = vrot.lane.b32.xlu1 %v5503_v56, %s4452_s5  ;;  %v4231_v18 = vld [vmem:[%s4625_s11 + $0x98] sm:$0x7] }
 0x12f   : > { %7154 = vst [vmem:[#allocation54_spill] sm:$0xff] %v5517_v40  ;;  %v2171_v40 = vrot.slane %v4231_v18, 7 }
 0x131   : > { %v5523_v3 = vpop.permute.xlu1 %1291 }
 0x132   : > { %2586 = vrot.lane.b32.xlu0 %v5513_v4, %s4452_s5  ;;  %7155 = vst [vmem:[#allocation55_spill] sm:$0xff] %v5523_v3  ;;  %v5525_v20 = vpop.permute.xlu0 %1285  ;;  %2418 = vrot.lane.b32.xlu1 %v5346_v39, %s4446_s20  ;;  %v4226_v39 = vld [vmem:[%s4625_s11 + $0xa0] sm:$0xf] }
 0x133   : > { %7156 = vst [vmem:[#allocation56_spill] sm:$0xff] %v5525_v20  ;;  %v2170_v20 = vrot.slane %v2168_v12, 4 }
 0x135   : > { %v5531_v41 = vpop.permute.xlu1 %1295 }
 0x136   : > { %2416 = vrot.lane.b32.xlu0 %v5353_v57, %s4446_s20  ;;  %7157 = vst [vmem:[#allocation57_spill] sm:$0xff] %v5531_v41  ;;  %v5533_v9 = vpop.permute.xlu0 %1289  ;;  %1359 = vrot.lane.b32.xlu1 %v7136_v8, %s4448_s9  ;;  %v2175_v57 = vrot.slane %v4226_v39, 7 }
 0x137   : > { %7158 = vst [vmem:[#allocation58_spill] sm:$0xff] %v5533_v9 }
 0x139   : > { %v5539_v44 = vpop.permute.xlu1 %1299 }
 0x13a   : > { %2457 = vrot.lane.b32.xlu0 %v5426_v11, %s4447_s8  ;;  %7159 = vst [vmem:[#allocation59_spill] sm:$0xff] %v5539_v44  ;;  %v5541_v42 = vpop.permute.xlu0 %1293  ;;  %1361 = vrot.lane.b32.xlu1 %v7147_v30, %s4448_s9  ;;  %v2177_v44 = vrot.slane %v2175_v57, 4  ;;  %v4229_v30 = vld [vmem:[%s4625_s11 + $0xa4] sm:$0x7] }
 0x13b   : > { %7160 = vst [vmem:[#allocation60_spill] sm:$0xff] %v5541_v42  ;;  %v2178_v42 = vrot.slane %v4229_v30, 7  ;;  %v2176_v30 = vsel %vm5248_vm11, %v3828_v21, %v2175_v57  ;;  %v2172_v57 = vsel %vm5248_vm11, %v2170_v20, %v2171_v40 }
 0x13d   : > { %v5548_v38 = vpop.permute.xlu1 %1303  ;;  %v2179_v63 = vsel %vm5248_vm11, %v2177_v44, %v2178_v42 }
 0x13e   : > { %2459 = vrot.lane.b32.xlu0 %v5489_v47, %s4447_s8  ;;  %7161 = vst [vmem:[#allocation61_spill] sm:$0xff] %v5548_v38  ;;  %v5550_v8 = vpop.permute.xlu0 %1297  ;;  %2500 = vrot.lane.b32.xlu1 %v5513_v4, %s4449_s29  ;;  %v7165_v38 = vld [vmem:[#allocation28_spill] sm:$0xff]  ;;  %v5581_v52 = vcombine.low %v2176_v30, %v2179_v63  ;;  %v4234_v30 = vld [vmem:[%s4625_s11 + $0xb4] sm:$0xf] }
 0x13f   : > { %7162 = vst [vmem:[#allocation62_spill] sm:$0xff] %v5550_v8  ;;  %v4230_v8 = vld [vmem:[%s4625_s11 + $0x90] sm:$0xf] }
 0x140   : > { %v3827_v3 = vrot.slane %v4230_v8, 11  ;;  %v5567_v7 = vcombine.low %v4230_v8, %v4227_v58  ;;  %v5587_v8 = vcombine.low %v4228_v26, %v4226_v39  ;;  %v4232_v58 = vld [vmem:[%s4625_s11 + $0xb8] sm:$0xf] }
 0x141   : > { %v5559_v41 = vpop.permute.xlu1 %1307 }
 0x142   : > { %2498 = vrot.lane.b32.xlu0 %v5430_v31, %s4449_s29  ;;  %7163 = vst [vmem:[#allocation63_spill] sm:$0xff] %v5559_v41  ;;  %v5561_v9 = vpop.permute.xlu0 %1301  ;;  %1468 = vrot.lane.b32.xlu1 %v7165_v38, %s4450_s25  ;;  %7166 = vst [vmem:[#allocation28_spill] sm:$0xff] %v5567_v7  ;;  %v2169_v18 = vsel %vm5248_vm11, %v3827_v3, %v2168_v12  ;;  %v2189_v12 = vrot.slane %v4232_v58, 7 }
 0x143   : > { %7164 = vst [vmem:[#allocation64_spill] sm:$0xff] %v5561_v9  ;;  %v7168_v9 = vld [vmem:[#allocation24_spill] sm:$0xff]  ;;  %7170 = vst [vmem:[#allocation66_spill] sm:$0xff] %v5587_v8  ;;  %v5591_v44 = vcombine.low %v2169_v18, %v2172_v57  ;;  %v3830_v18 = vrot.slane %v4234_v30, 11 }
 0x144   : > { %v2191_v57 = vrot.slane %v2189_v12, 4 }
 0x145   : > { %v5579_v47 = vpop.permute.xlu1 %1314 }
 0x146   : > { %2539 = vrot.lane.b32.xlu0 %v5567_v7, %s4451_s4  ;;  %v5575_v41 = vpop.permute.xlu0 %1305  ;;  %1470 = vrot.lane.b32.xlu1 %v7168_v9, %s4450_s25  ;;  %7169 = vst [vmem:[#allocation24_spill] sm:$0xff] %v5579_v47  ;;  %v3838_v47 = vcombine.low %v5186_v28, %v5189_v50 }
 0x147   : > { %7167 = vst [vmem:[#allocation65_spill] sm:$0xff] %v5575_v41 }
 0x14a   : > { %2541 = vrot.lane.b32.xlu0 %v5587_v8, %s4451_s4  ;;  %v5593_v42 = vpop.permute.xlu0 %1312  ;;  %2592 = vrot.lane.b32.xlu1 %v5581_v52, %s4452_s5 }
 0x14b   : > { %7171 = vst [vmem:[#allocation67_spill] sm:$0xff] %v5593_v42 }
 0x14c   : > { %v2355_v63 = vpop.permute.xlu1 %2354 }
 0x14d   : > { %v2615_v15 = vsel %vm1519_vm12, %v3838_v47, %v2355_v63  ;;  %v5660_v63 = vcombine.low %v4234_v30, %v4232_v58 }
 0x14e   : > { %2590 = vrot.lane.b32.xlu0 %v5591_v44, %s4452_s5  ;;  %2422 = vrot.lane.b32.xlu1 %v5430_v31, %s4446_s20 }
 0x150   : > { %v2353_v40 = vpop.permute.xlu0 %2352  ;;  %v2407_v3 = vpop.permute.xlu1 %2406 }
 0x152   : > { %2420 = vrot.lane.b32.xlu0 %v5442_v60, %s4446_s20  ;;  %1363 = vrot.lane.b32.xlu1 %v7151_v34, %s4448_s9  ;;  %v4233_v34 = vld [vmem:[%s4625_s11 + $0xac] sm:$0xf] }
 0x153   : > { %v2182_v60 = vrot.slane %v4233_v34, 7 }
 0x154   : > { %v2405_v20 = vpop.permute.xlu0 %2404  ;;  %v5605_v39 = vpop.permute.xlu1 %1347 }
 0x155   : > { %7172 = vst [vmem:[#allocation68_spill] sm:$0xff] %v5605_v39  ;;  %v2184_v62 = vrot.slane %v2182_v60, 4 }
 0x156   : > { %2461 = vrot.lane.b32.xlu0 %v5509_v14, %s4447_s8  ;;  %1365 = vrot.lane.b32.xlu1 %v7165_v38, %s4448_s9  ;;  %v4235_v38 = vld [vmem:[%s4625_s11 + $0xbc] sm:$0x7]  ;;  %v3837_v14 = vcombine.low %v5219_v23, %v5224_v55  ;;  %v2190_v23 = vsel %vm5248_vm11, %v3830_v18, %v2189_v12  ;;  %v2647_v12 = vsel %vm1568_vm13, %v2615_v15, %v2407_v3 }
 0x157   : > { %v2192_v41 = vrot.slane %v4235_v38, 7  ;;  %v2185_v38 = vrot.slane %v5634_v59, 7 }
 0x158   : > { %v2446_v31 = vpop.permute.xlu0 %2445  ;;  %v5612_v26 = vpop.permute.xlu1 %1349  ;;  %v2612_v33 = vsel %vm1519_vm12, %v3837_v14, %v2353_v40 }
 0x159   : > { %7173 = vst [vmem:[#allocation69_spill] sm:$0xff] %v5612_v26  ;;  %v2193_v55 = vsel %vm5248_vm11, %v2191_v57, %v2192_v41  ;;  %v2645_v18 = vsel %vm1568_vm13, %v2612_v33, %v2405_v20  ;;  %v7179_v41 = vld [vmem:[#allocation32_spill] sm:$0xff]  ;;  %v2186_v47 = vsel %vm5248_vm11, %v2184_v62, %v2185_v38 }
 0x15a   : > { %2463 = vrot.lane.b32.xlu0 %v5567_v7, %s4447_s8  ;;  %2504 = vrot.lane.b32.xlu1 %v5591_v44, %s4449_s29  ;;  %v5628_v7 = vld [vmem:[%s4625_s11 + $0xa8] sm:$0xf]  ;;  %v5656_v57 = vcombine.low %v2190_v23, %v2193_v55  ;;  %v2677_v14 = vsel %vm1601_vm14, %v2645_v18, %v2446_v31 }
 0x15b   : > { %7174 = vst [vmem:[#allocation70_spill] sm:$0xff] %v5628_v7  ;;  %v3829_v53 = vrot.slane %v5628_v7, 11  ;;  %v5638_v28 = vcombine.low %v5628_v7, %v4233_v34  ;;  %v2708_v3 = vsel %vm1634_vm15, %v2677_v14, %v5605_v39 }
 0x15c   : > { %v2448_v21 = vpop.permute.xlu0 %2447  ;;  %v2489_v42 = vpop.permute.xlu1 %2488 }
 0x15d   : > { %7177 = vst [vmem:[#allocation71_spill] sm:$0xff] %v5638_v28  ;;  %v2183_v34 = vsel %vm5248_vm11, %v3829_v53, %v2182_v60  ;;  %v2679_v40 = vsel %vm1601_vm14, %v2647_v12, %v2448_v21 }
 0x15e   : > { %2502 = vrot.lane.b32.xlu0 %v5503_v56, %s4449_s29  ;;  %1472 = vrot.lane.b32.xlu1 %v7175_v10, %s4450_s25  ;;  %v5668_v33 = vcombine.low %v2183_v34, %v2186_v47  ;;  %v2709_v62 = vsel %vm1634_vm15, %v2679_v40, %v5612_v26 }
 0x15f   : > { %v2727_v20 = vsel %vm1667_vm0, %v2709_v62, %v2489_v42 }
 0x160   : > { %v2487_v50 = vpop.permute.xlu0 %2486  ;;  %v5644_v11 = vpop.permute.xlu1 %1456 }
 0x161   : > { %7178 = vst [vmem:[#allocation72_spill] sm:$0xff] %v5644_v11  ;;  %v2725_v31 = vsel %vm1667_vm0, %v2708_v3, %v2487_v50 }
 0x162   : > { %2543 = vrot.lane.b32.xlu0 %v5638_v28, %s4451_s4  ;;  %1474 = vrot.lane.b32.xlu1 %v7179_v41, %s4450_s25 }
 0x164   : > { %v2528_v53 = vpop.permute.xlu0 %2527  ;;  %v5664_v15 = vpop.permute.xlu1 %1458 }
 0x165   : > { %7180 = vst [vmem:[#allocation32_spill] sm:$0xff] %v5664_v15  ;;  %v2757_v60 = vsel %vm1700_vm1, %v2725_v31, %v2528_v53  ;;  %v5717_v53 = vld [vmem:[%s4625_s11 + $0xcc] sm:$0xf] }
 0x166   : > { %2545 = vrot.lane.b32.xlu0 %v5660_v63, %s4451_s4  ;;  %2596 = vrot.lane.b32.xlu1 %v5656_v57, %s4452_s5  ;;  %v2788_v23 = vsel %vm1733_vm4, %v2757_v60, %v5644_v11  ;;  %7185 = vst [vmem:[#allocation77_spill] sm:$0xff] %v5717_v53  ;;  %v3832_v62 = vrot.slane %v5717_v53, 11  ;;  %v3839_v60 = vcombine.low %v5341_v36, %v5327_v2  ;;  %v5745_v2 = vld [vmem:[%s4625_s11 + $0xc8] sm:$0x7] }
 0x167   : > { %7188 = vst [vmem:[#allocation80_spill] sm:$0xff] %v5745_v2  ;;  %v2199_v36 = vrot.slane %v5745_v2, 7 }
 0x168   : > { %v2530_v58 = vpop.permute.xlu0 %2529  ;;  %v2581_v30 = vpop.permute.xlu1 %2580  ;;  %v2617_v2 = vsel %vm1519_vm12, %v3839_v60, %v5370_v48  ;;  %v5780_v48 = vld [vmem:[%s4625_s11 + $0xe0] sm:$0x7] }
 0x169   : > { %v2759_v21 = vsel %vm1700_vm1, %v2727_v20, %v2530_v58  ;;  %v5721_v20 = vld [vmem:[%s4625_s11 + $0xd4] sm:$0x7] }
 0x16a   : > { %2594 = vrot.lane.b32.xlu0 %v5668_v33, %s4452_s5  ;;  %v2789_v38 = vsel %vm1733_vm4, %v2759_v21, %v5664_v15  ;;  %2426 = vrot.lane.b32.xlu1 %v5503_v56, %s4446_s20  ;;  %7186 = vst [vmem:[#allocation78_spill] sm:$0xff] %v5721_v20  ;;  %v2206_v31 = vrot.slane %v5721_v20, 7  ;;  %v5729_v21 = vld [vmem:[%s4625_s11 + $0xc0] sm:$0xf] }
 0x16b   : > { %v2809_v42 = vsel %vm1766_vm6, %v2789_v38, %v2581_v30  ;;  %7187 = vst [vmem:[#allocation79_spill] sm:$0xff] %v5729_v21  ;;  %v3831_v38 = vrot.slane %v5729_v21, 11 }
 0x16c   : > { %v2579_v50 = vpop.permute.xlu0 %2578  ;;  %v2411_v34 = vpop.permute.xlu1 %2410 }
 0x16d   : > { %v2807_v55 = vsel %vm1766_vm6, %v2788_v23, %v2579_v50  ;;  %v5740_v50 = vld [vmem:[%s4625_s11 + $0xdc] sm:$0xf] }
 0x16e   : > { %2424 = vrot.lane.b32.xlu0 %v5513_v4, %s4446_s20  ;;  %4058 = vmatprep.mubr.msk.bf16.mxu1 %vm1819_vm7, %v2807_v55  ;;  %v5703_v4 = vld [vmem:[%s4625_s11 + $0xd0] sm:$0xf]  ;;  %v1031_v20 = vshrl.u32 %v5740_v50, 16 }
 0x16f   : > { %4059 = vmatmul.mubr.msk.bf16.vlgmr.msra.gmra.mrb[0].mxu1 %vm1819_vm7, %v2809_v42  ;;  %1367 = vrot.lane.b32.xlu1 %v7168_v9, %s4448_s9  ;;  %7182 = vst [vmem:[#allocation74_spill] sm:$0xff] %v5703_v4  ;;  %v2203_v47 = vrot.slane %v5703_v4, 7  ;;  %v5713_v9 = vld [vmem:[%s4625_s11 + $0xc4] sm:$0xf]  ;;  %v5737_v42 = vld [vmem:[%s4625_s11 + $0xd8] sm:$0xf] }
 0x170   : > { %v2409_v56 = vpop.permute.xlu0 %2408  ;;  %v5696_v12 = vpop.permute.xlu1 %1351  ;;  %7184 = vst [vmem:[#allocation76_spill] sm:$0xff] %v5713_v9  ;;  %v5733_v30 = vcombine.low %v5729_v21, %v5713_v9  ;;  %v1022_v26 = vshrl.u32 %v5737_v42, 16  ;;  %v1034_v21 = vshll.u32 %v5740_v50, 16 }
 0x171   : > { %7181 = vst [vmem:[#allocation73_spill] sm:$0xff] %v5696_v12  ;;  %v2205_v3 = vrot.slane %v2203_v47, 4  ;;  %v2204_v11 = vsel %vm5248_vm11, %v3832_v62, %v2203_v47  ;;  %v2619_v47 = vsel %vm1519_vm12, %v5284_v32, %v5397_v49  ;;  %v5767_v62 = vcombine.low %v5717_v53, %v5703_v4  ;;  %v5783_v49 = vld [vmem:[%s4625_s11 + $0xe4] sm:$0xf] }
 0x172   : > { %2465 = vrot.lane.b32.xlu0 %v5587_v8, %s4447_s8 }
 0x173   : > { %1369 = vrot.lane.b32.xlu1 %v7175_v10, %s4448_s9  ;;  %v2196_v10 = vrot.slane %v5713_v9, 7  ;;  %v2207_v15 = vsel %vm5248_vm11, %v2205_v3, %v2206_v31  ;;  %v2651_v31 = vsel %vm1568_vm13, %v2619_v47, %v2411_v34  ;;  %v2649_v9 = vsel %vm1568_vm13, %v2617_v2, %v2409_v56  ;;  %v5788_v34 = vld [vmem:[%s4625_s11 + $0xe8] sm:$0xf] }
 0x174   : > { %v2450_v18 = vpop.permute.xlu0 %2449  ;;  %v5706_v14 = vpop.permute.xlu1 %1353  ;;  %v5775_v60 = vcombine.low %v2204_v11, %v2207_v15  ;;  %v1024_v2 = vrot.slane %v1022_v26, 5  ;;  %v1033_v11 = vrot.slane %v1031_v20, 5  ;;  %v1036_v15 = vrot.slane %v1034_v21, 6 }
 0x175   : > { %7183 = vst [vmem:[#allocation75_spill] sm:$0xff] %v5706_v14  ;;  %v2198_v23 = vrot.slane %v2196_v10, 4  ;;  %v2197_v3 = vsel %vm5248_vm11, %v3831_v38, %v2196_v10  ;;  %v2681_v53 = vsel %vm1601_vm14, %v2649_v9, %v2450_v18  ;;  %v1044_v18 = vshll.u32 %v5780_v48, 16 }
 0x176   : > { %2467 = vrot.lane.b32.xlu0 %v5638_v28, %s4447_s8  ;;  %v1025_v28 = vshll.u32 %v5737_v42, 16  ;;  %v1067_v9 = vshrl.u32 %v5783_v49, 16  ;;  %v2710_v26 = vsel %vm1634_vm15, %v2681_v53, %v5696_v12  ;;  %v1076_v20 = vshrl.u32 %v5788_v34, 16 }
 0x177   : > { %2508 = vrot.lane.b32.xlu1 %v5668_v33, %s4449_s29  ;;  %v2200_v32 = vsel %vm5248_vm11, %v2198_v23, %v2199_v36  ;;  %v1041_v36 = vshrl.u32 %v5780_v48, 16  ;;  %v1079_v4 = vshll.u32 %v5788_v34, 16  ;;  %v1037_v8 = vor.u32 %v1036_v15, %v1033_v11 }
 0x178   : > { %v2452_v40 = vpop.permute.xlu0 %2451  ;;  %v2493_v58 = vpop.permute.xlu1 %2492  ;;  %v1027_v47 = vrot.slane %v1025_v28, 6  ;;  %v3874_v23 = vcombine.low %v2197_v3, %v2200_v32  ;;  %v1070_v28 = vshll.u32 %v5783_v49, 16  ;;  %v5808_v32 = vld [vmem:[%s4625_s11 + $0xec] sm:$0x7]  ;;  %v1046_v7 = vrot.slane %v1044_v18, 6 }
 0x179   : > { %v2683_v10 = vsel %vm1601_vm14, %v2651_v31, %v2452_v40  ;;  %v1043_v59 = vrot.slane %v1041_v36, 5  ;;  %v1069_v13 = vrot.slane %v1067_v9, 5  ;;  %v1081_v11 = vrot.slane %v1079_v4, 6 }
 0x17a   : > { %2506 = vrot.lane.b32.xlu0 %v5581_v52, %s4449_s29  ;;  %v2711_v40 = vsel %vm1634_vm15, %v2683_v10, %v5706_v14  ;;  %v1028_v14 = vor.u32 %v1027_v47, %v1024_v2  ;;  %v1089_v15 = vshll.u32 %v5808_v32, 16 }
 0x17b   : > { %1476 = vrot.lane.b32.xlu1 %v5025_v16, %s4450_s25  ;;  %v2731_v21 = vsel %vm1667_vm0, %v2711_v40, %v2493_v58  ;;  %v1078_v40 = vrot.slane %v1076_v20, 5  ;;  %v1047_v9 = vor.u32 %v1046_v7, %v1043_v59 }
 0x17c   : > { %v2491_v55 = vpop.permute.xlu0 %2490  ;;  %v5752_v39 = vpop.permute.xlu1 %1460 }
 0x17d   : > { %v2729_v3 = vsel %vm1667_vm0, %v2710_v26, %v2491_v55  ;;  %v1072_v55 = vrot.slane %v1070_v28, 6  ;;  %v1082_v20 = vor.u32 %v1081_v11, %v1078_v40 }
 0x17e   : > { %2547 = vrot.lane.b32.xlu0 %v5733_v30, %s4451_s4 }
 0x17f   : > { %1478 = vrot.lane.b32.xlu1 %v5002_v29, %s4450_s25  ;;  %v1073_v4 = vor.u32 %v1072_v55, %v1069_v13  ;;  %v1084_v13 = vrot.slane %v1082_v20, 4 }
 0x180   : > { %v2532_v38 = vpop.permute.xlu0 %2531  ;;  %v5790_v56 = vpop.permute.xlu1 %1462 }
 0x181   : > { %v2761_v10 = vsel %vm1700_vm1, %v2729_v3, %v2532_v38  ;;  %v1086_v38 = vshrl.u32 %v5808_v32, 16  ;;  %v1091_v3 = vrot.slane %v1089_v15, 6  ;;  %v1074_v7 = vrot.slane %v1073_v4, 4 }
 0x182   : > { %2549 = vrot.lane.b32.xlu0 %v5767_v62, %s4451_s4  ;;  %v2790_v2 = vsel %vm1733_vm4, %v2761_v10, %v5752_v39  ;;  %v2279_v10 = vrot.slane %v5788_v34, 7 }
 0x183   : > { %2600 = vrot.lane.b32.xlu1 %v5775_v60, %s4452_s5  ;;  %v1083_v40 = vsel %vm4668_vm2, %v1074_v7, %v1082_v20  ;;  %v2621_v20 = vsel %vm1519_vm12, %v5297_v6, %v5361_v24 }
 0x184   : > { %v2534_v31 = vpop.permute.xlu0 %2533  ;;  %v2585_v12 = vpop.permute.xlu1 %2584 }
 0x185   : > { %v2763_v53 = vsel %vm1700_vm1, %v2731_v21, %v2534_v31  ;;  %v1088_v21 = vrot.slane %v1086_v38, 5 }
 0x186   : > { %2598 = vrot.lane.b32.xlu0 %v3874_v23, %s4452_s5  ;;  %v2791_v58 = vsel %vm1733_vm4, %v2763_v53, %v5790_v56 }
 0x187   : > { %2430 = vrot.lane.b32.xlu1 %v5581_v52, %s4446_s20  ;;  %v2813_v26 = vsel %vm1766_vm6, %v2791_v58, %v2585_v12  ;;  %v1029_v52 = vrot.slane %v1028_v14, 4  ;;  %v1039_v12 = vrot.slane %v1037_v8, 4  ;;  %v1092_v14 = vor.u32 %v1091_v3, %v1088_v21 }
 0x188   : > { %v2583_v47 = vpop.permute.xlu0 %2582  ;;  %v2415_v18 = vpop.permute.xlu1 %2414  ;;  %v2210_v58 = vrot.slane %v5740_v50, 7  ;;  %v2623_v21 = vsel %vm1519_vm12, %v5378_v46, %v5380_v0  ;;  %v3877_v3 = vcombine.low %v5783_v49, %v5788_v34  ;;  %v5889_v46 = vld [vmem:[%s4625_s11 + $0xf0] sm:$0xf] }
 0x189   : > { %v2811_v36 = vsel %vm1766_vm6, %v2790_v2, %v2583_v47  ;;  %v1093_v38 = vsel %vm4668_vm2, %v1084_v13, %v1092_v14  ;;  %v2282_v2 = vrot.slane %v5808_v32, 7 }
 0x18a   : > { %2428 = vrot.lane.b32.xlu0 %v5591_v44, %s4446_s20  ;;  %4062 = vmatprep.mubr.msk.bf16.mxu1 %vm1819_vm7, %v2811_v36  ;;  %v1038_v44 = vsel %vm4668_vm2, %v1029_v52, %v1037_v8  ;;  %v3834_v8 = vrot.slane %v5783_v49, 11  ;;  %v3794_v11 = vcombine.low %v1083_v40, %v1093_v38  ;;  %v2212_v15 = vrot.slane %v2210_v58, 4 }
 0x18b   : > { %4063 = vmatmul.mubr.msk.bf16.gmra.mrb[4].mxu1 %vm1819_vm7, %v2813_v26  ;;  %1371 = vrot.lane.b32.xlu1 %v7179_v41, %s4448_s9  ;;  %v1048_v41 = vsel %vm4668_vm2, %v1039_v12, %v1047_v9  ;;  %v2281_v26 = vrot.slane %v2279_v10, 4  ;;  %v2213_v36 = vrot.slane %v5780_v48, 7 }
 0x18c   : > { %v2413_v28 = vpop.permute.xlu0 %2412  ;;  %v5830_v31 = vpop.permute.xlu1 %1355  ;;  %v2280_v12 = vsel %vm5248_vm11, %v3834_v8, %v2279_v10 }
 0x18d   : > { %v2283_v9 = vsel %vm5248_vm11, %v2281_v26, %v2282_v2  ;;  %v2653_v7 = vsel %vm1568_vm13, %v2621_v20, %v2413_v28  ;;  %v2214_v13 = vsel %vm5248_vm11, %v2212_v15, %v2213_v36  ;;  %v2216_v28 = vshrl.u32 %v5889_v46, 16 }
 0x18e   : > { %2469 = vrot.lane.b32.xlu0 %v5660_v63, %s4447_s8  ;;  %v3882_v6 = vcombine.low %v2280_v12, %v2283_v9 }
 0x18f   : > { %1373 = vrot.lane.b32.xlu1 %v5025_v16, %s4448_s9  ;;  %v5846_v16 = vcombine.low %v1038_v44, %v1048_v41  ;;  %v2655_v41 = vsel %vm1568_vm13, %v2623_v21, %v2415_v18  ;;  %v2218_v21 = vrot.slane %v2216_v28, 5 }
 0x190   : > { %v2454_v59 = vpop.permute.xlu0 %2453  ;;  %v5841_v53 = vpop.permute.xlu1 %1357 }
 0x191   : > { %v2685_v14 = vsel %vm1601_vm14, %v2653_v7, %v2454_v59  ;;  %v2219_v59 = vshll.u32 %v5889_v46, 16 }
 0x192   : > { %2471 = vrot.lane.b32.xlu0 %v5733_v30, %s4447_s8  ;;  %v5859_v30 = vcombine.low %v5737_v42, %v5740_v50  ;;  %v2712_v26 = vsel %vm1634_vm15, %v2685_v14, %v5830_v31 }
 0x193   : > { %2512 = vrot.lane.b32.xlu1 %v3874_v23, %s4449_s29  ;;  %v3833_v23 = vrot.slane %v5737_v42, 11 }
 0x194   : > { %v2456_v55 = vpop.permute.xlu0 %2455  ;;  %v2497_v47 = vpop.permute.xlu1 %2496 }
 0x195   : > { %v2211_v44 = vsel %vm5248_vm11, %v3833_v23, %v2210_v58  ;;  %v2687_v10 = vsel %vm1601_vm14, %v2655_v41, %v2456_v55  ;;  %v5896_v58 = vld [vmem:[%s4625_s11 + $0xf4] sm:$0xf] }
 0x196   : > { %2510 = vrot.lane.b32.xlu0 %v5656_v57, %s4449_s29  ;;  %v3876_v18 = vcombine.low %v2211_v44, %v2214_v13  ;;  %v2713_v38 = vsel %vm1634_vm15, %v2687_v10, %v5841_v53  ;;  %v2225_v15 = vshrl.u32 %v5896_v58, 16  ;;  %v2228_v36 = vshll.u32 %v5896_v58, 16 }
 0x197   : > { %1480 = vrot.lane.b32.xlu1 %v5846_v16, %s4450_s25  ;;  %v2735_v55 = vsel %vm1667_vm0, %v2713_v38, %v2497_v47 }
 0x198   : > { %v2495_v52 = vpop.permute.xlu0 %2494  ;;  %v5869_v4 = vpop.permute.xlu1 %1464  ;;  %v2227_v13 = vrot.slane %v2225_v15, 5  ;;  %v2230_v14 = vrot.slane %v2228_v36, 6 }
 0x199   : > { %v2733_v2 = vsel %vm1667_vm0, %v2712_v26, %v2495_v52  ;;  %v2221_v52 = vrot.slane %v2219_v59, 6 }
 0x19a   : > { %2551 = vrot.lane.b32.xlu0 %v5859_v30, %s4451_s4  ;;  %v2231_v26 = vor.u32 %v2230_v14, %v2227_v13 }
 0x19b   : > { %1482 = vrot.lane.b32.xlu1 %v3794_v11, %s4450_s25  ;;  %v5909_v11 = vld [vmem:[%s4625_s11 + $0xf8] sm:$0x7]  ;;  %v2222_v38 = vor.u32 %v2221_v52, %v2218_v21 }
 0x19c   : > { %v2536_v8 = vpop.permute.xlu0 %2535  ;;  %v5893_v40 = vpop.permute.xlu1 %1466  ;;  %v2238_v44 = vshll.u32 %v5909_v11, 16  ;;  %v2233_v21 = vrot.slane %v2231_v26, 4 }
 0x19d   : > { %v2765_v12 = vsel %vm1700_vm1, %v2733_v2, %v2536_v8  ;;  %v5936_v2 = vld [vmem:[%s4625_s11 + $0x100] sm:$0xf] }
 0x19e   : > { %2553 = vrot.lane.b32.xlu0 %v3877_v3, %s4451_s4  ;;  %v2235_v3 = vshrl.u32 %v5909_v11, 16  ;;  %v2792_v7 = vsel %vm1733_vm4, %v2765_v12, %v5869_v4  ;;  %v2253_v36 = vshrl.u32 %v5936_v2, 16  ;;  %v2256_v12 = vshll.u32 %v5936_v2, 16 }
 0x19f   : > { %2604 = vrot.lane.b32.xlu1 %v3882_v6, %s4452_s5 }
 0x1a0   : > { %v2538_v23 = vpop.permute.xlu0 %2537  ;;  %v2589_v20 = vpop.permute.xlu1 %2588  ;;  %v2237_v59 = vrot.slane %v2235_v3, 5 }
 0x1a1   : > { %v2767_v9 = vsel %vm1700_vm1, %v2735_v55, %v2538_v23  ;;  %v2240_v55 = vrot.slane %v2238_v44, 6 }
 0x1a2   : > { %2602 = vrot.lane.b32.xlu0 %v3876_v18, %s4452_s5  ;;  %v2793_v47 = vsel %vm1733_vm4, %v2767_v9, %v5893_v40 }
 0x1a3   : > { %2434 = vrot.lane.b32.xlu1 %v5656_v57, %s4446_s20  ;;  %v2817_v41 = vsel %vm1766_vm6, %v2793_v47, %v2589_v20  ;;  %v5933_v57 = vld [vmem:[%s4625_s11 + $0xfc] sm:$0xf]  ;;  %v2223_v20 = vrot.slane %v2222_v38, 4  ;;  %v2241_v47 = vor.u32 %v2240_v55, %v2237_v59  ;;  %v3878_v38 = vcombine.low %v5889_v46, %v5896_v58 }
 0x1a4   : > { %v2587_v6 = vpop.permute.xlu0 %2586  ;;  %v2419_v8 = vpop.permute.xlu1 %2418  ;;  %v2247_v15 = vshll.u32 %v5933_v57, 16 }
 0x1a5   : > { %v2815_v10 = vsel %vm1766_vm6, %v2792_v7, %v2587_v6  ;;  %v2255_v7 = vrot.slane %v2253_v36, 5  ;;  %v2258_v6 = vrot.slane %v2256_v12, 6  ;;  %v2232_v14 = vsel %vm4668_vm2, %v2223_v20, %v2231_v26 }
 0x1a6   : > { %2432 = vrot.lane.b32.xlu0 %v5668_v33, %s4446_s20  ;;  %4066 = vmatprep.mubr.msk.bf16.mxu1 %vm1819_vm7, %v2815_v10  ;;  %v2244_v33 = vshrl.u32 %v5933_v57, 16  ;;  %v2249_v3 = vrot.slane %v2247_v15, 6  ;;  %v2242_v10 = vsel %vm4668_vm2, %v2233_v21, %v2241_v47  ;;  %v2289_v36 = vrot.slane %v5909_v11, 7  ;;  %v4193_v21 = vld [vmem:[#allocation5] sm:$0xff]   ;;  %s4453_s20 = smov [#allocation7]  }
 0x1a7   : > { %4067 = vmatmul.mubr.msk.bf16.gmra.mrb[8].mxu1 %vm1819_vm7, %v2817_v41  ;;  %1375 = vrot.lane.b32.xlu1 %v5002_v29, %s4448_s9  ;;  %v5947_v29 = vld [vmem:[%s4625_s11 + $0x104] sm:$0x7]  ;;  %v2286_v41 = vrot.slane %v5896_v58, 7  ;;  %v3880_v15 = vcombine.low %v2232_v14, %v2242_v10  ;;  %v2259_v12 = vor.u32 %v2258_v6, %v2255_v7  ;;  %v2627_v58 = vsel %vm1519_vm12, %v5336_v5, %v5399_v43 }
 0x1a8   : > { %v2417_v28 = vpop.permute.xlu0 %2416  ;;  %v5938_v23 = vpop.permute.xlu1 %1359  ;;  %v2263_v44 = vshrl.u32 %v5947_v29, 16  ;;  %4014 = vmatprep.subr.bf16.mxu0 %v4193_v21 }
 0x1a9   : > { %v2288_v26 = vrot.slane %v2286_v41, 4  ;;  %4015 = vmatpush3.bf16.msra.mxu0 %v4193_v21 }
 0x1aa   : > { %2473 = vrot.lane.b32.xlu0 %v5767_v62, %s4447_s8  ;;  %v2246_v62 = vrot.slane %v2244_v33, 5  ;;  %v2265_v55 = vrot.slane %v2263_v44, 5  ;;  %v2261_v44 = vrot.slane %v2259_v12, 4 }
 0x1ab   : > { %1377 = vrot.lane.b32.xlu1 %v5846_v16, %s4448_s9  ;;  %v2266_v16 = vshll.u32 %v5947_v29, 16 }
 0x1ac   : > { %v2458_v9 = vpop.permute.xlu0 %2457  ;;  %v5951_v52 = vpop.permute.xlu1 %1361  ;;  %v2250_v59 = vor.u32 %v2249_v3, %v2246_v62  ;;  %v2659_v3 = vsel %vm1568_vm13, %v2627_v58, %v2419_v8  ;;  %v4194_v8 = vld [vmem:[#allocation5 + $0x8] sm:$0xff]   ;;  %v4195_v58 = vld [vmem:[#allocation5 + $0x10] ss:$0 sps:$4 sm:$0x33]  }
 0x1ad   : > { %v2268_v33 = vrot.slane %v2266_v16, 6  ;;  %4016 = vmatprep.subr.bf16.mxu0 %v4194_v8 }
 0x1ae   : > { %2475 = vrot.lane.b32.xlu0 %v5859_v30, %s4447_s8  ;;  %v2251_v47 = vrot.slane %v2250_v59, 4  ;;  %4017 = vmatpush3.bf16.msra.mxu0 %v4194_v8 }
 0x1af   : > { %2516 = vrot.lane.b32.xlu1 %v3876_v18, %s4449_s29  ;;  %v3835_v18 = vrot.slane %v5889_v46, 11  ;;  %v2269_v62 = vor.u32 %v2268_v33, %v2265_v55  ;;  %4090 = vmatprep.subr.msk.bf16.mxu0 %vm896_vm3, %v4195_v58 }
 0x1b0   : > { %v2460_v13 = vpop.permute.xlu0 %2459  ;;  %v2501_v30 = vpop.permute.xlu1 %2500  ;;  %v2260_v10 = vsel %vm4668_vm2, %v2251_v47, %v2259_v12 }
 0x1b1   : > { %v2287_v11 = vsel %vm5248_vm11, %v3835_v18, %v2286_v41  ;;  %v2691_v7 = vsel %vm1601_vm14, %v2659_v3, %v2460_v13  ;;  %v356_v41 = vrot.slane %v5367_v37, 5  ;;  %v2270_v37 = vsel %vm4668_vm2, %v2261_v44, %v2269_v62  ;;  %v4244_v3 = vld [vmem:[%s4625_s11 + $0x4c] sm:$0xf] }
 0x1b2   : > { %2514 = vrot.lane.b32.xlu0 %v5775_v60, %s4449_s29  ;;  %v2625_v60 = vsel %vm1519_vm12, %v5321_v17, %v5409_v61  ;;  %v2290_v17 = vsel %vm5248_vm11, %v2288_v26, %v2289_v36  ;;  %v2293_v13 = vrot.slane %v5936_v2, 7  ;;  %v3709_v18 = vrot.slane %v5374_v35, 9 }
 0x1b3   : > { %1382 = vrot.lane.b32.xlu1 %v5021_v19, %s4449_s29  ;;  %v3879_v19 = vcombine.low %v5933_v57, %v5936_v2  ;;  %v2657_v5 = vsel %vm1568_vm13, %v2625_v60, %v2417_v28  ;;  %v3883_v28 = vcombine.low %v2287_v11, %v2290_v17  ;;  %v359_v26 = vrot.slane %v5386_v1, 5 }
 0x1b4   : > { %v2499_v20 = vpop.permute.xlu0 %2498  ;;  %v5977_v46 = vpop.permute.xlu1 %1468  ;;  %v2689_v16 = vsel %vm1601_vm14, %v2657_v5, %v2458_v9  ;;  %v3881_v2 = vcombine.low %v2260_v10, %v2270_v37  ;;  %v3836_v35 = vrot.slane %v5933_v57, 11  ;;  %v2296_v1 = vrot.slane %v5947_v29, 7  ;;  %v4246_v10 = vld [vmem:[%s4625_s11 + $0x50] sm:$0x7] }
 0x1b5   : > { %7189 = vst [vmem:[#allocation81_spill] sm:$0xff] %v5977_v46  ;;  %v2714_v9 = vsel %vm1634_vm15, %v2689_v16, %v5938_v23  ;;  %v1854_v60 = vsel %vm896_vm3, %v4195_v58, 0  ;;  %v357_v57 = vsel %vm5165_vm8, %v3709_v18, %v356_v41  ;;  %v363_v5 = vrot.slane %v4244_v3, 5 }
 0x1b6   : > { %2555 = vrot.lane.b32.xlu0 %v3878_v38, %s4451_s4  ;;  %v2715_v38 = vsel %vm1634_vm15, %v2691_v7, %v5951_v52  ;;  %v2737_v55 = vsel %vm1667_vm0, %v2714_v9, %v2499_v20  ;;  %v2295_v20 = vrot.slane %v2293_v13, 4  ;;  %4019 = vmatpush3.bf16.msra.mxu0 %v1854_v60  ;;  %v2294_v17 = vsel %vm5248_vm11, %v3836_v35, %v2293_v13  ;;  %v7192_v9 = vld [vmem:[#allocation16_spill] sm:$0xff]  ;;  %v4247_v13 = vld [vmem:[%s4625_s11 + $0x58] sm:$0xf] }
 0x1b7   : > { %2565 = vrot.lane.b32.xlu1 %v3880_v15, %s4450_s25  ;;  %v2739_v59 = vsel %vm1667_vm0, %v2715_v38, %v2501_v30  ;;  %v358_v15 = vrot.slane %v356_v41, 4  ;;  %v4245_v41 = vld [vmem:[%s4625_s11 + $0x48] sm:$0xf]  ;;  %v366_v38 = vrot.slane %v4246_v10, 5  ;;  %v370_v18 = vrot.slane %v4247_v13, 5 }
 0x1b8   : > { %v2540_v6 = vpop.permute.xlu0 %2539  ;;  %v5992_v14 = vpop.permute.xlu1 %1470  ;;  %v2297_v44 = vsel %vm5248_vm11, %v2295_v20, %v2296_v1  ;;  %v3710_v8 = vrot.slane %v4245_v41, 9  ;;  %vm3517_vm2 = vcmask 60416  }
 0x1b9   : > { %7190 = vst [vmem:[#allocation82_spill] sm:$0xff] %v5992_v14  ;;  %v2769_v36 = vsel %vm1700_vm1, %v2737_v55, %v2540_v6  ;;  %v360_v47 = vsel %vm5165_vm8, %v358_v15, %v359_v26  ;;  %v4248_v26 = vld [vmem:[%s4625_s11 + $0x54] sm:$0xf]  ;;  %v372_v58 = vrot.slane %v370_v18, 4 }
 0x1ba   : > { %2557 = vrot.lane.b32.xlu0 %v3879_v19, %s4451_s4  ;;  %v2794_v19 = vsel %vm1733_vm4, %v2769_v36, %v5977_v46  ;;  %v6039_v16 = vcombine.low %v357_v57, %v360_v47  ;;  %v3711_v36 = vrot.slane %v4248_v26, 9  ;;  %v4250_v57 = vld [vmem:[%s4625_s11 + $0x64] sm:$0xf]  ;;  %v7198_v47 = vld [vmem:[#allocation21_spill] sm:$0xff] }
 0x1bb   : > { %1417 = vrot.lane.b32.xlu1 %v5221_v54, %s4451_s4 }
 0x1bc   : > { %v2542_v33 = vpop.permute.xlu0 %2541  ;;  %v2593_v25 = vpop.permute.xlu1 %2592  ;;  %v371_v20 = vsel %vm5165_vm8, %v3711_v36, %v370_v18  ;;  %v4252_v18 = vld [vmem:[%s4625_s11 + $0x68] sm:$0x7] }
 0x1bd   : > { %v2771_v12 = vsel %vm1700_vm1, %v2739_v59, %v2542_v33  ;;  %v364_v59 = vsel %vm5165_vm8, %v3710_v8, %v363_v5  ;;  %v7194_v33 = vld [vmem:[#allocation35_spill] sm:$0xff] }
 0x1be   : > { %1384 = vrot.lane.b32.xlu0 %v5060_v51, %s4449_s29  ;;  %v2795_v30 = vsel %vm1733_vm4, %v2771_v12, %v5992_v14  ;;  %v4277_v14 = vld [vmem:[%s4625_s11 + $0x18] sm:$0xf] }
 0x1bf   : > { %2606 = vrot.lane.b32.xlu1 %v3883_v28, %s4452_s5  ;;  %v2821_v21 = vsel %vm1766_vm6, %v2795_v30, %v2593_v25  ;;  %v365_v28 = vrot.slane %v363_v5, 4 }
 0x1c0   : > { %v2591_v11 = vpop.permute.xlu0 %2590  ;;  %v2423_v62 = vpop.permute.xlu1 %2422 }
 0x1c1   : > { %v2819_v29 = vsel %vm1766_vm6, %v2794_v19, %v2591_v11  ;;  %v367_v55 = vsel %vm5165_vm8, %v365_v28, %v366_v38  ;;  %v7197_v19 = vld [vmem:[#allocation18_spill] sm:$0xff] }
 0x1c2   : > { %2567 = vrot.lane.b32.xlu0 %v3881_v2, %s4450_s25  ;;  %4070 = vmatprep.mubr.msk.bf16.mxu1 %vm1819_vm7, %v2819_v29  ;;  %v6060_v12 = vcombine.low %v364_v59, %v367_v55  ;;  %v4249_v2 = vld [vmem:[%s4625_s11 + $0x5c] sm:$0x7] }
 0x1c3   : > { %4071 = vmatmul.mubr.msk.bf16.gmra.mrb[12].mxu1 %vm1819_vm7, %v2821_v21  ;;  %1452 = vrot.lane.b32.xlu1 %v7126_v22, %s4450_s25  ;;  %v3884_v22 = vcombine.low %v2294_v17, %v2297_v44  ;;  %v373_v35 = vrot.slane %v4249_v2, 5  ;;  %v7196_v21 = vld [vmem:[#allocation19_spill] sm:$0xff]  ;;  %v7199_v29 = vld [vmem:[#allocation14_spill] sm:$0xff]  ;;  %v7200_v44 = vld [vmem:[#allocation37_spill] sm:$0xff] }
 0x1c4   : > { %v2421_v7 = vpop.permute.xlu0 %2420  ;;  %v6041_v6 = vpop.permute.xlu1 %1363  ;;  %v2631_v11 = vsel %vm1519_vm12, %v7197_v19, %v7196_v21  ;;  %v2629_v3 = vsel %vm1519_vm12, %v7199_v29, %v7198_v47 }
 0x1c5   : > { %7191 = vst [vmem:[#allocation83_spill] sm:$0xff] %v6041_v6  ;;  %v374_v60 = vsel %vm5165_vm8, %v372_v58, %v373_v35  ;;  %v2663_v5 = vsel %vm1568_vm13, %v2631_v11, %v2423_v62  ;;  %v2661_v17 = vsel %vm1568_vm13, %v2629_v3, %v2421_v7  ;;  %v380_v62 = vrot.slane %v4252_v18, 5  ;;  %v4253_v58 = vld [vmem:[%s4625_s11 + $0x70] sm:$0xf]  ;;  %v4254_v3 = vld [vmem:[%s4625_s11 + $0x6c] sm:$0xf] }
 0x1c6   : > { %1419 = vrot.lane.b32.xlu0 %v6039_v16, %s4451_s4  ;;  %v6088_v10 = vcombine.low %v371_v20, %v374_v60  ;;  %v384_v2 = vrot.slane %v4253_v58, 5  ;;  %v4256_v18 = vld [vmem:[%s4625_s11 + $0x7c] sm:$0xf] }
 0x1c7   : > { %1454 = vrot.lane.b32.xlu1 %v7192_v9, %s4450_s25 }
 0x1c8   : > { %v2462_v27 = vpop.permute.xlu0 %2461  ;;  %v6049_v37 = vpop.permute.xlu1 %1365 }
 0x1c9   : > { %7193 = vst [vmem:[#allocation16_spill] sm:$0xff] %v6049_v37  ;;  %v2693_v41 = vsel %vm1601_vm14, %v2661_v17, %v2462_v27  ;;  %v386_v17 = vrot.slane %v384_v2, 4 }
 0x1ca   : > { %2608 = vrot.lane.b32.xlu0 %v3884_v22, %s4452_s5  ;;  %v4251_v22 = vld [vmem:[%s4625_s11 + $0x60] sm:$0xf]  ;;  %v2716_v27 = vsel %vm1634_vm15, %v2693_v41, %v6041_v6  ;;  %v4255_v41 = vld [vmem:[%s4625_s11 + $0x74] sm:$0x7] }
 0x1cb   : > { %1489 = vrot.lane.b32.xlu1 %v7194_v33, %s4452_s5  ;;  %v3712_v9 = vrot.slane %v4251_v22, 9 }
 0x1cc   : > { %v2464_v15 = vpop.permute.xlu0 %2463  ;;  %v2505_v25 = vpop.permute.xlu1 %2504 }
 0x1cd   : > { %v2695_v8 = vsel %vm1601_vm14, %v2663_v5, %v2464_v15  ;;  %v3713_v5 = vrot.slane %v4254_v3, 9 }
 0x1ce   : > { %1487 = vrot.lane.b32.xlu0 %v5060_v51, %s4452_s5  ;;  %v377_v51 = vrot.slane %v4250_v57, 5  ;;  %v2717_v7 = vsel %vm1634_vm15, %v2695_v8, %v6049_v37  ;;  %v387_v8 = vrot.slane %v4255_v41, 5  ;;  %v4261_v41 = vld [vmem:[%s4625_s11 + $0x8c] sm:$0x7] }
 0x1cf   : > { %1318 = vrot.lane.b32.xlu1 %v6060_v12, %s4447_s8  ;;  %v2743_v59 = vsel %vm1667_vm0, %v2717_v7, %v2505_v25 }
 0x1d0   : > { %v2503_v30 = vpop.permute.xlu0 %2502  ;;  %v6069_v1 = vpop.permute.xlu1 %1472  ;;  %v379_v13 = vrot.slane %v377_v51, 4  ;;  %v378_v35 = vsel %vm5165_vm8, %v3712_v9, %v377_v51  ;;  %v385_v9 = vsel %vm5165_vm8, %v3713_v5, %v384_v2 }
 0x1d1   : > { %7195 = vst [vmem:[#allocation35_spill] sm:$0xff] %v6069_v1  ;;  %v2741_v55 = vsel %vm1667_vm0, %v2716_v27, %v2503_v30  ;;  %v7202_v30 = vld [vmem:[#allocation36_spill] sm:$0xff] }
 0x1d2   : > { %1316 = vrot.lane.b32.xlu0 %v6039_v16, %s4447_s8  ;;  %v381_v20 = vsel %vm5165_vm8, %v379_v13, %v380_v62  ;;  %v388_v13 = vsel %vm5165_vm8, %v386_v17, %v387_v8  ;;  %v7204_v62 = vld [vmem:[#allocation39_spill] sm:$0xff]  ;;  %v401_v8 = vrot.slane %v4261_v41, 5  ;;  %v7213_v41 = vld [vmem:[#allocation41_spill] sm:$0xff] }
 0x1d3   : > { %1388 = vrot.lane.b32.xlu1 %v7200_v44, %s4449_s29  ;;  %v6120_v57 = vcombine.low %v378_v35, %v381_v20  ;;  %v6142_v27 = vcombine.low %v385_v9, %v388_v13  ;;  %v4259_v35 = vld [vmem:[%s4625_s11 + $0x88] sm:$0xf]  ;;  %v7209_v13 = vld [vmem:[#allocation22_spill] sm:$0xff] }
 0x1d4   : > { %v2544_v28 = vpop.permute.xlu0 %2543  ;;  %v6090_v38 = vpop.permute.xlu1 %1474  ;;  %v398_v20 = vrot.slane %v4259_v35, 5  ;;  %v7208_v9 = vld [vmem:[#allocation20_spill] sm:$0xff] }
 0x1d5   : > { %7201 = vst [vmem:[#allocation19_spill] sm:$0xff] %v6090_v38  ;;  %v2773_v26 = vsel %vm1700_vm1, %v2741_v55, %v2544_v28  ;;  %v4257_v55 = vld [vmem:[%s4625_s11 + $0x78] sm:$0xf] }
 0x1d6   : > { %1386 = vrot.lane.b32.xlu0 %v7194_v33, %s4449_s29  ;;  %v2796_v19 = vsel %vm1733_vm4, %v2773_v26, %v6069_v1  ;;  %v400_v17 = vrot.slane %v398_v20, 4  ;;  %v7226_v1 = vld [vmem:[#allocation28_spill] sm:$0xff] }
 0x1d7   : > { %1423 = vrot.lane.b32.xlu1 %v6088_v10, %s4451_s4 }
 0x1d8   : > { %v2546_v15 = vpop.permute.xlu0 %2545  ;;  %v2597_v33 = vpop.permute.xlu1 %2596 }
 0x1d9   : > { %v2775_v36 = vsel %vm1700_vm1, %v2743_v59, %v2546_v15  ;;  %v3714_v15 = vrot.slane %v4257_v55, 9  ;;  %v7211_v55 = vld [vmem:[#allocation23_spill] sm:$0xff] }
 0x1da   : > { %1421 = vrot.lane.b32.xlu0 %v6060_v12, %s4451_s4  ;;  %v2797_v25 = vsel %vm1733_vm4, %v2775_v36, %v6090_v38  ;;  %v4258_v36 = vld [vmem:[%s4625_s11 + $0x80] sm:$0x7] }
 0x1db   : > { %1493 = vrot.lane.b32.xlu1 %v7202_v30, %s4452_s5  ;;  %v2825_v60 = vsel %vm1766_vm6, %v2797_v25, %v2597_v33  ;;  %v394_v33 = vrot.slane %v4258_v36, 5 }
 0x1dc   : > { %v2595_v11 = vpop.permute.xlu0 %2594  ;;  %v2427_v29 = vpop.permute.xlu1 %2426 }
 0x1dd   : > { %v2823_v51 = vsel %vm1766_vm6, %v2796_v19, %v2595_v11  ;;  %v7206_v19 = vld [vmem:[#allocation38_spill] sm:$0xff]  ;;  %v4260_v11 = vld [vmem:[%s4625_s11 + $0x84] sm:$0xf] }
 0x1de   : > { %1491 = vrot.lane.b32.xlu0 %v7200_v44, %s4452_s5  ;;  %4074 = vmatprep.mubr.msk.bf16.mxu1 %vm1819_vm7, %v2823_v51  ;;  %v391_v44 = vrot.slane %v4256_v18, 5  ;;  %v3715_v51 = vrot.slane %v4260_v11, 9  ;;  %v2635_v18 = vsel %vm1519_vm12, %v7209_v13, %v7208_v9 }
 0x1df   : > { %4075 = vmatmul.mubr.msk.bf16.gmra.mrb[16].mxu1 %vm1819_vm7, %v2825_v60  ;;  %1322 = vrot.lane.b32.xlu1 %v6120_v57, %s4447_s8 }
 0x1e0   : > { %v2425_v28 = vpop.permute.xlu0 %2424  ;;  %v393_v26 = vrot.slane %v391_v44, 4  ;;  %v392_v25 = vsel %vm5165_vm8, %v3714_v15, %v391_v44  ;;  %v7210_v44 = vld [vmem:[#allocation43_spill] sm:$0xff]  ;;  %v399_v11 = vsel %vm5165_vm8, %v3715_v51, %v398_v20 }
 0x1e1   : > { %v6131_v22 = vpop.permute.xlu1 %1367  ;;  %v2633_v15 = vsel %vm1519_vm12, %v7211_v55, %v7210_v44 }
 0x1e2   : > { %7203 = vst [vmem:[#allocation18_spill] sm:$0xff] %v6131_v22  ;;  %1320 = vrot.lane.b32.xlu0 %v6088_v10, %s4447_s8  ;;  %v395_v60 = vsel %vm5165_vm8, %v393_v26, %v394_v33  ;;  %v2667_v26 = vsel %vm1568_vm13, %v2635_v18, %v2427_v29  ;;  %v2665_v36 = vsel %vm1568_vm13, %v2633_v15, %v2425_v28  ;;  %v4262_v29 = vld [vmem:[%s4625_s11 + $0x94] sm:$0xf]  ;;  %v4263_v15 = vld [vmem:[%s4625_s11 + $0x90] sm:$0xf] }
 0x1e3   : > { %1392 = vrot.lane.b32.xlu1 %v7204_v62, %s4449_s29  ;;  %v6162_v3 = vcombine.low %v392_v25, %v395_v60  ;;  %v405_v28 = vrot.slane %v4262_v29, 5 }
 0x1e4   : > { %v2466_v7 = vpop.permute.xlu0 %2465 }
 0x1e5   : > { %v6144_v59 = vpop.permute.xlu1 %1369  ;;  %v2697_v33 = vsel %vm1601_vm14, %v2665_v36, %v2466_v7  ;;  %v407_v36 = vrot.slane %v405_v28, 4 }
 0x1e6   : > { %7205 = vst [vmem:[#allocation21_spill] sm:$0xff] %v6144_v59  ;;  %1390 = vrot.lane.b32.xlu0 %v7202_v30, %s4449_s29 }
 0x1e7   : > { %1427 = vrot.lane.b32.xlu1 %v6142_v27, %s4451_s4 }
 0x1e8   : > { %v2468_v58 = vpop.permute.xlu0 %2467 }
 0x1e9   : > { %v2509_v2 = vpop.permute.xlu1 %2508  ;;  %v2699_v35 = vsel %vm1601_vm14, %v2667_v26, %v2468_v58  ;;  %v2718_v58 = vsel %vm1634_vm15, %v2697_v33, %v6131_v22  ;;  %v3716_v26 = vrot.slane %v4263_v15, 9  ;;  %v4264_v33 = vld [vmem:[%s4625_s11 + $0x98] sm:$0x7] }
 0x1ea   : > { %1425 = vrot.lane.b32.xlu0 %v6120_v57, %s4451_s4  ;;  %v2719_v7 = vsel %vm1634_vm15, %v2699_v35, %v6144_v59  ;;  %v408_v35 = vrot.slane %v4264_v33, 5 }
 0x1eb   : > { %1497 = vrot.lane.b32.xlu1 %v7206_v19, %s4452_s5  ;;  %v2747_v20 = vsel %vm1667_vm0, %v2719_v7, %v2509_v2  ;;  %v4265_v7 = vld [vmem:[%s4625_s11 + $0xa0] sm:$0xf] }
 0x1ec   : > { %v2507_v30 = vpop.permute.xlu0 %2506 }
 0x1ed   : > { %v6164_v5 = vpop.permute.xlu1 %1476  ;;  %v2745_v51 = vsel %vm1667_vm0, %v2718_v58, %v2507_v30  ;;  %v412_v58 = vrot.slane %v4265_v7, 5 }
 0x1ee   : > { %7207 = vst [vmem:[#allocation14_spill] sm:$0xff] %v6164_v5  ;;  %1495 = vrot.lane.b32.xlu0 %v7204_v62, %s4452_s5  ;;  %v402_v62 = vsel %vm5165_vm8, %v400_v17, %v401_v8 }
 0x1ef   : > { %1326 = vrot.lane.b32.xlu1 %v6162_v3, %s4447_s8  ;;  %v6198_v8 = vcombine.low %v399_v11, %v402_v62  ;;  %v414_v15 = vrot.slane %v412_v58, 4 }
 0x1f0   : > { %v2548_v25 = vpop.permute.xlu0 %2547 }
 0x1f1   : > { %v6181_v60 = vpop.permute.xlu1 %1478  ;;  %v2777_v13 = vsel %vm1700_vm1, %v2745_v51, %v2548_v25  ;;  %v7214_v51 = vld [vmem:[#allocation40_spill] sm:$0xff] }
 0x1f2   : > { %7212 = vst [vmem:[#allocation37_spill] sm:$0xff] %v6181_v60  ;;  %1324 = vrot.lane.b32.xlu0 %v6142_v27, %s4447_s8  ;;  %v2798_v25 = vsel %vm1733_vm4, %v2777_v13, %v6164_v5  ;;  %v7221_v5 = vld [vmem:[#allocation33_spill] sm:$0xff] }
 0x1f3   : > { %1396 = vrot.lane.b32.xlu1 %v7213_v41, %s4449_s29 }
 0x1f4   : > { %v2550_v17 = vpop.permute.xlu0 %2549 }
 0x1f5   : > { %v2779_v18 = vsel %vm1700_vm1, %v2747_v20, %v2550_v17  ;;  %v2601_v55 = vpop.permute.xlu1 %2600  ;;  %v409_v20 = vsel %vm5165_vm8, %v407_v36, %v408_v35 }
 0x1f6   : > { %1394 = vrot.lane.b32.xlu0 %v7206_v19, %s4449_s29  ;;  %v2799_v2 = vsel %vm1733_vm4, %v2779_v18, %v6181_v60  ;;  %v406_v19 = vsel %vm5165_vm8, %v3716_v26, %v405_v28  ;;  %v4266_v28 = vld [vmem:[%s4625_s11 + $0x9c] sm:$0xf]  ;;  %v4267_v26 = vld [vmem:[%s4625_s11 + $0xa4] sm:$0x7] }
 0x1f7   : > { %1431 = vrot.lane.b32.xlu1 %v6198_v8, %s4451_s4  ;;  %v2829_v30 = vsel %vm1766_vm6, %v2799_v2, %v2601_v55  ;;  %v6225_v13 = vcombine.low %v406_v19, %v409_v20  ;;  %v3717_v55 = vrot.slane %v4266_v28, 9  ;;  %v415_v36 = vrot.slane %v4267_v26, 5  ;;  %v7220_v20 = vld [vmem:[#allocation70_spill] sm:$0xff] }
 0x1f8   : > { %v2599_v11 = vpop.permute.xlu0 %2598  ;;  %v3718_v28 = vrot.slane %v7220_v20, 9  ;;  %v7225_v20 = vld [vmem:[#allocation45_spill] sm:$0xff] }
 0x1f9   : > { %v2827_v62 = vsel %vm1766_vm6, %v2798_v25, %v2599_v11  ;;  %v2431_v29 = vpop.permute.xlu1 %2430  ;;  %7215 = vst [vmem:[#allocation36_spill] sm:$0xff] %v6225_v13  ;;  %v413_v2 = vsel %vm5165_vm8, %v3717_v55, %v412_v58  ;;  %v4268_v25 = vld [vmem:[%s4625_s11 + $0xac] sm:$0xf]  ;;  %v422_v58 = vrot.slane %v7221_v5, 5  ;;  %v2637_v5 = vsel %vm1519_vm12, %v7226_v1, %v7225_v20 }
 0x1fa   : > { %1429 = vrot.lane.b32.xlu0 %v6162_v3, %s4451_s4  ;;  %4078 = vmatprep.mubr.msk.bf16.mxu1 %vm1819_vm7, %v2827_v62  ;;  %v419_v11 = vrot.slane %v4268_v25, 5 }
 0x1fb   : > { %4079 = vmatmul.mubr.msk.bf16.gmra.mrb[20].mxu1 %vm1819_vm7, %v2829_v30  ;;  %1501 = vrot.lane.b32.xlu1 %v7214_v51, %s4452_s5  ;;  %v416_v30 = vsel %vm5165_vm8, %v414_v15, %v415_v36  ;;  %v4269_v15 = vld [vmem:[%s4625_s11 + $0xb8] sm:$0xf] }
 0x1fc   : > { %v2429_v17 = vpop.permute.xlu0 %2428  ;;  %v6246_v7 = vcombine.low %v413_v2, %v416_v30  ;;  %v421_v26 = vrot.slane %v419_v11, 4  ;;  %v426_v36 = vrot.slane %v4269_v15, 5  ;;  %v7223_v2 = vld [vmem:[#allocation44_spill] sm:$0xff]  ;;  %v7224_v30 = vld [vmem:[#allocation66_spill] sm:$0xff] }
 0x1fd   : > { %v6227_v18 = vpop.permute.xlu1 %1371  ;;  %v2639_v60 = vsel %vm1519_vm12, %v7224_v30, %v7223_v2  ;;  %v2669_v22 = vsel %vm1568_vm13, %v2637_v5, %v2429_v17  ;;  %v7227_v30 = vld [vmem:[#allocation42_spill] sm:$0xff] }
 0x1fe   : > { %7216 = vst [vmem:[#allocation39_spill] sm:$0xff] %v6227_v18  ;;  %1499 = vrot.lane.b32.xlu0 %v7213_v41, %s4452_s5  ;;  %v7218_v41 = vld [vmem:[#allocation25_spill] sm:$0xff]  ;;  %7219 = vst [vmem:[#allocation20_spill] sm:$0xff] %v6246_v7  ;;  %v423_v38 = vsel %vm5165_vm8, %v421_v26, %v422_v58  ;;  %v2671_v15 = vsel %vm1568_vm13, %v2639_v60, %v2431_v29  ;;  %v428_v58 = vrot.slane %v426_v36, 4 }
 0x1ff   : > { %1330 = vrot.lane.b32.xlu1 %v6225_v13, %s4447_s8 }
 0x200   : > { %v2470_v33 = vpop.permute.xlu0 %2469 }
 0x201   : > { %v6235_v35 = vpop.permute.xlu1 %1373  ;;  %v2701_v59 = vsel %vm1601_vm14, %v2669_v22, %v2470_v33 }
 0x202   : > { %7217 = vst [vmem:[#allocation38_spill] sm:$0xff] %v6235_v35  ;;  %1328 = vrot.lane.b32.xlu0 %v6198_v8, %s4447_s8  ;;  %v2720_v22 = vsel %vm1634_vm15, %v2701_v59, %v6227_v18  ;;  %v7230_v59 = vld [vmem:[#allocation76_spill] sm:$0xff]  ;;  %v7242_v18 = vld [vmem:[#allocation47_spill] sm:$0xff] }
 0x203   : > { %1400 = vrot.lane.b32.xlu1 %v7218_v41, %s4449_s29 }
 0x204   : > { %v2472_v62 = vpop.permute.xlu0 %2471 }
 0x205   : > { %v2513_v19 = vpop.permute.xlu1 %2512  ;;  %v2703_v1 = vsel %vm1601_vm14, %v2671_v15, %v2472_v62 }
 0x206   : > { %1398 = vrot.lane.b32.xlu0 %v7214_v51, %s4449_s29  ;;  %v420_v51 = vsel %vm5165_vm8, %v3718_v28, %v419_v11  ;;  %v4270_v28 = vld [vmem:[%s4625_s11 + $0xb4] sm:$0xf]  ;;  %v2721_v60 = vsel %vm1634_vm15, %v2703_v1, %v6235_v35  ;;  %v7243_v35 = vld [vmem:[#allocation71_spill] sm:$0xff] }
 0x207   : > { %1435 = vrot.lane.b32.xlu1 %v6246_v7, %s4451_s4  ;;  %v6275_v2 = vcombine.low %v420_v51, %v423_v38  ;;  %v3719_v26 = vrot.slane %v4270_v28, 9  ;;  %v2751_v38 = vsel %vm1667_vm0, %v2721_v60, %v2513_v19  ;;  %v433_v51 = vrot.slane %v7230_v59, 5 }
 0x208   : > { %v2511_v55 = vpop.permute.xlu0 %2510 }
 0x209   : > { %v6255_v25 = vpop.permute.xlu1 %1480  ;;  %7228 = vst [vmem:[#allocation43_spill] sm:$0xff] %v6275_v2  ;;  %v2749_v29 = vsel %vm1667_vm0, %v2720_v22, %v2511_v55  ;;  %v7231_v55 = vld [vmem:[#allocation27_spill] sm:$0xff]  ;;  %v435_v60 = vrot.slane %v433_v51, 4  ;;  %v7234_v22 = vld [vmem:[#allocation80_spill] sm:$0xff] }
 0x20a   : > { %7222 = vst [vmem:[#allocation22_spill] sm:$0xff] %v6255_v25  ;;  %1433 = vrot.lane.b32.xlu0 %v6225_v13, %s4451_s4  ;;  %v4271_v13 = vld [vmem:[%s4625_s11 + $0xbc] sm:$0x7] }
 0x20b   : > { %1505 = vrot.lane.b32.xlu1 %v7227_v30, %s4452_s5  ;;  %v429_v46 = vrot.slane %v4271_v13, 5 }
 0x20c   : > { %v2552_v20 = vpop.permute.xlu0 %2551 }
 0x20d   : > { %v6277_v11 = vpop.permute.xlu1 %1482  ;;  %v2781_v33 = vsel %vm1700_vm1, %v2749_v29, %v2552_v20  ;;  %v430_v5 = vsel %vm5165_vm8, %v428_v58, %v429_v46 }
 0x20e   : > { %7229 = vst [vmem:[#allocation23_spill] sm:$0xff] %v6277_v11  ;;  %1503 = vrot.lane.b32.xlu0 %v7218_v41, %s4452_s5  ;;  %v427_v41 = vsel %vm5165_vm8, %v3719_v26, %v426_v36  ;;  %v2800_v15 = vsel %vm1733_vm4, %v2781_v33, %v6255_v25  ;;  %v7233_v26 = vld [vmem:[#allocation79_spill] sm:$0xff]  ;;  %v7236_v33 = vld [vmem:[#allocation74_spill] sm:$0xff] }
 0x20f   : > { %1334 = vrot.lane.b32.xlu1 %v6275_v2, %s4447_s8  ;;  %v6307_v1 = vcombine.low %v427_v41, %v430_v5  ;;  %v3720_v58 = vrot.slane %v7233_v26, 9  ;;  %v1016_v26 = vrot.slane %v5740_v50, 5 }
 0x210   : > { %v2554_v17 = vpop.permute.xlu0 %2553 }
 0x211   : > { %v2783_v13 = vsel %vm1700_vm1, %v2751_v38, %v2554_v17  ;;  %v2605_v62 = vpop.permute.xlu1 %2604  ;;  %7232 = vst [vmem:[#allocation41_spill] sm:$0xff] %v6307_v1  ;;  %v436_v38 = vrot.slane %v7234_v22, 5  ;;  %v1018_v50 = vrot.slane %v1016_v26, 4 }
 0x212   : > { %1332 = vrot.lane.b32.xlu0 %v6246_v7, %s4447_s8  ;;  %v2801_v19 = vsel %vm1733_vm4, %v2783_v13, %v6277_v11  ;;  %v440_v13 = vrot.slane %v7236_v33, 5  ;;  %v3738_v33 = vrot.slane %v5737_v42, 9  ;;  %v1054_v11 = vrot.slane %v5780_v48, 6 }
 0x213   : > { %1404 = vrot.lane.b32.xlu1 %v7231_v55, %s4449_s29  ;;  %v2833_v20 = vsel %vm1766_vm6, %v2801_v19, %v2605_v62  ;;  %v434_v62 = vsel %vm5165_vm8, %v3720_v58, %v433_v51  ;;  %v437_v41 = vsel %vm5165_vm8, %v435_v60, %v436_v38 }
 0x214   : > { %v2603_v36 = vpop.permute.xlu0 %2602  ;;  %v6331_v59 = vcombine.low %v434_v62, %v437_v41  ;;  %v1019_v62 = vrot.slane %v5780_v48, 5  ;;  %v1017_v42 = vsel %vm5165_vm8, %v3738_v33, %v1016_v26  ;;  %v7244_v48 = vld [vmem:[#allocation29_spill] sm:$0xff] }
 0x215   : > { %v2831_v46 = vsel %vm1766_vm6, %v2800_v15, %v2603_v36  ;;  %v6310_v28 = vpop.permute.xlu1 %2434  ;;  %v442_v36 = vrot.slane %v440_v13, 4 }
 0x216   : > { %1402 = vrot.lane.b32.xlu0 %v7227_v30, %s4449_s29  ;;  %4082 = vmatprep.mubr.msk.bf16.mxu1 %vm1819_vm7, %v2831_v46  ;;  %v7237_v30 = vld [vmem:[#allocation26_spill] sm:$0xff]  ;;  %7238 = vst [vmem:[#allocation25_spill] sm:$0xff] %v6331_v59 }
 0x217   : > { %4083 = vmatmul.mubr.msk.bf16.gmra.mrb[24].mxu1 %vm1819_vm7, %v2833_v20  ;;  %1439 = vrot.lane.b32.xlu1 %v6307_v1, %s4451_s4  ;;  %v7239_v20 = vld [vmem:[#allocation77_spill] sm:$0xff]  ;;  %v7240_v46 = vld [vmem:[#allocation78_spill] sm:$0xff] }
 0x218   : > { %v2433_v29 = vpop.permute.xlu0 %2432  ;;  %v3721_v15 = vrot.slane %v7239_v20, 9  ;;  %v443_v51 = vrot.slane %v7240_v46, 5  ;;  %v4272_v20 = vld [vmem:[%s4625_s11 + $0xdc] sm:$0xf] }
 0x219   : > { %v6320_v17 = vpop.permute.xlu1 %1375  ;;  %v1051_v46 = vrot.slane %v4272_v20, 6  ;;  %v4273_v20 = vld [vmem:[%s4625_s11 + $0xd8] sm:$0xf] }
 0x21a   : > { %7235 = vst [vmem:[#allocation40_spill] sm:$0xff] %v6320_v17  ;;  %1437 = vrot.lane.b32.xlu0 %v6275_v2, %s4451_s4  ;;  %v441_v22 = vsel %vm5165_vm8, %v3721_v15, %v440_v13  ;;  %v444_v38 = vsel %vm5165_vm8, %v442_v36, %v443_v51  ;;  %v1020_v36 = vsel %vm5165_vm8, %v1018_v50, %v1019_v62  ;;  %v1061_v51 = vrot.slane %v5788_v34, 5 }
 0x21b   : > { %1509 = vrot.lane.b32.xlu1 %v7237_v30, %s4452_s5  ;;  %v6357_v13 = vcombine.low %v441_v22, %v444_v38  ;;  %v3739_v22 = vrot.slane %v4273_v20, 10  ;;  %v1053_v38 = vrot.slane %v1051_v46, 4  ;;  %v3790_v34 = vcombine.low %v1017_v42, %v1020_v36  ;;  %v4276_v36 = vld [vmem:[%s4625_s11 + $0x20] sm:$0x7] }
 0x21c   : > { %v2474_v5 = vpop.permute.xlu0 %2473  ;;  %v3740_v50 = vrot.slane %v5783_v49, 9  ;;  %v1063_v62 = vrot.slane %v1061_v51, 4  ;;  %v3706_v49 = vrot.slane %v4277_v14, 9 }
 0x21d   : > { %v6333_v19 = vpop.permute.xlu1 %1377 }
 0x21e   : > { %1507 = vrot.lane.b32.xlu0 %v7231_v55, %s4452_s5  ;;  %v7241_v55 = vld [vmem:[#allocation30_spill] sm:$0xff] }
 0x21f   : > { %1338 = vrot.lane.b32.xlu1 %v6331_v59, %s4447_s8 }
 0x220   : > { %v6342_v58 = vpop.permute.xlu0 %2475 }
 0x221   : > { %v6344_v60 = vpop.permute.xlu1 %2516 }
 0x222   : > { %1336 = vrot.lane.b32.xlu0 %v6307_v1, %s4447_s8  ;;  %v4274_v1 = vld [vmem:[%s4625_s11 + $0x1c] sm:$0xf] }
 0x223   : > { %1408 = vrot.lane.b32.xlu1 %v7241_v55, %s4449_s29  ;;  %v335_v7 = vrot.slane %v4274_v1, 5  ;;  %v7249_v1 = vld [vmem:[#allocation15_spill] sm:$0xff] }
 0x224   : > { %v2515_v41 = vpop.permute.xlu0 %2514 }
 0x225   : > { %v6359_v15 = vpop.permute.xlu1 %1382 }
 0x226   : > { %1406 = vrot.lane.b32.xlu0 %v7237_v30, %s4449_s29  ;;  %v2641_v30 = vsel %vm1519_vm12, %v7243_v35, %v7242_v18  ;;  %v1064_v35 = vrot.slane %v5808_v32, 5  ;;  %v1052_v18 = vsel %vm4994_vm5, %v3739_v22, %v1051_v46  ;;  %v1062_v22 = vsel %vm5165_vm8, %v3740_v50, %v1061_v51 }
 0x227   : > { %1443 = vrot.lane.b32.xlu1 %v6357_v13, %s4451_s4  ;;  %v2673_v26 = vsel %vm1568_vm13, %v2641_v30, %v2433_v29  ;;  %v1055_v29 = vsel %vm4994_vm5, %v1053_v38, %v1054_v11  ;;  %v4275_v30 = vld [vmem:[%s4625_s11 + $0xe8] sm:$0xf] }
 0x228   : > { %v2556_v25 = vpop.permute.xlu0 %2555  ;;  %v2705_v33 = vsel %vm1601_vm14, %v2673_v26, %v2474_v5  ;;  %v337_v5 = vrot.slane %v335_v7, 4  ;;  %v338_v26 = vrot.slane %v4276_v36, 5  ;;  %v3792_v11 = vcombine.low %v1052_v18, %v1055_v29  ;;  %v4278_v36 = vld [vmem:[%s4625_s11 + $0xe4] sm:$0xf]  ;;  %s4337_s11 = scalar_lea.vmem %s6865_s28, 2048 }
 0x229   : > { %v2566_v2 = vpop.permute.xlu1 %2565  ;;  %v2722_v6 = vsel %vm1634_vm15, %v2705_v33, %v6320_v17  ;;  %v1065_v38 = vsel %vm5165_vm8, %v1063_v62, %v1064_v35  ;;  %v3741_v37 = vrot.slane %v4278_v36, 10  ;;  %v1099_v17 = vrot.slane %v5808_v32, 6  ;;  %v7246_v32 = vld [vmem:[#allocation46_spill] sm:$0xff]  ;;  %v7252_v36 = vld [vmem:[#allocation24_spill] sm:$0xff]  ;;  %p4338_p4 = scmp.ne.s32.totalorder %s6865_s28, %s4337_s11 }
 0x22a   : > { %1441 = vrot.lane.b32.xlu0 %v6331_v59, %s4451_s4  ;;  %v1096_v59 = vrot.slane %v4275_v30, 6  ;;  %v2753_v46 = vsel %vm1667_vm0, %v2722_v6, %v2515_v41  ;;  %v339_v41 = vsel %vm5165_vm8, %v337_v5, %v338_v26  ;;  %v3793_v51 = vcombine.low %v1062_v22, %v1065_v38  ;;  %v7250_v22 = vld [vmem:[#allocation49_spill] sm:$0xff]  ;;  %v7251_v38 = vld [vmem:[#allocation52_spill] sm:$0xff] }
 0x22b   : > { %1513 = vrot.lane.b32.xlu1 %v7244_v48, %s4452_s5  ;;  %v2785_v30 = vsel %vm1700_vm1, %v2753_v46, %v2556_v25  ;;  %v336_v25 = vsel %vm5165_vm8, %v3706_v49, %v335_v7  ;;  %v7247_v49 = vld [vmem:[#allocation17_spill] sm:$0xff]  ;;  %p4339_p6 = pnand %p4338_p4, %p4570_p12 }
 0x22c   : > { %v2558_v20 = vpop.permute.xlu0 %2557  ;;  %v1098_v33 = vrot.slane %v1096_v59, 4  ;;  %v1097_v62 = vsel %vm4994_vm5, %v3741_v37, %v1096_v59  ;;  %v3742_v29 = vcombine.low %v336_v25, %v339_v41  ;;  %v7248_v37 = vld [vmem:[#allocation31_spill] sm:$0xff]  ;;  %v7254_v41 = vld [vmem:[#allocation69_spill] sm:$0xff] }
 0x22d   : > { %v6389_v42 = vpop.permute.xlu1 %1417  ;;  %v1525_v59 = vsel %vm1519_vm12, %v7248_v37, %v7247_v49  ;;  %p4340_p8 = pneg %p4339_p6 }
 0x22e   : > { %1511 = vrot.lane.b32.xlu0 %v7241_v55, %s4452_s5  ;;  %v2803_v55 = vsel %vm1733_vm4, %v2785_v30, %v2566_v2  ;;  %v2643_v2 = vsel %vm1519_vm12, %v5660_v63, %v7246_v32  ;;  %v1100_v35 = vsel %vm4994_vm5, %v1098_v33, %v1099_v17  ;;  %v1522_v46 = vsel %vm1519_vm12, %v3742_v29, %v7249_v1 }
 0x22f   : > { %1342 = vrot.lane.b32.xlu1 %v3790_v34, %s4447_s8  ;;  %v2675_v45 = vsel %vm1568_vm13, %v2643_v2, %v6310_v28  ;;  %v3795_v63 = vcombine.low %v1097_v62, %v1100_v35  ;;  %v1570_v30 = vsel %vm1568_vm13, %v1522_v46, %v7251_v38  ;;  %v1528_v1 = vsel %vm1519_vm12, %v5221_v54, %v5361_v24  ;;  %v7256_v46 = vld [vmem:[#allocation51_spill] sm:$0xff]  ;;  %v7259_v24 = vld [vmem:[#allocation73_spill] sm:$0xff] }
 0x230   : > { %v1385_v14 = vpop.permute.xlu0 %1384  ;;  %v2707_v5 = vsel %vm1601_vm14, %v2675_v45, %v6342_v58  ;;  %v1572_v58 = vsel %vm1568_vm13, %v1525_v59, %v7250_v22 }
 0x231   : > { %v2607_v6 = vpop.permute.xlu1 %2606  ;;  %v2723_v17 = vsel %vm1634_vm15, %v2707_v5, %v6333_v19  ;;  %v1605_v33 = vsel %vm1601_vm14, %v1572_v58, %v7252_v36  ;;  %v7257_v58 = vld [vmem:[#allocation54_spill] sm:$0xff]  ;;  %v7258_v36 = vld [vmem:[#allocation75_spill] sm:$0xff] }
 0x232   : > { %1340 = vrot.lane.b32.xlu0 %v6357_v13, %s4447_s8  ;;  %v2835_v18 = vsel %vm1766_vm6, %v2803_v55, %v2607_v6  ;;  %v7253_v6 = vld [vmem:[#allocation67_spill] sm:$0xff]  ;;  %v1638_v25 = vsel %vm1634_vm15, %v1605_v33, %v7254_v41  ;;  %s4341_s8 = sshll.u32 %s4453_s20, 4  ;;  %s4342_s8 = int_to_ptr.vmem [resolvable:$false] %s4341_s8 }
 0x233   : > { %1412 = vrot.lane.b32.xlu1 %v3792_v11, %s4449_s29  ;;  %4086 = vmatprep.mubr.msk.bf16.mxu1 %vm1819_vm7, %v2835_v18  ;;  %v1603_v18 = vsel %vm1601_vm14, %v1570_v30, %v7253_v6  ;;  %v1671_v62 = vsel %vm1667_vm0, %v1638_v25, %v1385_v14  ;;  %s4343_s9 = scalar_lea.vmem %s4342_s8, 4096  ;;  %p4344_p10 = scmp.lt.s32.totalorder %s6865_s28, %s4342_s8 }
 0x234   : > { %v2568_v50 = vpop.permute.xlu0 %2567  ;;  %p4345_p11 = scmp.lt.s32.totalorder %s4343_s9, %s4337_s11 }
 0x235   : > { %v1453_v7 = vpop.permute.xlu1 %1452 }
 0x236   : > { %1410 = vrot.lane.b32.xlu0 %v7244_v48, %s4449_s29  ;;  %v2755_v48 = vsel %vm1667_vm0, %v2723_v17, %v6344_v60  ;;  %p4346_p3 = por %p4345_p11, %p4344_p10 }
 0x237   : > { %1447 = vrot.lane.b32.xlu1 %v3793_v51, %s4451_s4  ;;  %v2787_v55 = vsel %vm1700_vm1, %v2755_v48, %v2558_v20  ;;  %v1574_v48 = vsel %vm1568_vm13, %v1528_v1, %v7257_v58 }
 0x238   : > { %v1420_v26 = vpop.permute.xlu0 %1419  ;;  %v2805_v60 = vsel %vm1733_vm4, %v2787_v55, %v2568_v50  ;;  %p4347_p7 = pnand %p4346_p3, %p4340_p8 }
 0x239   : > { %v1455_v28 = vpop.permute.xlu1 %1454  ;;  %v1704_v29 = vsel %vm1700_vm1, %v1671_v62, %v1420_v26  ;;  %v7261_v62 = vld [vmem:[#allocation72_spill] sm:$0xff] }
 0x23a   : > { %1445 = vrot.lane.b32.xlu0 %v3790_v34, %s4451_s4  ;;  %v7255_v34 = vld [vmem:[#allocation68_spill] sm:$0xff]  ;;  %v1737_v5 = vsel %vm1733_vm4, %v1704_v29, %v1455_v28 }
 0x23b   : > { %1517 = vrot.lane.b32.xlu1 %v3795_v63, %s4452_s5  ;;  %v1636_v2 = vsel %vm1634_vm15, %v1603_v18, %v7255_v34 }
 0x23c   : > { %v2609_v51 = vpop.permute.xlu0 %2608  ;;  %v1669_v20 = vsel %vm1667_vm0, %v1636_v2, %v6359_v15 }
 0x23d   : > { %v2837_v35 = vsel %vm1766_vm6, %v2805_v60, %v2609_v51  ;;  %v1490_v45 = vpop.permute.xlu1 %1489  ;;  %v1702_v50 = vsel %vm1700_vm1, %v1669_v20, %v6389_v42  ;;  %v7260_v51 = vld [vmem:[#allocation32_spill] sm:$0xff] }
 0x23e   : > { %1515 = vrot.lane.b32.xlu0 %v3792_v11, %s4452_s5  ;;  %4087 = vmatmul.mubr.msk.bf16.gmra.mrb[28].mxu1 %vm1819_vm7, %v2837_v35  ;;  %v1735_v63 = vsel %vm1733_vm4, %v1702_v50, %v1453_v7  ;;  %v1770_v14 = vsel %vm1766_vm6, %v1737_v5, %v1490_v45  ;;  %v1531_v7 = vsel %vm1519_vm12, %v6039_v16, %v5380_v0 }
 0x23f   : > { %v1576_v22 = vsel %vm1568_vm13, %v1531_v7, %v7256_v46  ;;  %v1537_v5 = vsel %vm1519_vm12, %v6088_v10, %v5399_v43 }
 0x240   : > { %v1488_v49 = vpop.permute.xlu0 %1487 }
 0x241   : > { %v1768_v37 = vsel %vm1766_vm6, %v1735_v63, %v1488_v49  ;;  %v1319_v59 = vpop.permute.xlu1 %1318  ;;  %v7262_v49 = vld [vmem:[#allocation53_spill] sm:$0xff] }
 0x242   : > { %4020 = vmatprep.mubr.msk.bf16.mxu0 %vm1819_vm7, %v1768_v37  ;;  %v4060_v15 = vpop.f32.mrb[0].mxu1  ;;  %v1609_v38 = vsel %vm1601_vm14, %v1576_v22, %v1319_v59  ;;  %v1580_v37 = vsel %vm1568_vm13, %v1537_v5, %v7262_v49  ;;  %v7263_v59 = vld [vmem:[#allocation56_spill] sm:$0xff]  ;;  %v7266_v49 = vld [vmem:[#allocation57_spill] sm:$0xff] }
 0x243   : > { %4021 = vmatmul.mubr.msk.bf16.vlgmr.msra.gmra.mrb[0].mxu0 %vm1819_vm7, %v1770_v14  ;;  %v2928_v11 = vpop.f32.mrb[1].mxu1  ;;  %v1642_v33 = vsel %vm1634_vm15, %v1609_v38, %v7258_v36  ;;  %v1534_v14 = vsel %vm1519_vm12, %v6060_v12, %v5409_v61 }
 0x244   : > { %v4061_v26 = vpop.f32.mrb[2].mxu1  ;;  %3087 = vrot.lane.b32.xlu0 %v2928_v11, %s4445_s18  ;;  %v1317_v42 = vpop.permute.xlu0 %1316 }
 0x245   : > { %v2931_v17 = vpop.f32.mrb[3].mxu1  ;;  %v1389_v28 = vpop.permute.xlu1 %1388  ;;  %v1607_v30 = vsel %vm1601_vm14, %v1574_v48, %v1317_v42 }
 0x246   : > { %3089 = vrot.lane.b32.xlu1 %v2931_v17, %s4445_s18  ;;  %v1675_v54 = vsel %vm1667_vm0, %v1642_v33, %v1389_v28  ;;  %v1640_v55 = vsel %vm1634_vm15, %v1607_v30, %v7259_v24  ;;  %v1543_v33 = vsel %vm1519_vm12, %v6142_v27, %v7196_v21  ;;  %v7264_v24 = vld [vmem:[#allocation55_spill] sm:$0xff] }
 0x248   : > { %3091 = vrot.lane.b32.xlu0 %v4060_v15, %s4445_s18  ;;  %v1387_v0 = vpop.permute.xlu0 %1386  ;;  %v1578_v15 = vsel %vm1568_vm13, %v1534_v14, %v7263_v59 }
 0x249   : > { %v1424_v16 = vpop.permute.xlu1 %1423  ;;  %v1673_v6 = vsel %vm1667_vm0, %v1640_v55, %v1387_v0  ;;  %v1584_v55 = vsel %vm1568_vm13, %v1543_v33, %v7264_v24  ;;  %v7273_v33 = vld [vmem:[#allocation20_spill] sm:$0xff]  ;;  %v7274_v24 = vld [vmem:[#allocation45_spill] sm:$0xff] }
 0x24a   : > { %3093 = vrot.lane.b32.xlu1 %v4061_v26, %s4445_s18  ;;  %v1708_v18 = vsel %vm1700_vm1, %v1675_v54, %v1424_v16 }
 0x24b   : > { %v1741_v34 = vsel %vm1733_vm4, %v1708_v18, %v7260_v51 }
 0x24c   : > { %v1422_v41 = vpop.permute.xlu0 %1421 }
 0x24d   : > { %v1706_v25 = vsel %vm1700_vm1, %v1673_v6, %v1422_v41  ;;  %v1494_v60 = vpop.permute.xlu1 %1493  ;;  %v7265_v6 = vld [vmem:[#allocation58_spill] sm:$0xff] }
 0x24e   : > { %v1774_v2 = vsel %vm1766_vm6, %v1741_v34, %v1494_v60  ;;  %v1739_v35 = vsel %vm1733_vm4, %v1706_v25, %v7261_v62 }
 0x250   : > { %v1492_v45 = vpop.permute.xlu0 %1491 }
 0x251   : > { %v1772_v20 = vsel %vm1766_vm6, %v1739_v35, %v1492_v45  ;;  %v1323_v29 = vpop.permute.xlu1 %1322 }
 0x252   : > { %4024 = vmatprep.mubr.msk.bf16.mxu0 %vm1819_vm7, %v1772_v20  ;;  %v1613_v11 = vsel %vm1601_vm14, %v1580_v37, %v1323_v29  ;;  %v7267_v37 = vld [vmem:[#allocation60_spill] sm:$0xff] }
 0x253   : > { %4025 = vmatmul.mubr.msk.bf16.gmra.mrb[4].mxu0 %vm1819_vm7, %v1774_v2  ;;  %v1646_v43 = vsel %vm1634_vm15, %v1613_v11, %v5841_v53 }
 0x254   : > { %v1321_v50 = vpop.permute.xlu0 %1320 }
 0x255   : > { %v1393_v63 = vpop.permute.xlu1 %1392  ;;  %v1611_v26 = vsel %vm1601_vm14, %v1578_v15, %v1321_v50 }
 0x256   : > { %v1679_v10 = vsel %vm1667_vm0, %v1646_v43, %v1393_v63  ;;  %v1644_v61 = vsel %vm1634_vm15, %v1611_v26, %v5830_v31  ;;  %v1549_v63 = vsel %vm1519_vm12, %v6198_v8, %v7208_v9 }
 0x258   : > { %v1391_v42 = vpop.permute.xlu0 %1390 }
 0x259   : > { %v1428_v7 = vpop.permute.xlu1 %1427  ;;  %v1677_v12 = vsel %vm1667_vm0, %v1644_v61, %v1391_v42 }
 0x25a   : > { %v1712_v17 = vsel %vm1700_vm1, %v1679_v10, %v1428_v7  ;;  %v7268_v7 = vld [vmem:[#allocation16_spill] sm:$0xff]  ;;  %v7269_v10 = vld [vmem:[#allocation83_spill] sm:$0xff] }
 0x25b   : > { %v1745_v48 = vsel %vm1733_vm4, %v1712_v17, %v5790_v56 }
 0x25c   : > { %v1426_v28 = vpop.permute.xlu0 %1425 }
 0x25d   : > { %v1710_v1 = vsel %vm1700_vm1, %v1677_v12, %v1426_v28  ;;  %v1498_v46 = vpop.permute.xlu1 %1497 }
 0x25e   : > { %v4064_v22 = vpop.f32.mrb[4].mxu1  ;;  %v1778_v53 = vsel %vm1766_vm6, %v1745_v48, %v1498_v46  ;;  %v1743_v31 = vsel %vm1733_vm4, %v1710_v1, %v5752_v39  ;;  %v1540_v39 = vsel %vm1519_vm12, %v6120_v57, %v7198_v47 }
 0x25f   : > { %v2944_v58 = vpop.f32.mrb[5].mxu1  ;;  %v1582_v18 = vsel %vm1568_vm13, %v1540_v39, %v7265_v6 }
 0x260   : > { %v4065_v38 = vpop.f32.mrb[6].mxu1  ;;  %3095 = vrot.lane.b32.xlu0 %v2944_v58, %s4445_s18  ;;  %v1496_v30 = vpop.permute.xlu0 %1495  ;;  %v7270_v58 = vld [vmem:[#allocation82_spill] sm:$0xff] }
 0x261   : > { %v1776_v0 = vsel %vm1766_vm6, %v1743_v31, %v1496_v30  ;;  %v2947_v16 = vpop.f32.mrb[7].mxu1  ;;  %v1327_v36 = vpop.permute.xlu1 %1326 }
 0x262   : > { %3097 = vrot.lane.b32.xlu1 %v2947_v16, %s4445_s18  ;;  %4028 = vmatprep.mubr.msk.bf16.mxu0 %vm1819_vm7, %v1776_v0  ;;  %v1617_v41 = vsel %vm1601_vm14, %v1584_v55, %v1327_v36  ;;  %v7275_v55 = vld [vmem:[#allocation36_spill] sm:$0xff] }
 0x263   : > { %4029 = vmatmul.mubr.msk.bf16.gmra.mrb[8].mxu0 %vm1819_vm7, %v1778_v53  ;;  %v1650_v21 = vsel %vm1634_vm15, %v1617_v41, %v5951_v52  ;;  %v1552_v6 = vsel %vm1519_vm12, %v7275_v55, %v7274_v24 }
 0x264   : > { %3099 = vrot.lane.b32.xlu0 %v4064_v22, %s4445_s18  ;;  %v1325_v56 = vpop.permute.xlu0 %1324 }
 0x265   : > { %v1397_v54 = vpop.permute.xlu1 %1396  ;;  %v1615_v25 = vsel %vm1601_vm14, %v1582_v18, %v1325_v56  ;;  %v7272_v56 = vld [vmem:[#allocation44_spill] sm:$0xff]  ;;  %v7276_v18 = vld [vmem:[#allocation59_spill] sm:$0xff] }
 0x266   : > { %3101 = vrot.lane.b32.xlu1 %v4065_v38, %s4445_s18  ;;  %v1683_v27 = vsel %vm1667_vm0, %v1650_v21, %v1397_v54  ;;  %v1648_v47 = vsel %vm1634_vm15, %v1615_v25, %v5938_v23  ;;  %v7271_v38 = vld [vmem:[#allocation81_spill] sm:$0xff]  ;;  %v1555_v54 = vsel %vm1519_vm12, %v7273_v33, %v7272_v56  ;;  %v7277_v25 = vld [vmem:[#allocation62_spill] sm:$0xff] }
 0x267   : > { %v1592_v41 = vsel %vm1568_vm13, %v1555_v54, %v7276_v18  ;;  %v7289_v56 = vld [vmem:[#allocation37_spill] sm:$0xff] }
 0x268   : > { %v1395_v60 = vpop.permute.xlu0 %1394 }
 0x269   : > { %v1432_v51 = vpop.permute.xlu1 %1431  ;;  %v1681_v57 = vsel %vm1667_vm0, %v1648_v47, %v1395_v60  ;;  %v1590_v60 = vsel %vm1568_vm13, %v1552_v6, %v7277_v25  ;;  %v7291_v25 = vld [vmem:[#allocation48_spill] sm:$0xff] }
 0x26a   : > { %v1716_v34 = vsel %vm1700_vm1, %v1683_v27, %v1432_v51 }
 0x26b   : > { %v1749_v45 = vsel %vm1733_vm4, %v1716_v34, %v5893_v40  ;;  %v1546_v40 = vsel %vm1519_vm12, %v6162_v3, %v7210_v44 }
 0x26c   : > { %v1430_v2 = vpop.permute.xlu0 %1429  ;;  %v1586_v59 = vsel %vm1568_vm13, %v1546_v40, %v7267_v37 }
 0x26d   : > { %v1714_v62 = vsel %vm1700_vm1, %v1681_v57, %v1430_v2  ;;  %v1502_v35 = vpop.permute.xlu1 %1501  ;;  %v7278_v57 = vld [vmem:[#allocation21_spill] sm:$0xff] }
 0x26e   : > { %v1782_v20 = vsel %vm1766_vm6, %v1749_v45, %v1502_v35  ;;  %v1747_v52 = vsel %vm1733_vm4, %v1714_v62, %v5869_v4  ;;  %v1588_v4 = vsel %vm1568_vm13, %v1549_v63, %v7266_v49  ;;  %v7279_v62 = vld [vmem:[#allocation18_spill] sm:$0xff] }
 0x270   : > { %v1500_v29 = vpop.permute.xlu0 %1499 }
 0x271   : > { %v1780_v50 = vsel %vm1766_vm6, %v1747_v52, %v1500_v29  ;;  %v1331_v23 = vpop.permute.xlu1 %1330 }
 0x272   : > { %4032 = vmatprep.mubr.msk.bf16.mxu0 %vm1819_vm7, %v1780_v50  ;;  %v1621_v15 = vsel %vm1601_vm14, %v1588_v4, %v1331_v23  ;;  %v7280_v23 = vld [vmem:[#allocation19_spill] sm:$0xff] }
 0x273   : > { %4033 = vmatmul.mubr.msk.bf16.gmra.mrb[12].mxu0 %vm1819_vm7, %v1782_v20  ;;  %v1654_v9 = vsel %vm1634_vm15, %v1621_v15, %v7268_v7  ;;  %v7282_v15 = vld [vmem:[#allocation41_spill] sm:$0xff]  ;;  %v7284_v7 = vld [vmem:[#allocation43_spill] sm:$0xff] }
 0x274   : > { %v1329_v5 = vpop.permute.xlu0 %1328 }
 0x275   : > { %v1401_v14 = vpop.permute.xlu1 %1400  ;;  %v1619_v11 = vsel %vm1601_vm14, %v1586_v59, %v1329_v5 }
 0x276   : > { %v1687_v43 = vsel %vm1667_vm0, %v1654_v9, %v1401_v14  ;;  %v1652_v3 = vsel %vm1634_vm15, %v1619_v11, %v7269_v10  ;;  %v7281_v14 = vld [vmem:[#allocation35_spill] sm:$0xff]  ;;  %v1561_v11 = vsel %vm1519_vm12, %v7282_v15, %v7246_v32  ;;  %v7298_v15 = vld [vmem:[#allocation22_spill] sm:$0xff] }
 0x278   : > { %v1399_v26 = vpop.permute.xlu0 %1398 }
 0x279   : > { %v1436_v42 = vpop.permute.xlu1 %1435  ;;  %v1685_v61 = vsel %vm1667_vm0, %v1652_v3, %v1399_v26  ;;  %v7286_v3 = vld [vmem:[#allocation64_spill] sm:$0xff] }
 0x27a   : > { %v4068_v8 = vpop.f32.mrb[8].mxu1  ;;  %v1720_v12 = vsel %vm1700_vm1, %v1687_v43, %v1436_v42  ;;  %v7283_v42 = vld [vmem:[#allocation47_spill] sm:$0xff] }
 0x27b   : > { %v2960_v44 = vpop.f32.mrb[9].mxu1  ;;  %v1753_v48 = vsel %vm1733_vm4, %v1720_v12, %v7270_v58  ;;  %v1558_v9 = vsel %vm1519_vm12, %v7284_v7, %v7283_v42 }
 0x27c   : > { %v4069_v17 = vpop.f32.mrb[10].mxu1  ;;  %3103 = vrot.lane.b32.xlu0 %v2960_v44, %s4445_s18  ;;  %v1434_v28 = vpop.permute.xlu0 %1433  ;;  %v1594_v44 = vsel %vm1568_vm13, %v1558_v9, %v7286_v3 }
 0x27d   : > { %v1718_v1 = vsel %vm1700_vm1, %v1685_v61, %v1434_v28  ;;  %v2963_v46 = vpop.f32.mrb[11].mxu1  ;;  %v1506_v22 = vpop.permute.xlu1 %1505 }
 0x27e   : > { %3105 = vrot.lane.b32.xlu1 %v2963_v46, %s4445_s18  ;;  %v1786_v53 = vsel %vm1766_vm6, %v1753_v48, %v1506_v22  ;;  %v1751_v31 = vsel %vm1733_vm4, %v1718_v1, %v7271_v38  ;;  %v7287_v22 = vld [vmem:[#allocation38_spill] sm:$0xff] }
 0x280   : > { %3107 = vrot.lane.b32.xlu0 %v4068_v8, %s4445_s18  ;;  %v1504_v30 = vpop.permute.xlu0 %1503  ;;  %v7285_v8 = vld [vmem:[#allocation61_spill] sm:$0xff] }
 0x281   : > { %v1784_v0 = vsel %vm1766_vm6, %v1751_v31, %v1504_v30  ;;  %v1335_v16 = vpop.permute.xlu1 %1334  ;;  %v1596_v43 = vsel %vm1568_vm13, %v1561_v11, %v7285_v8 }
 0x282   : > { %3109 = vrot.lane.b32.xlu1 %v4069_v17, %s4445_s18  ;;  %4036 = vmatprep.mubr.msk.bf16.mxu0 %vm1819_vm7, %v1784_v0  ;;  %v1625_v51 = vsel %vm1601_vm14, %v1592_v41, %v1335_v16 }
 0x283   : > { %4037 = vmatmul.mubr.msk.bf16.gmra.mrb[16].mxu0 %vm1819_vm7, %v1786_v53  ;;  %v1658_v34 = vsel %vm1634_vm15, %v1625_v51, %v7278_v57  ;;  %v7288_v53 = vld [vmem:[#allocation39_spill] sm:$0xff] }
 0x284   : > { %v1333_v36 = vpop.permute.xlu0 %1332  ;;  %v7294_v57 = vld [vmem:[#allocation63_spill] sm:$0xff] }
 0x285   : > { %v1405_v39 = vpop.permute.xlu1 %1404  ;;  %v1623_v21 = vsel %vm1601_vm14, %v1590_v60, %v1333_v36  ;;  %v1567_v60 = vsel %vm1519_vm12, %v6357_v13, %v7291_v25 }
 0x286   : > { %v1691_v2 = vsel %vm1667_vm0, %v1658_v34, %v1405_v39  ;;  %v1656_v35 = vsel %vm1634_vm15, %v1623_v21, %v7279_v62  ;;  %v7290_v39 = vld [vmem:[#allocation14_spill] sm:$0xff]  ;;  %v1600_v34 = vsel %vm1568_vm13, %v1567_v60, %v7294_v57 }
 0x287   : > { %v7292_v21 = vld [vmem:[#allocation50_spill] sm:$0xff] }
 0x288   : > { %v1403_v27 = vpop.permute.xlu0 %1402 }
 0x289   : > { %v1440_v47 = vpop.permute.xlu1 %1439  ;;  %v1689_v45 = vsel %vm1667_vm0, %v1656_v35, %v1403_v27  ;;  %v7293_v27 = vld [vmem:[#allocation25_spill] sm:$0xff] }
 0x28a   : > { %v1724_v20 = vsel %vm1700_vm1, %v1691_v2, %v1440_v47  ;;  %v1564_v47 = vsel %vm1519_vm12, %v7293_v27, %v7292_v21  ;;  %v7295_v2 = vld [vmem:[#allocation65_spill] sm:$0xff] }
 0x28b   : > { %v1757_v5 = vsel %vm1733_vm4, %v1724_v20, %v7280_v23  ;;  %v1598_v62 = vsel %vm1568_vm13, %v1564_v47, %v7295_v2 }
 0x28c   : > { %v1438_v52 = vpop.permute.xlu0 %1437 }
 0x28d   : > { %v1722_v29 = vsel %vm1700_vm1, %v1689_v45, %v1438_v52  ;;  %v1510_v50 = vpop.permute.xlu1 %1509 }
 0x28e   : > { %v1790_v63 = vsel %vm1766_vm6, %v1757_v5, %v1510_v50  ;;  %v1755_v40 = vsel %vm1733_vm4, %v1722_v29, %v7281_v14  ;;  %v7296_v50 = vld [vmem:[#allocation40_spill] sm:$0xff] }
 0x290   : > { %v1508_v49 = vpop.permute.xlu0 %1507 }
 0x291   : > { %v1788_v4 = vsel %vm1766_vm6, %v1755_v40, %v1508_v49  ;;  %v1339_v37 = vpop.permute.xlu1 %1338 }
 0x292   : > { %4040 = vmatprep.mubr.msk.bf16.mxu0 %vm1819_vm7, %v1788_v4  ;;  %v1629_v61 = vsel %vm1601_vm14, %v1596_v43, %v1339_v37  ;;  %v7297_v4 = vld [vmem:[#allocation23_spill] sm:$0xff] }
 0x293   : > { %4041 = vmatmul.mubr.msk.bf16.gmra.mrb[20].mxu0 %vm1819_vm7, %v1790_v63  ;;  %v1662_v58 = vsel %vm1634_vm15, %v1629_v61, %v7287_v22 }
 0x294   : > { %v1337_v59 = vpop.permute.xlu0 %1336 }
 0x295   : > { %v1409_v26 = vpop.permute.xlu1 %1408  ;;  %v1627_v17 = vsel %vm1601_vm14, %v1594_v44, %v1337_v59 }
 0x296   : > { %v4072_v10 = vpop.f32.mrb[12].mxu1  ;;  %v1695_v48 = vsel %vm1667_vm0, %v1662_v58, %v1409_v26  ;;  %v1660_v38 = vsel %vm1634_vm15, %v1627_v17, %v7288_v53 }
 0x297   : > { %v2976_v12 = vpop.f32.mrb[13].mxu1 }
 0x298   : > { %v4073_v28 = vpop.f32.mrb[14].mxu1  ;;  %3111 = vrot.lane.b32.xlu0 %v2976_v12, %s4445_s18  ;;  %v1407_v32 = vpop.permute.xlu0 %1406 }
 0x299   : > { %v2979_v1 = vpop.f32.mrb[15].mxu1  ;;  %v1444_v46 = vpop.permute.xlu1 %1443  ;;  %v1693_v31 = vsel %vm1667_vm0, %v1660_v38, %v1407_v32 }
 0x29a   : > { %3113 = vrot.lane.b32.xlu1 %v2979_v1, %s4445_s18  ;;  %v1728_v30 = vsel %vm1700_vm1, %v1695_v48, %v1444_v46 }
 0x29b   : > { %v1761_v33 = vsel %vm1733_vm4, %v1728_v30, %v7289_v56 }
 0x29c   : > { %3115 = vrot.lane.b32.xlu0 %v4072_v10, %s4445_s18  ;;  %v1442_v0 = vpop.permute.xlu0 %1441 }
 0x29d   : > { %v1726_v16 = vsel %vm1700_vm1, %v1693_v31, %v1442_v0  ;;  %v1514_v36 = vpop.permute.xlu1 %1513 }
 0x29e   : > { %3117 = vrot.lane.b32.xlu1 %v4073_v28, %s4445_s18  ;;  %v1794_v54 = vsel %vm1766_vm6, %v1761_v33, %v1514_v36  ;;  %v1759_v24 = vsel %vm1733_vm4, %v1726_v16, %v7290_v39 }
 0x2a0   : > { %v1512_v55 = vpop.permute.xlu0 %1511 }
 0x2a1   : > { %v1792_v6 = vsel %vm1766_vm6, %v1759_v24, %v1512_v55  ;;  %v1343_v18 = vpop.permute.xlu1 %1342 }
 0x2a2   : > { %4044 = vmatprep.mubr.msk.bf16.mxu0 %vm1819_vm7, %v1792_v6  ;;  %v1633_v35 = vsel %vm1601_vm14, %v1600_v34, %v1343_v18 }
 0x2a3   : > { %4045 = vmatmul.mubr.msk.bf16.gmra.mrb[24].mxu0 %vm1819_vm7, %v1794_v54  ;;  %v1666_v13 = vsel %vm1634_vm15, %v1633_v35, %v6333_v19 }
 0x2a4   : > { %v1341_v41 = vpop.permute.xlu0 %1340 }
 0x2a5   : > { %v1413_v51 = vpop.permute.xlu1 %1412  ;;  %v1631_v45 = vsel %vm1601_vm14, %v1598_v62, %v1341_v41 }
 0x2a6   : > { %v1699_v29 = vsel %vm1667_vm0, %v1666_v13, %v1413_v51  ;;  %v1664_v23 = vsel %vm1634_vm15, %v1631_v45, %v7296_v50 }
 0x2a8   : > { %v1411_v20 = vpop.permute.xlu0 %1410 }
 0x2a9   : > { %v1448_v52 = vpop.permute.xlu1 %1447  ;;  %v1697_v5 = vsel %vm1667_vm0, %v1664_v23, %v1411_v20 }
 0x2aa   : > { %v1732_v63 = vsel %vm1700_vm1, %v1699_v29, %v1448_v52 }
 0x2ab   : > { %v1765_v37 = vsel %vm1733_vm4, %v1732_v63, %v7297_v4 }
 0x2ac   : > { %v1446_v14 = vpop.permute.xlu0 %1445 }
 0x2ad   : > { %v1730_v40 = vsel %vm1700_vm1, %v1697_v5, %v1446_v14  ;;  %v1518_v49 = vpop.permute.xlu1 %1517 }
 0x2ae   : > { %v1798_v59 = vsel %vm1766_vm6, %v1765_v37, %v1518_v49  ;;  %v1763_v19 = vsel %vm1733_vm4, %v1730_v40, %v7298_v15 }
 0x2b0   : > { %v1516_v11 = vpop.permute.xlu0 %1515 }
 0x2b1   : > { %v1796_v26 = vsel %vm1766_vm6, %v1763_v19, %v1516_v11 }
 0x2b2   : > { %4048 = vmatprep.mubr.msk.bf16.mxu0 %vm1819_vm7, %v1796_v26  ;;  %v4076_v42 = vpop.f32.mrb[16].mxu1 }
 0x2b3   : > { %4049 = vmatmul.mubr.msk.bf16.gmra.mrb[28].mxu0 %vm1819_vm7, %v1798_v59  ;;  %v2992_v7 = vpop.f32.mrb[17].mxu1 }
 0x2b4   : > { %v4077_v9 = vpop.f32.mrb[18].mxu1  ;;  %3119 = vrot.lane.b32.xlu0 %v2992_v7, %s4445_s18 }
 0x2b5   : > { %v2995_v8 = vpop.f32.mrb[19].mxu1 }
 0x2b6   : > { %3121 = vrot.lane.b32.xlu1 %v2995_v8, %s4445_s18  ;;  %v3088_v32 = vpop.permute.xlu0 %3087 }
 0x2b8   : > { %3123 = vrot.lane.b32.xlu0 %v4076_v42, %s4445_s18  ;;  %v3090_v46 = vpop.permute.xlu1 %3089 }
 0x2ba   : > { %3125 = vrot.lane.b32.xlu1 %v4077_v9, %s4445_s18  ;;  %v3092_v53 = vpop.permute.xlu0 %3091 }
 0x2bc   : > { %v3094_v0 = vpop.permute.xlu1 %3093 }
 0x2ce   : > { %v4080_v43 = vpop.f32.mrb[20].mxu1 }
 0x2cf   : > { %v3008_v10 = vpop.f32.mrb[21].mxu1 }
 0x2d0   : > { %v4081_v3 = vpop.f32.mrb[22].mxu1  ;;  %3127 = vrot.lane.b32.xlu0 %v3008_v10, %s4445_s18 }
 0x2d1   : > { %v3011_v44 = vpop.f32.mrb[23].mxu1 }
 0x2d2   : > { %3129 = vrot.lane.b32.xlu1 %v3011_v44, %s4445_s18  ;;  %v3096_v35 = vpop.permute.xlu0 %3095 }
 0x2d4   : > { %3131 = vrot.lane.b32.xlu0 %v4080_v43, %s4445_s18  ;;  %v3098_v29 = vpop.permute.xlu1 %3097 }
 0x2d6   : > { %3133 = vrot.lane.b32.xlu1 %v4081_v3, %s4445_s18  ;;  %v3100_v5 = vpop.permute.xlu0 %3099 }
 0x2d8   : > { %v3102_v49 = vpop.permute.xlu1 %3101 }
 0x2ea   : > { %v4084_v61 = vpop.f32.mrb[24].mxu1 }
 0x2eb   : > { %v3024_v12 = vpop.f32.mrb[25].mxu1 }
 0x2ec   : > { %v4085_v17 = vpop.f32.mrb[26].mxu1  ;;  %3135 = vrot.lane.b32.xlu0 %v3024_v12, %s4445_s18 }
 0x2ed   : > { %v3027_v28 = vpop.f32.mrb[27].mxu1 }
 0x2ee   : > { %3137 = vrot.lane.b32.xlu1 %v3027_v28, %s4445_s18 }
 0x2f0   : > { %3139 = vrot.lane.b32.xlu0 %v4084_v61, %s4445_s18 }
 0x2f2   : > { %3141 = vrot.lane.b32.xlu1 %v4085_v17, %s4445_s18 }
 0x311   : > { %v4088_v1 = vpop.f32.mrb[28].mxu1 }
 0x312   : > { %v3040_v22 = vpop.f32.mrb[29].mxu1 }
 0x313   : > { %3143 = vrot.lane.b32.xlu0 %v3040_v22, %s4445_s18  ;;  %v4089_v58 = vpop.f32.mrb[30].mxu1 }
 0x314   : > { %v3043_v48 = vpop.f32.mrb[31].mxu1 }
 0x315   : > { %3145 = vrot.lane.b32.xlu1 %v3043_v48, %s4445_s18 }
 0x316   : > { %v4022_v38 = vpop.f32.mrb[0].mxu0 }
 0x317   : > { %v3185_v31 = vsel %vm1519_vm12, %v4022_v38, %v3092_v53  ;;  %3147 = vrot.lane.b32.xlu0 %v4088_v1, %s4445_s18  ;;  %v1890_v30 = vpop.f32.mrb[1].mxu0 }
 0x318   : > { %v3945_v16 = vpack.c.bf16 %v3185_v31, %v3185_v31  ;;  %v3183_v36 = vsel %vm1519_vm12, %v1890_v30, %v3088_v32  ;;  %v4023_v56 = vpop.f32.mrb[2].mxu0  ;;  %v3286_v6 = vmul.f32 %v3185_v31, %v3185_v31  ;;  %v3218_v27 = vsel %vm1568_vm13, %v3185_v31, 0.0  ;;  %v3106_v30 = vpop.permute.xlu1 %3105 }
 0x319   : > { %v3943_v33 = vpack.c.bf16 %v3183_v36, %v3183_v36  ;;  %v3186_v54 = vsel %vm1519_vm12, %v4023_v56, %v3094_v0  ;;  %3149 = vrot.lane.b32.xlu1 %v4089_v58, %s4445_s18  ;;  %v1893_v39 = vpop.f32.mrb[3].mxu0  ;;  %v3284_v24 = vmul.f32 %v3183_v36, %v3183_v36  ;;  %v3215_v41 = vsel %vm1568_vm13, %v3183_v36, 0.0  ;;  %v3104_v58 = vpop.permute.xlu0 %3103 }
 0x31a   : > { %3520 = vst.msk [vmem:[%s6702_s22 + $0x8] sm:$0xf] %vm3517_vm2, %v3945_v16  ;;  %v3946_v55 = vpack.c.bf16 %v3186_v54, %v3186_v54  ;;  %v3184_v18 = vsel %vm1519_vm12, %v1893_v39, %v3090_v46  ;;  %v3287_v57 = vmul.f32 %v3186_v54, %v3186_v54  ;;  %v3319_v45 = vsel %vm1568_vm13, %v3286_v6, 0.0 }
 0x31b   : > { %3518 = vst.msk [vmem:[%s6702_s22] sm:$0xf] %vm3517_vm2, %v3943_v33  ;;  %v3216_v25 = vsel %vm1568_vm13, %v3184_v18, 0.0  ;;  %v3285_v60 = vmul.f32 %v3184_v18, %v3184_v18  ;;  %v3944_v51 = vpack.c.bf16 %v3184_v18, %v3184_v18  ;;  %v3316_v47 = vsel %vm1568_vm13, %v3284_v24, 0.0 }
 0x31c   : > { %3521 = vst.msk [vmem:[%s6702_s22 + $0xc] sm:$0xf] %vm3517_vm2, %v3946_v55  ;;  %v3217_v21 = vadd.f32 %v3216_v25, %v3215_v41  ;;  %v3220_v20 = vsel %vm1568_vm13, %v3186_v54, 0.0  ;;  %v3321_v50 = vsel %vm1568_vm13, %v3287_v57, 0.0  ;;  %v3110_v39 = vpop.permute.xlu1 %3109 }
 0x31d   : > { %v3317_v34 = vsel %vm1568_vm13, %v3285_v60, 0.0  ;;  %3519 = vst.msk [vmem:[%s6702_s22 + $0x4] sm:$0xf] %vm3517_vm2, %v3944_v51  ;;  %v3108_v36 = vpop.permute.xlu0 %3107 }
 0x31e   : > { %v3219_v2 = vadd.f32 %v3218_v27, %v3217_v21  ;;  %v3318_v62 = vadd.f32 %v3317_v34, %v3316_v47 }
 0x320   : > { %v3320_v52 = vadd.f32 %v3319_v45, %v3318_v62  ;;  %v3221_v13 = vadd.f32 %v3220_v20, %v3219_v2 }
 0x322   : > { %v3322_v23 = vadd.f32 %v3321_v50, %v3320_v52 }
 0x326   : > { %v4026_v63 = vpop.f32.mrb[4].mxu0 }
 0x327   : > { %v3189_v14 = vsel %vm1519_vm12, %v4026_v63, %v3100_v5  ;;  %v1906_v40 = vpop.f32.mrb[5].mxu0  ;;  %v3112_v5 = vpop.permute.xlu0 %3111 }
 0x328   : > { %v3949_v4 = vpack.c.bf16 %v3189_v14, %v3189_v14  ;;  %v3187_v37 = vsel %vm1519_vm12, %v1906_v40, %v3096_v35  ;;  %v4027_v59 = vpop.f32.mrb[6].mxu0  ;;  %v3290_v10 = vmul.f32 %v3189_v14, %v3189_v14  ;;  %v3226_v28 = vsel %vm1568_vm13, %v3189_v14, 0.0 }
 0x329   : > { %v3222_v15 = vsel %vm1568_vm13, %v3187_v37, 0.0  ;;  %v3288_v19 = vmul.f32 %v3187_v37, %v3187_v37  ;;  %v3947_v11 = vpack.c.bf16 %v3187_v37, %v3187_v37  ;;  %v3190_v26 = vsel %vm1519_vm12, %v4027_v59, %v3102_v49  ;;  %v1909_v42 = vpop.f32.mrb[7].mxu0 }
 0x32a   : > { %3524 = vst.msk [vmem:[%s6702_s22 + $0x18] sm:$0xf] %vm3517_vm2, %v3949_v4  ;;  %v3223_v7 = vadd.f32 %v3222_v15, %v3221_v13  ;;  %v3950_v8 = vpack.c.bf16 %v3190_v26, %v3190_v26  ;;  %v3188_v43 = vsel %vm1519_vm12, %v1909_v42, %v3098_v29  ;;  %v3291_v32 = vmul.f32 %v3190_v26, %v3190_v26  ;;  %v3114_v4 = vpop.permute.xlu1 %3113 }
 0x32b   : > { %v3323_v9 = vsel %vm1568_vm13, %v3288_v19, 0.0  ;;  %3522 = vst.msk [vmem:[%s6702_s22 + $0x10] sm:$0xf] %vm3517_vm2, %v3947_v11  ;;  %v3224_v44 = vsel %vm1568_vm13, %v3188_v43, 0.0  ;;  %v3289_v61 = vmul.f32 %v3188_v43, %v3188_v43  ;;  %v3948_v17 = vpack.c.bf16 %v3188_v43, %v3188_v43  ;;  %v3116_v15 = vpop.permute.xlu0 %3115 }
 0x32c   : > { %v3324_v3 = vadd.f32 %v3323_v9, %v3322_v23  ;;  %3525 = vst.msk [vmem:[%s6702_s22 + $0x1c] sm:$0xf] %vm3517_vm2, %v3950_v8  ;;  %v3225_v12 = vadd.f32 %v3224_v44, %v3223_v7  ;;  %v3327_v48 = vsel %vm1568_vm13, %v3290_v10, 0.0  ;;  %v3228_v53 = vsel %vm1568_vm13, %v3190_v26, 0.0 }
 0x32d   : > { %v3325_v1 = vsel %vm1568_vm13, %v3289_v61, 0.0  ;;  %3523 = vst.msk [vmem:[%s6702_s22 + $0x14] sm:$0xf] %vm3517_vm2, %v3948_v17  ;;  %v3329_v0 = vsel %vm1568_vm13, %v3291_v32, 0.0 }
 0x32e   : > { %v3227_v46 = vadd.f32 %v3226_v28, %v3225_v12  ;;  %v3326_v22 = vadd.f32 %v3325_v1, %v3324_v3  ;;  %v3118_v42 = vpop.permute.xlu1 %3117 }
 0x330   : > { %v3328_v38 = vadd.f32 %v3327_v48, %v3326_v22  ;;  %v3229_v31 = vadd.f32 %v3228_v53, %v3227_v46 }
 0x332   : > { %v3330_v16 = vadd.f32 %v3329_v0, %v3328_v38 }
 0x336   : > { %v4030_v56 = vpop.f32.mrb[8].mxu0 }
 0x337   : > { %v3193_v33 = vsel %vm1519_vm12, %v4030_v56, %v3108_v36  ;;  %v1922_v54 = vpop.f32.mrb[9].mxu0  ;;  %v3120_v36 = vpop.permute.xlu0 %3119 }
 0x338   : > { %v3953_v24 = vpack.c.bf16 %v3193_v33, %v3193_v33  ;;  %v3191_v55 = vsel %vm1519_vm12, %v1922_v54, %v3104_v58  ;;  %v4031_v6 = vpop.f32.mrb[10].mxu0  ;;  %v3294_v34 = vmul.f32 %v3193_v33, %v3193_v33  ;;  %v3234_v52 = vsel %vm1568_vm13, %v3193_v33, 0.0 }
 0x339   : > { %v3230_v18 = vsel %vm1568_vm13, %v3191_v55, 0.0  ;;  %v3292_v41 = vmul.f32 %v3191_v55, %v3191_v55  ;;  %v3951_v25 = vpack.c.bf16 %v3191_v55, %v3191_v55  ;;  %v3194_v60 = vsel %vm1519_vm12, %v4031_v6, %v3110_v39  ;;  %v1925_v51 = vpop.f32.mrb[11].mxu0 }
 0x33a   : > { %3528 = vst.msk [vmem:[%s6702_s22 + $0x28] sm:$0xf] %vm3517_vm2, %v3953_v24  ;;  %v3231_v21 = vadd.f32 %v3230_v18, %v3229_v31  ;;  %v3954_v47 = vpack.c.bf16 %v3194_v60, %v3194_v60  ;;  %v3192_v57 = vsel %vm1519_vm12, %v1925_v51, %v3106_v30  ;;  %v3295_v13 = vmul.f32 %v3194_v60, %v3194_v60  ;;  %v3122_v24 = vpop.permute.xlu1 %3121 }
 0x33b   : > { %v3331_v27 = vsel %vm1568_vm13, %v3292_v41, 0.0  ;;  %3526 = vst.msk [vmem:[%s6702_s22 + $0x20] sm:$0xf] %vm3517_vm2, %v3951_v25  ;;  %v3232_v62 = vsel %vm1568_vm13, %v3192_v57, 0.0  ;;  %v3293_v35 = vmul.f32 %v3192_v57, %v3192_v57  ;;  %v3952_v20 = vpack.c.bf16 %v3192_v57, %v3192_v57  ;;  %v3124_v18 = vpop.permute.xlu0 %3123 }
 0x33c   : > { %v3332_v2 = vadd.f32 %v3331_v27, %v3330_v16  ;;  %3529 = vst.msk [vmem:[%s6702_s22 + $0x2c] sm:$0xf] %vm3517_vm2, %v3954_v47  ;;  %v3233_v45 = vadd.f32 %v3232_v62, %v3231_v21  ;;  %v3335_v63 = vsel %vm1568_vm13, %v3294_v34, 0.0  ;;  %v3236_v14 = vsel %vm1568_vm13, %v3194_v60, 0.0 }
 0x33d   : > { %v3333_v29 = vsel %vm1568_vm13, %v3293_v35, 0.0  ;;  %3527 = vst.msk [vmem:[%s6702_s22 + $0x24] sm:$0xf] %vm3517_vm2, %v3952_v20  ;;  %v3337_v37 = vsel %vm1568_vm13, %v3295_v13, 0.0 }
 0x33e   : > { %v3235_v50 = vadd.f32 %v3234_v52, %v3233_v45  ;;  %v3334_v23 = vadd.f32 %v3333_v29, %v3332_v2  ;;  %v3126_v51 = vpop.permute.xlu1 %3125 }
 0x340   : > { %v3336_v40 = vadd.f32 %v3335_v63, %v3334_v23  ;;  %v3237_v49 = vadd.f32 %v3236_v14, %v3235_v50 }
 0x342   : > { %v3338_v59 = vadd.f32 %v3337_v37, %v3336_v40 }
 0x346   : > { %v4034_v19 = vpop.f32.mrb[12].mxu0 }
 0x347   : > { %v3197_v11 = vsel %vm1519_vm12, %v4034_v19, %v3116_v15  ;;  %v1938_v26 = vpop.f32.mrb[13].mxu0  ;;  %v3128_v15 = vpop.permute.xlu0 %3127 }
 0x348   : > { %v3957_v7 = vpack.c.bf16 %v3197_v11, %v3197_v11  ;;  %v3195_v9 = vsel %vm1519_vm12, %v1938_v26, %v3112_v5  ;;  %v4035_v8 = vpop.f32.mrb[14].mxu0  ;;  %v3298_v1 = vmul.f32 %v3197_v11, %v3197_v11  ;;  %v3242_v38 = vsel %vm1568_vm13, %v3197_v11, 0.0 }
 0x349   : > { %v3238_v43 = vsel %vm1568_vm13, %v3195_v9, 0.0  ;;  %v3296_v10 = vmul.f32 %v3195_v9, %v3195_v9  ;;  %v3955_v3 = vpack.c.bf16 %v3195_v9, %v3195_v9  ;;  %v3198_v44 = vsel %vm1519_vm12, %v4035_v8, %v3118_v42  ;;  %v1941_v61 = vpop.f32.mrb[15].mxu0 }
 0x34a   : > { %3532 = vst.msk [vmem:[%s6702_s22 + $0x38] sm:$0xf] %vm3517_vm2, %v3957_v7  ;;  %v3239_v12 = vadd.f32 %v3238_v43, %v3237_v49  ;;  %v3958_v28 = vpack.c.bf16 %v3198_v44, %v3198_v44  ;;  %v3196_v32 = vsel %vm1519_vm12, %v1941_v61, %v3114_v4  ;;  %v3299_v31 = vmul.f32 %v3198_v44, %v3198_v44  ;;  %v3130_v7 = vpop.permute.xlu1 %3129 }
 0x34b   : > { %v3339_v17 = vsel %vm1568_vm13, %v3296_v10, 0.0  ;;  %3530 = vst.msk [vmem:[%s6702_s22 + $0x30] sm:$0xf] %vm3517_vm2, %v3955_v3  ;;  %v3240_v22 = vsel %vm1568_vm13, %v3196_v32, 0.0  ;;  %v3297_v58 = vmul.f32 %v3196_v32, %v3196_v32  ;;  %v3956_v53 = vpack.c.bf16 %v3196_v32, %v3196_v32  ;;  %v3132_v43 = vpop.permute.xlu0 %3131 }
 0x34c   : > { %v3340_v46 = vadd.f32 %v3339_v17, %v3338_v59  ;;  %3533 = vst.msk [vmem:[%s6702_s22 + $0x3c] sm:$0xf] %vm3517_vm2, %v3958_v28  ;;  %v3241_v48 = vadd.f32 %v3240_v22, %v3239_v12  ;;  %v3343_v56 = vsel %vm1568_vm13, %v3298_v1, 0.0  ;;  %v3244_v33 = vsel %vm1568_vm13, %v3198_v44, 0.0 }
 0x34d   : > { %v3341_v30 = vsel %vm1568_vm13, %v3297_v58, 0.0  ;;  %3531 = vst.msk [vmem:[%s6702_s22 + $0x34] sm:$0xf] %vm3517_vm2, %v3956_v53  ;;  %v3345_v55 = vsel %vm1568_vm13, %v3299_v31, 0.0 }
 0x34e   : > { %v3243_v0 = vadd.f32 %v3242_v38, %v3241_v48  ;;  %v3342_v16 = vadd.f32 %v3341_v30, %v3340_v46  ;;  %v3134_v61 = vpop.permute.xlu1 %3133 }
 0x350   : > { %v3344_v54 = vadd.f32 %v3343_v56, %v3342_v16  ;;  %v3245_v39 = vadd.f32 %v3244_v33, %v3243_v0 }
 0x352   : > { %v3346_v6 = vadd.f32 %v3345_v55, %v3344_v54 }
 0x356   : > { %v4038_v41 = vpop.f32.mrb[16].mxu0 }
 0x357   : > { %v3201_v25 = vsel %vm1519_vm12, %v4038_v41, %v3124_v18  ;;  %v1954_v60 = vpop.f32.mrb[17].mxu0 }
 0x358   : > { %v3961_v21 = vpack.c.bf16 %v3201_v25, %v3201_v25  ;;  %v3199_v27 = vsel %vm1519_vm12, %v1954_v60, %v3120_v36  ;;  %v4039_v47 = vpop.f32.mrb[18].mxu0  ;;  %v3302_v29 = vmul.f32 %v3201_v25, %v3201_v25  ;;  %v3250_v40 = vsel %vm1568_vm13, %v3201_v25, 0.0 }
 0x359   : > { %v3246_v57 = vsel %vm1568_vm13, %v3199_v27, 0.0  ;;  %v3300_v34 = vmul.f32 %v3199_v27, %v3199_v27  ;;  %v3959_v2 = vpack.c.bf16 %v3199_v27, %v3199_v27  ;;  %v3202_v62 = vsel %vm1519_vm12, %v4039_v47, %v3126_v51  ;;  %v1957_v35 = vpop.f32.mrb[19].mxu0 }
 0x35a   : > { %3536 = vst.msk [vmem:[%s6702_s22 + $0x48] sm:$0xf] %vm3517_vm2, %v3961_v21  ;;  %v3247_v45 = vadd.f32 %v3246_v57, %v3245_v39  ;;  %v3962_v52 = vpack.c.bf16 %v3202_v62, %v3202_v62  ;;  %v3200_v13 = vsel %vm1519_vm12, %v1957_v35, %v3122_v24  ;;  %v3303_v49 = vmul.f32 %v3202_v62, %v3202_v62 }
 0x35b   : > { %v3347_v20 = vsel %vm1568_vm13, %v3300_v34, 0.0  ;;  %3534 = vst.msk [vmem:[%s6702_s22 + $0x40] sm:$0xf] %vm3517_vm2, %v3959_v2  ;;  %v3248_v23 = vsel %vm1568_vm13, %v3200_v13, 0.0  ;;  %v3301_v5 = vmul.f32 %v3200_v13, %v3200_v13  ;;  %v3960_v14 = vpack.c.bf16 %v3200_v13, %v3200_v13 }
 0x35c   : > { %v3348_v50 = vadd.f32 %v3347_v20, %v3346_v6  ;;  %3537 = vst.msk [vmem:[%s6702_s22 + $0x4c] sm:$0xf] %vm3517_vm2, %v3962_v52  ;;  %v3249_v63 = vadd.f32 %v3248_v23, %v3247_v45  ;;  %v3351_v19 = vsel %vm1568_vm13, %v3302_v29, 0.0  ;;  %v3252_v11 = vsel %vm1568_vm13, %v3202_v62, 0.0 }
 0x35d   : > { %v3349_v4 = vsel %vm1568_vm13, %v3301_v5, 0.0  ;;  %3535 = vst.msk [vmem:[%s6702_s22 + $0x44] sm:$0xf] %vm3517_vm2, %v3960_v14  ;;  %v3353_v9 = vsel %vm1568_vm13, %v3303_v49, 0.0 }
 0x35e   : > { %v3251_v37 = vadd.f32 %v3250_v40, %v3249_v63  ;;  %v3350_v59 = vadd.f32 %v3349_v4, %v3348_v50  ;;  %v3136_v18 = vpop.permute.xlu0 %3135 }
 0x360   : > { %v3352_v26 = vadd.f32 %v3351_v19, %v3350_v59  ;;  %v3253_v42 = vadd.f32 %v3252_v11, %v3251_v37  ;;  %v3138_v21 = vpop.permute.xlu1 %3137 }
 0x362   : > { %v3354_v8 = vadd.f32 %v3353_v9, %v3352_v26  ;;  %v3140_v57 = vpop.permute.xlu0 %3139 }
 0x364   : > { %v3142_v35 = vpop.permute.xlu1 %3141 }
 0x366   : > { %v4042_v10 = vpop.f32.mrb[20].mxu0 }
 0x367   : > { %v3205_v3 = vsel %vm1519_vm12, %v4042_v10, %v3132_v43  ;;  %v1970_v44 = vpop.f32.mrb[21].mxu0 }
 0x368   : > { %v3965_v12 = vpack.c.bf16 %v3205_v3, %v3205_v3  ;;  %v3203_v17 = vsel %vm1519_vm12, %v1970_v44, %v3128_v15  ;;  %v4043_v28 = vpop.f32.mrb[22].mxu0  ;;  %v3306_v30 = vmul.f32 %v3205_v3, %v3205_v3  ;;  %v3258_v54 = vsel %vm1568_vm13, %v3205_v3, 0.0 }
 0x369   : > { %v3254_v32 = vsel %vm1568_vm13, %v3203_v17, 0.0  ;;  %v3304_v1 = vmul.f32 %v3203_v17, %v3203_v17  ;;  %v3963_v46 = vpack.c.bf16 %v3203_v17, %v3203_v17  ;;  %v3206_v22 = vsel %vm1519_vm12, %v4043_v28, %v3134_v61  ;;  %v1973_v58 = vpop.f32.mrb[23].mxu0 }
 0x36a   : > { %3540 = vst.msk [vmem:[%s6702_s22 + $0x58] sm:$0xf] %vm3517_vm2, %v3965_v12  ;;  %v3255_v48 = vadd.f32 %v3254_v32, %v3253_v42  ;;  %v3966_v38 = vpack.c.bf16 %v3206_v22, %v3206_v22  ;;  %v3204_v31 = vsel %vm1519_vm12, %v1973_v58, %v3130_v7  ;;  %v3307_v39 = vmul.f32 %v3206_v22, %v3206_v22 }
 0x36b   : > { %v3355_v53 = vsel %vm1568_vm13, %v3304_v1, 0.0  ;;  %3538 = vst.msk [vmem:[%s6702_s22 + $0x50] sm:$0xf] %vm3517_vm2, %v3963_v46  ;;  %v3256_v16 = vsel %vm1568_vm13, %v3204_v31, 0.0  ;;  %v3305_v36 = vmul.f32 %v3204_v31, %v3204_v31  ;;  %v3964_v33 = vpack.c.bf16 %v3204_v31, %v3204_v31 }
 0x36c   : > { %v3356_v0 = vadd.f32 %v3355_v53, %v3354_v8  ;;  %3541 = vst.msk [vmem:[%s6702_s22 + $0x5c] sm:$0xf] %vm3517_vm2, %v3966_v38  ;;  %v3257_v56 = vadd.f32 %v3256_v16, %v3255_v48  ;;  %v3359_v41 = vsel %vm1568_vm13, %v3306_v30, 0.0  ;;  %v3260_v25 = vsel %vm1568_vm13, %v3206_v22, 0.0 }
 0x36d   : > { %v3357_v24 = vsel %vm1568_vm13, %v3305_v36, 0.0  ;;  %3539 = vst.msk [vmem:[%s6702_s22 + $0x54] sm:$0xf] %vm3517_vm2, %v3964_v33  ;;  %v3361_v27 = vsel %vm1568_vm13, %v3307_v39, 0.0 }
 0x36e   : > { %v3259_v55 = vadd.f32 %v3258_v54, %v3257_v56  ;;  %v3358_v6 = vadd.f32 %v3357_v24, %v3356_v0 }
 0x370   : > { %v3360_v60 = vadd.f32 %v3359_v41, %v3358_v6  ;;  %v3261_v51 = vadd.f32 %v3260_v25, %v3259_v55 }
 0x372   : > { %v3362_v47 = vadd.f32 %v3361_v27, %v3360_v60 }
 0x376   : > { %v4046_v34 = vpop.f32.mrb[24].mxu0 }
 0x377   : > { %v3209_v2 = vsel %vm1519_vm12, %v4046_v34, %v3140_v57  ;;  %v1986_v62 = vpop.f32.mrb[25].mxu0 }
 0x378   : > { %v3969_v45 = vpack.c.bf16 %v3209_v2, %v3209_v2  ;;  %v3207_v20 = vsel %vm1519_vm12, %v1986_v62, %v3136_v18  ;;  %v4047_v52 = vpop.f32.mrb[26].mxu0  ;;  %v3310_v4 = vmul.f32 %v3209_v2, %v3209_v2  ;;  %v3266_v26 = vsel %vm1568_vm13, %v3209_v2, 0.0 }
 0x379   : > { %v3262_v13 = vsel %vm1568_vm13, %v3207_v20, 0.0  ;;  %v3308_v29 = vmul.f32 %v3207_v20, %v3207_v20  ;;  %v3967_v50 = vpack.c.bf16 %v3207_v20, %v3207_v20  ;;  %v3210_v23 = vsel %vm1519_vm12, %v4047_v52, %v3142_v35  ;;  %v1989_v5 = vpop.f32.mrb[27].mxu0 }
 0x37a   : > { %3544 = vst.msk [vmem:[%s6702_s22 + $0x68] sm:$0xf] %vm3517_vm2, %v3969_v45  ;;  %v3263_v63 = vadd.f32 %v3262_v13, %v3261_v51  ;;  %v3970_v40 = vpack.c.bf16 %v3210_v23, %v3210_v23  ;;  %v3208_v49 = vsel %vm1519_vm12, %v1989_v5, %v3138_v21  ;;  %v3311_v42 = vmul.f32 %v3210_v23, %v3210_v23 }
 0x37b   : > { %v3363_v14 = vsel %vm1568_vm13, %v3308_v29, 0.0  ;;  %3542 = vst.msk [vmem:[%s6702_s22 + $0x60] sm:$0xf] %vm3517_vm2, %v3967_v50  ;;  %v3264_v59 = vsel %vm1568_vm13, %v3208_v49, 0.0  ;;  %v3309_v15 = vmul.f32 %v3208_v49, %v3208_v49  ;;  %v3968_v11 = vpack.c.bf16 %v3208_v49, %v3208_v49 }
 0x37c   : > { %v3364_v37 = vadd.f32 %v3363_v14, %v3362_v47  ;;  %3545 = vst.msk [vmem:[%s6702_s22 + $0x6c] sm:$0xf] %vm3517_vm2, %v3970_v40  ;;  %v3265_v19 = vadd.f32 %v3264_v59, %v3263_v63  ;;  %v3367_v43 = vsel %vm1568_vm13, %v3310_v4, 0.0  ;;  %v3268_v10 = vsel %vm1568_vm13, %v3210_v23, 0.0 }
 0x37d   : > { %v3365_v7 = vsel %vm1568_vm13, %v3309_v15, 0.0  ;;  %3543 = vst.msk [vmem:[%s6702_s22 + $0x64] sm:$0xf] %vm3517_vm2, %v3968_v11  ;;  %v3369_v61 = vsel %vm1568_vm13, %v3311_v42, 0.0 }
 0x37e   : > { %v3267_v9 = vadd.f32 %v3266_v26, %v3265_v19  ;;  %v3366_v8 = vadd.f32 %v3365_v7, %v3364_v37 }
 0x380   : > { %v3368_v3 = vadd.f32 %v3367_v43, %v3366_v8  ;;  %v3269_v44 = vadd.f32 %v3268_v10, %v3267_v9 }
 0x382   : > { %v3370_v12 = vadd.f32 %v3369_v61, %v3368_v3 }
 0x385   : > { %v3144_v17 = vpop.permute.xlu0 %3143 }
 0x386   : > { %v4050_v28 = vpop.f32.mrb[28].mxu0 }
 0x387   : > { %v3146_v32 = vpop.permute.xlu1 %3145  ;;  %v2002_v1 = vpop.f32.mrb[29].mxu0 }
 0x388   : > { %v3211_v46 = vsel %vm1519_vm12, %v2002_v1, %v3144_v17  ;;  %v4051_v22 = vpop.f32.mrb[30].mxu0 }
 0x389   : > { %v3270_v58 = vsel %vm1568_vm13, %v3211_v46, 0.0  ;;  %v3312_v48 = vmul.f32 %v3211_v46, %v3211_v46  ;;  %v3971_v53 = vpack.c.bf16 %v3211_v46, %v3211_v46  ;;  %v2005_v38 = vpop.f32.mrb[31].mxu0  ;;  %v3148_v31 = vpop.permute.xlu0 %3147 }
 0x38a   : > { %v3271_v30 = vadd.f32 %v3270_v58, %v3269_v44  ;;  %v3212_v0 = vsel %vm1519_vm12, %v2005_v38, %v3146_v32  ;;  %v3213_v16 = vsel %vm1519_vm12, %v4050_v28, %v3148_v31 }
 0x38b   : > { %v3371_v36 = vsel %vm1568_vm13, %v3312_v48, 0.0  ;;  %3546 = vst.msk [vmem:[%s6702_s22 + $0x70] sm:$0xf] %vm3517_vm2, %v3971_v53  ;;  %v3272_v56 = vsel %vm1568_vm13, %v3212_v0, 0.0  ;;  %v3313_v33 = vmul.f32 %v3212_v0, %v3212_v0  ;;  %v3972_v54 = vpack.c.bf16 %v3212_v0, %v3212_v0  ;;  %v3150_v39 = vpop.permute.xlu1 %3149 }
 0x38c   : > { %v3372_v24 = vadd.f32 %v3371_v36, %v3370_v12  ;;  %v3273_v55 = vadd.f32 %v3272_v56, %v3271_v30  ;;  %v3314_v6 = vmul.f32 %v3213_v16, %v3213_v16  ;;  %v3274_v41 = vsel %vm1568_vm13, %v3213_v16, 0.0 }
 0x38d   : > { %v3373_v18 = vsel %vm1568_vm13, %v3313_v33, 0.0  ;;  %3547 = vst.msk [vmem:[%s6702_s22 + $0x74] sm:$0xf] %vm3517_vm2, %v3972_v54  ;;  %v3973_v25 = vpack.c.bf16 %v3213_v16, %v3213_v16  ;;  %v3214_v60 = vsel %vm1519_vm12, %v4051_v22, %v3150_v39 }
 0x38e   : > { %v3374_v51 = vadd.f32 %v3373_v18, %v3372_v24  ;;  %v3275_v21 = vadd.f32 %v3274_v41, %v3273_v55  ;;  %v3375_v27 = vsel %vm1568_vm13, %v3314_v6, 0.0  ;;  %v3276_v47 = vsel %vm1568_vm13, %v3214_v60, 0.0 }
 0x38f   : > { %3548 = vst.msk [vmem:[%s6702_s22 + $0x78] sm:$0xf] %vm3517_vm2, %v3973_v25  ;;  %v3315_v57 = vmul.f32 %v3214_v60, %v3214_v60  ;;  %v3974_v34 = vpack.c.bf16 %v3214_v60, %v3214_v60 }
 0x390   : > { %v3376_v2 = vadd.f32 %v3375_v27, %v3374_v51  ;;  %v3277_v62 = vadd.f32 %v3276_v47, %v3275_v21 }
 0x391   : > { %v3377_v35 = vsel %vm1568_vm13, %v3315_v57, 0.0  ;;  %3549 = vst.msk [vmem:[%s6702_s22 + $0x7c] sm:$0xf] %vm3517_vm2, %v3974_v34 }
 0x392   : > { %v3278_v45 = vrot.slane %v3277_v62, 4  ;;  %v3378_v20 = vadd.f32 %v3377_v35, %v3376_v2 }
 0x393   : > { %4350 = shalt.err (!%p4347_p7)
}
 0x394   : > { %s4351_s29 = scalar_lea.hbm %s6859_s7, 2048  ;;  %s4355_s5 = scalar_lea.hbm %s6947_s2, 4096 }
 0x395   : > { %p4352_p9 = scmp.ne.s32.totalorder %s6859_s7, %s4351_s29  ;;  %p4356_p5 = scmp.lt.u32.totalorder %s6859_s7, %s6947_s2 }
 0x396   : > { %p4357_p13 = scmp.lt.u32.totalorder %s4355_s5, %s4351_s29  ;;  %p4359_p4 = scmp.lt.u32.totalorder %s4351_s29, %s6859_s7 }
 0x397   : > { %p4353_p1 = pnand %p4352_p9, %p4570_p12 }
 0x398   : > { %p4358_p2 = por %p4357_p13, %p4356_p5 }
 0x399   : > { %p4354_p0 = pneg %p4353_p1 }
 0x39a   : > { %p4360_p6 = por %p4359_p4, %p4358_p2 }
 0x39c   : > { %p4361_p8 = pnand %p4360_p6, %p4354_p0 }
 0x39e   : > { %4364 = shalt.err (!%p4361_p8)
}
 0x39f   : > { %s4454_s23 = smov 64   ;;  %v3279_v52 = vadd.f32 %v3278_v45, %v3277_v62  ;;  %v3379_v13 = vrot.slane %v3378_v20, 4  ;;  %s3705_s26 = sshll.u32 %s4621_s6, 1  ;;  %vm3387_vm3 = vcmask 58368  }
 0x3a0   : > { %4101 = dma.vmem_to_hbm [thread:$0]  (%p4570_p12), %s6865_s28, 2048, %s6859_s7, %s3551_s10, %s4454_s23, %s4454_s23, %s4445_s18  }
 0x3a1   : > { %v3280_v29 = vrot.slane %v3279_v52, 2  ;;  %v3380_v50 = vadd.f32 %v3379_v13, %v3378_v20  ;;  %s3940_s30 = sshll.u32 %s4497_s16, 5  ;;  %s214_s11 = scalar_lea.vmem [#allocation8], %s3705_s26 }
 0x3a2   : > { %s3585_s20 = sshll.u32 %s214_s11, 4  ;;  %s6900_s28 = scalar_lea.hbm %s6948_s3, %s3940_s30  ;;  %s6902_s20 = int_to_ptr.vmem [resolvable:$true] %s3585_s20 }
 0x3a3   : > { %v3281_v23 = vadd.f32 %v3280_v29, %v3279_v52  ;;  %v3381_v5 = vrot.slane %v3380_v50, 2  ;;  %s3556_s7 = scalar_lea.sflag [#allocation9], %s4621_s6  ;;  %s4365_s16 = scalar_lea.vmem %s6902_s20, 32 }
 0x3a4   : > { %p4366_p10 = scmp.ne.s32.totalorder %s6902_s20, %s4365_s16  ;;  %s4455_s10 = smov [#allocation8]  }
 0x3a5   : > { %v3282_v63 = vrot.slane %v3281_v23, 1  ;;  %v3382_v14 = vadd.f32 %v3381_v5, %v3380_v50  ;;  %s4369_s9 = sshll.u32 %s4455_s10, 4  ;;  %s4370_s9 = int_to_ptr.vmem [resolvable:$false] %s4369_s9 }
 0x3a6   : > { %p4367_p11 = pnand %p4366_p10, %p4570_p12  ;;  %s4371_s29 = scalar_lea.vmem %s4370_s9, 64 }
 0x3a7   : > { %v3383_v40 = vrot.slane %v3382_v14, 1  ;;  %v3283_v49 = vadd.f32 %v3282_v63, %v3281_v23  ;;  %p4372_p7 = scmp.lt.s32.totalorder %s6902_s20, %s4370_s9  ;;  %p4373_p9 = scmp.lt.s32.totalorder %s4371_s29, %s4365_s16 }
 0x3a8   : > { %p4368_p3 = pneg %p4367_p11 }
 0x3a9   : > { %v3384_v4 = vadd.f32 %v3383_v40, %v3382_v14  ;;  %p4374_p1 = por %p4373_p9, %p4372_p7 }
 0x3ab   : > { %v3386_v37 = vsel %vm2079_vm9, %v3283_v49, %v3384_v4  ;;  %p4375_p0 = pnand %p4374_p1, %p4368_p3 }
 0x3ac   : > { %3388 = vst.msk [vmem:[%s214_s11] sm:$0x3] %vm3387_vm3, %v3386_v37 }
 0x3ad   : > { %4378 = shalt.err (!%p4375_p0)
}
 0x3ae   : > { %s4379_s6 = scalar_lea.hbm %s6900_s28, 32  ;;  %s4383_s5 = scalar_lea.hbm %s6948_s3, 64 }
 0x3af   : > { %p4380_p5 = scmp.ne.s32.totalorder %s6900_s28, %s4379_s6  ;;  %p4384_p4 = scmp.lt.u32.totalorder %s6900_s28, %s6948_s3 }
 0x3b0   : > { %p4385_p6 = scmp.lt.u32.totalorder %s4383_s5, %s4379_s6  ;;  %p4387_p10 = scmp.lt.u32.totalorder %s4379_s6, %s6900_s28 }
 0x3b1   : > { %p4381_p13 = pnand %p4380_p5, %p4570_p12 }
 0x3b2   : > { %p4386_p8 = por %p4385_p6, %p4384_p4 }
 0x3b3   : > { %p4382_p2 = pneg %p4381_p13 }
 0x3b4   : > { %p4388_p11 = por %p4387_p10, %p4386_p8 }
 0x3b6   : > { %p4389_p3 = pnand %p4388_p11, %p4382_p2 }
 0x3b8   : > { %4392 = shalt.err (!%p4389_p3)
}
 0x3b9   : > { %4102 = dma.vmem_to_hbm [thread:$0]  (%p4570_p12), %s6902_s20, 32, %s6900_s28, %s3556_s7  }
 0x3ba PF: > { %s3597_s23 = sand.u32 1, %s4427_s12   ;;  %p7299_p7 = scmp.ne.s32.totalorder %s7065_s19, 0 }
 0x3bb   : > { %p7300_p9 = scmp.ge.s32.totalorder %s4439_s15, 2  ;;  %s3598_s26 = scalar_lea.sflag [#allocation4], %s3597_s23 }
 0x3bd   : > { %p4114_p1 = pnand %p7300_p9, %p7299_p7 }
 0x3bf   : > { %4418 = dma.done.wait (!%p4114_p1), %s3598_s26, 2048  }
 0x3c0   : > { %4420 = vsyncadd (!%p4114_p1), %s3598_s26, 4294965248  ;;  %s3607_s30 = scalar_lea.sflag [#allocation9], %s3597_s23 }
 0x3c1   : > { %4422 = dma.done.wait (!%p4114_p1), %s3607_s30, 32  }
 0x3c2   : > { %4424 = vsyncadd (!%p4114_p1), %s3607_s30, 4294967264  ;;  %p21_p12 = scmp.ge.s32.totalorder %s4532_s24, 4   ;;  %s7301_s12 = smov %s4431_s13 }
 0x3c3   : > { %s7302_s13 = smov %s4435_s14  ;;  %s7303_s14 = smov %s4566_s17 }
 0x3c4   : > { %s7304_s15 = smov %s4532_s24  ;;  %23 = sbr.rel (!%p21_p12) target bundleno = 8 (0x8), region = 95 }
 0x3cb   :  { %3612 = vsyncpa [#allocation3], 1 }
 0x3cc   :  { %3614 = vsyncpa [#allocation3 + $0x1], 1 }
 0x3cd   :  { %3615 = vsyncpa [#allocation6], 1 }
 0x3ce   :  { %3616 = vsyncpa [#allocation4], 1 }
 0x3cf   :  { %3618 = vsyncpa [#allocation4 + $0x1], 1 }
 0x3d0   :  { %3619 = vsyncpa [#allocation9], 1 }
 0x3d1   :  { %3621 = vsyncpa [#allocation9 + $0x1], 1 }

</bundles_post_ra>
